<compile_context>
chip_gen: v5e
topology: v5e:2x2
jax: 0.10.0
libtpu: 0.0.40
codegen_flags: <defaults>
</compile_context>

<pallas_src>
import functools

import jax
import jax.numpy as jnp
from jax.experimental import pallas as pl
from jax.experimental.pallas import tpu as pltpu

LANE = 128


def _rup(x, m):
    return (x + m - 1) // m * m


def _pad_vec(v, n):
    return jnp.pad(v, (0, n - v.shape[0]))


def _vmem_limit(est_bytes):
    # explicit scoped-VMEM budget from the block sizes (feedback for v5e/v6e),
    # capped at v7x's 64 MiB physical VMEM.
    return int(min(max(4 * est_bytes, 32 * 1024 * 1024), 64 * 1024 * 1024))


# ----------------------------------------------------------------------------
# Kernels A/B: 3x3 "valid" conv as 9 sublane-shifted accumulating matmuls,
# optional fused BN+ReLU of the previous layer, masked partial BN statistics.
# ----------------------------------------------------------------------------
def _conv_compute(x_ref, scale_ref, shift_ref, w_ref, b_ref, o_ref, stats_ref,
                  *, w_stride, valid_h, valid_w, l_out, use_bf16):
    # x_ref:       (1, L_in, Ci)  flat rows (row stride = w_stride), zero padded
    # scale/shift: (1, Ci)        previous layer's folded BN+ReLU (or None)
    # w_ref:       (9, Ci, Co)    per-tap weights     b_ref: (1, Co)
    # o_ref:       (1, L_out, Co) conv + bias (pre-BN), same W-stride layout
    # stats_ref:   (1, 8, Co)     row 0 = masked sum, row 1 = masked sum-of-sq
    x = x_ref[0]
    if scale_ref is not None:                       # fused BN+ReLU, once per slab
        x = jnp.maximum(x * scale_ref[...] + shift_ref[...], 0.0)

    acc = None
    for kh in range(3):                             # 9 static taps, no im2col
        for kw in range(3):
            off = kh * w_stride + kw
            a = x[off:off + l_out, :]               # sublane-offset slice
            if use_bf16:
                a = a.astype(jnp.bfloat16)          # MXU operand only; acc f32
            d = jnp.dot(a, w_ref[kh * 3 + kw],
                        preferred_element_type=jnp.float32)
            acc = d if acc is None else acc + d
    acc = acc + b_ref[...]
    o_ref[0] = acc

    # masked partial batch statistics (exclude wrapped columns / padded rows);
    # stats are taken from the f32 accumulator even on the bf16 path.
    r = jax.lax.broadcasted_iota(jnp.int32, (l_out, 1), 0)
    col = r % w_stride
    valid = jnp.logical_and(r < valid_h * w_stride, col < valid_w)
    am = acc * valid.astype(jnp.float32)
    ssum = jnp.sum(am, axis=0, keepdims=True)
    ssq = jnp.sum(am * acc, axis=0, keepdims=True)
    ridx = jax.lax.broadcasted_iota(jnp.int32, (8, ssum.shape[1]), 0)
    stats_ref[0] = jnp.where(ridx == 0, ssum, jnp.where(ridx == 1, ssq, 0.0))


def _conv_noact_kernel(x_ref, w_ref, b_ref, o_ref, stats_ref, **kw):
    _conv_compute(x_ref, None, None, w_ref, b_ref, o_ref, stats_ref, **kw)


def _conv_act_kernel(x_ref, scale_ref, shift_ref, w_ref, b_ref, o_ref,
                     stats_ref, **kw):
    _conv_compute(x_ref, scale_ref, shift_ref, w_ref, b_ref, o_ref, stats_ref,
                  **kw)


def _conv_pass(x_flat, scale_in, shift_in, w_taps, bias2d, *, w_stride, l_out,
               valid_h, valid_w, use_bf16):
    n, l_in, ci = x_flat.shape
    co = w_taps.shape[-1]
    pre_act = scale_in is not None

    in_specs = [pl.BlockSpec((1, l_in, ci), lambda i: (i, 0, 0))]
    args = [x_flat]
    if pre_act:
        in_specs += [pl.BlockSpec((1, ci), lambda i: (0, 0)),
                     pl.BlockSpec((1, ci), lambda i: (0, 0))]
        args += [scale_in.reshape(1, ci), shift_in.reshape(1, ci)]
    # TODO(synk): weight/bias blocks are grid-invariant; pl.Buffered(1) would
    #             halve their VMEM footprint (matters on v7x at UNet widths).
    in_specs += [pl.BlockSpec((9, ci, co), lambda i: (0, 0, 0)),
                 pl.BlockSpec((1, co), lambda i: (0, 0))]
    args += [w_taps, bias2d]

    wbytes = w_taps.size * w_taps.dtype.itemsize
    est = 2 * (l_in * ci * 4 + l_out * co * 4 + 8 * co * 4 + 3 * ci * 4) \
        + 2 * wbytes

    kern = functools.partial(
        _conv_act_kernel if pre_act else _conv_noact_kernel,
        w_stride=w_stride, valid_h=valid_h, valid_w=valid_w,
        l_out=l_out, use_bf16=use_bf16)

    out, stats = pl.pallas_call(
        kern,
        out_shape=(jax.ShapeDtypeStruct((n, l_out, co), jnp.float32),
                   jax.ShapeDtypeStruct((n, 8, co), jnp.float32)),
        grid=(n,),
        in_specs=in_specs,
        out_specs=(pl.BlockSpec((1, l_out, co), lambda i: (i, 0, 0)),
                   pl.BlockSpec((1, 8, co), lambda i: (i, 0, 0))),
        compiler_params=pltpu.CompilerParams(
            dimension_semantics=("parallel",),
            vmem_limit_bytes=_vmem_limit(est)),
    )(*args)
    return out, stats


def _finalize_bn(stats, count, gamma, beta, cpad, eps=1e-5):
    """Per-image partial sums -> folded BN affine (scale, shift); O(C) work."""
    # TODO(synk): pairwise/Kahan accumulation for very large N*H*W.
    s = jnp.sum(stats, axis=0)                       # (8, cpad)
    mean = s[0] / count
    var = jnp.maximum(s[1] / count - mean * mean, 0.0)   # clamp one-pass var
    scale = _pad_vec(gamma, cpad) * jax.lax.rsqrt(var + eps)
    shift = _pad_vec(beta, cpad) - mean * scale
    return scale, shift


# ----------------------------------------------------------------------------
# Kernel C: BN + ReLU + ConvTranspose2d(k=2, s=2) fused (matmul to 4*Cout cols)
# ----------------------------------------------------------------------------
def _bn_relu_matmul_kernel(x_ref, scale_ref, shift_ref, w_ref, b_ref, o_ref, *,
                           use_bf16):
    a = jnp.maximum(x_ref[0] * scale_ref[...] + shift_ref[...], 0.0)
    if use_bf16:
        a = a.astype(jnp.bfloat16)
    o_ref[0] = (jnp.dot(a, w_ref[...], preferred_element_type=jnp.float32)
                + b_ref[...])


def _bn_relu_matmul(x_flat, scale, shift, w2d, bias2d, *, use_bf16):
    n, m, ci = x_flat.shape
    nd = w2d.shape[-1]
    wbytes = w2d.size * w2d.dtype.itemsize
    est = 2 * (m * ci * 4 + m * nd * 4 + 3 * ci * 4 + nd * 4) + 2 * wbytes
    return pl.pallas_call(
        functools.partial(_bn_relu_matmul_kernel, use_bf16=use_bf16),
        out_shape=jax.ShapeDtypeStruct((n, m, nd), jnp.float32),
        grid=(n,),
        in_specs=[
            pl.BlockSpec((1, m, ci), lambda i: (i, 0, 0)),
            pl.BlockSpec((1, ci), lambda i: (0, 0)),
            pl.BlockSpec((1, ci), lambda i: (0, 0)),
            pl.BlockSpec((ci, nd), lambda i: (0, 0)),
            pl.BlockSpec((1, nd), lambda i: (0, 0)),
        ],
        out_specs=pl.BlockSpec((1, m, nd), lambda i: (i, 0, 0)),
        compiler_params=pltpu.CompilerParams(
            dimension_semantics=("parallel",),
            vmem_limit_bytes=_vmem_limit(est)),
    )(x_flat, scale.reshape(1, ci), shift.reshape(1, ci), w2d, bias2d)


# ----------------------------------------------------------------------------
# Decoder block forward (matches _DecoderBlock.forward)
# ----------------------------------------------------------------------------
def decoder_block(x_nchw, p, *, use_bf16=False):
    x = jnp.transpose(x_nchw, (0, 2, 3, 1)).astype(jnp.float32)   # NCHW -> NHWC
    n, h, w, cin = x.shape
    cmid = p["w1"].shape[0]
    cout = p["wt"].shape[1]
    ho1, wo1 = h - 2, w - 2
    ho2, wo2 = h - 4, w - 4

    cpi = _rup(cin, LANE)
    cpm = _rup(cmid, LANE)
    ndp = _rup(4 * cout, LANE)

    # flat-row extents (row stride = w); each stage keeps 2*w+2 extra rows so
    # every in-kernel tap slice of the next stage stays in bounds.
    m2 = _rup(ho2 * w, 8)            # conv2 output rows (kernel C input)
    l1 = _rup(m2 + 2 * w + 2, 8)     # conv1 output rows (kernel B input)
    l0 = _rup(l1 + 2 * w + 2, 8)     # input slab rows (>= h*w, zero padded)

    x_flat = x.reshape(n, h * w, cin)
    x_flat = jnp.pad(x_flat, ((0, 0), (0, l0 - h * w), (0, cpi - cin)))

    wdtype = jnp.bfloat16 if use_bf16 else jnp.float32
    w1t = jnp.transpose(p["w1"], (2, 3, 1, 0)).reshape(9, cin, cmid)
    w1t = jnp.pad(w1t, ((0, 0), (0, cpi - cin), (0, cpm - cmid))).astype(wdtype)
    w2t = jnp.transpose(p["w2"], (2, 3, 1, 0)).reshape(9, cmid, cmid)
    w2t = jnp.pad(w2t, ((0, 0), (0, cpm - cmid), (0, cpm - cmid))).astype(wdtype)
    wtf = jnp.transpose(p["wt"], (0, 2, 3, 1)).reshape(cmid, 4 * cout)
    wtf = jnp.pad(wtf, ((0, cpm - cmid), (0, ndp - 4 * cout))).astype(wdtype)

    b1 = _pad_vec(p["b1"], cpm).reshape(1, cpm)
    b2 = _pad_vec(p["b2"], cpm).reshape(1, cpm)
    bt = _pad_vec(jnp.tile(p["bt"], 4), ndp).reshape(1, ndp)

    # conv1 (+ bias, masked partial BN stats)
    conv1, stats1 = _conv_pass(x_flat, None, None, w1t, b1, w_stride=w,
                               l_out=l1, valid_h=ho1, valid_w=wo1,
                               use_bf16=use_bf16)
    scale1, shift1 = _finalize_bn(stats1, n * ho1 * wo1, p["g1"], p["be1"], cpm)

    # conv2 with BN1 + ReLU fused onto its input slab
    conv2, stats2 = _conv_pass(conv1, scale1, shift1, w2t, b2, w_stride=w,
                               l_out=m2, valid_h=ho2, valid_w=wo2,
                               use_bf16=use_bf16)
    scale2, shift2 = _finalize_bn(stats2, n * ho2 * wo2, p["g2"], p["be2"], cpm)

    # BN2 + ReLU + ConvTranspose2d(2, stride=2): fused matmul to 4*cout cols
    y = _bn_relu_matmul(conv2, scale2, shift2, wtf, bt, use_bf16=use_bf16)

    # 2x2 pixel shuffle + crop of the wrapped columns (XLA glue).
    # TODO(synk): fold into kernel C's out_spec to save one pass over the
    #             largest tensor.
    y = y[:, :ho2 * w, :4 * cout].reshape(n, ho2, w, 2, 2, cout)[:, :, :wo2]
    y = jnp.transpose(y, (0, 1, 3, 2, 4, 5)).reshape(n, 2 * ho2, 2 * wo2, cout)
    return jnp.transpose(y, (0, 3, 1, 2))                         # NHWC -> NCHW


def init_params(key, in_ch, mid_ch, out_ch):
    ks = jax.random.split(key, 6)
    return {
        "w1": 0.1 * jax.random.normal(ks[0], (mid_ch, in_ch, 3, 3), jnp.float32),
        "b1": 0.1 * jax.random.normal(ks[1], (mid_ch,), jnp.float32),
        "g1": jnp.ones((mid_ch,), jnp.float32),
        "be1": jnp.zeros((mid_ch,), jnp.float32),
        "w2": 0.1 * jax.random.normal(ks[2], (mid_ch, mid_ch, 3, 3), jnp.float32),
        "b2": 0.1 * jax.random.normal(ks[3], (mid_ch,), jnp.float32),
        "g2": jnp.ones((mid_ch,), jnp.float32),
        "be2": jnp.zeros((mid_ch,), jnp.float32),
        "wt": 0.1 * jax.random.normal(ks[4], (mid_ch, out_ch, 2, 2), jnp.float32),
        "bt": 0.1 * jax.random.normal(ks[5], (out_ch,), jnp.float32),
    }


# Pure-JAX reference (conv via lax, BN batch stats, deconv via einsum).
def _reference(x, p, eps=1e-5):
    hi = jax.lax.Precision.HIGHEST

    def conv_bn_relu(z, wc, b, g, be):
        z = jax.lax.conv_general_dilated(z, wc, (1, 1), "VALID", precision=hi)
        z = z + b[None, :, None, None]
        mean = jnp.mean(z, axis=(0, 2, 3), keepdims=True)
        var = jnp.mean(jnp.square(z - mean), axis=(0, 2, 3), keepdims=True)
        z = (z - mean) * jax.lax.rsqrt(var + eps)
        z = z * g[None, :, None, None] + be[None, :, None, None]
        return jnp.maximum(z, 0.0)

    z = conv_bn_relu(x, p["w1"], p["b1"], p["g1"], p["be1"])
    z = conv_bn_relu(z, p["w2"], p["b2"], p["g2"], p["be2"])
    n, _, hh, ww = z.shape
    cout = p["wt"].shape[1]
    t = jnp.einsum("nchw,cokl->nohkwl", z, p["wt"], precision=hi)
    return t.reshape(n, cout, 2 * hh, 2 * ww) + p["bt"][None, :, None, None]


if __name__ == "__main__":
    key = jax.random.PRNGKey(0)
    kx, kparams = jax.random.split(key)

    N, C_IN, H, W = 2, 4, 16, 16
    C_MID, C_OUT = 8, 4

    x = jax.random.normal(kx, (N, C_IN, H, W), jnp.float32)
    params = init_params(kparams, C_IN, C_MID, C_OUT)

    fwd = jax.jit(decoder_block, static_argnames=("use_bf16",))

    # exact-parity f32 path
    y = jax.block_until_ready(fwd(x, params, use_bf16=False))
    # 16 -(conv3)-> 14 -(conv3)-> 12 -(deconv2,s2)-> 24
    assert y.shape == (N, C_OUT, 2 * (H - 4), 2 * (W - 4)), y.shape
    assert y.dtype == jnp.float32
    ref = _reference(x, params)
    err32 = float(jnp.max(jnp.abs(y - ref)))
    assert err32 < 5e-2, f"f32 path: max |err| vs reference = {err32}"

    # bf16-MXU-operand path (f32 accumulation / stats / intermediates)
    ybf = jax.block_until_ready(fwd(x, params, use_bf16=True))
    errbf = float(jnp.max(jnp.abs(ybf - ref)))
    assert errbf < 2e-1, f"bf16 path: max |err| vs reference = {errbf}"

    print("KERNEL_OK")
</pallas_src>

<mosaic_0001>
module attributes {stable_mosaic.version = 11 : i64} {
  func.func @_conv_noact_kernel(%arg0: i32, %arg1: memref<1x272x128xf32, #tpu.memory_space<vmem>>, %arg2: memref<9x128x128xf32, #tpu.memory_space<vmem>>, %arg3: memref<1x128xf32, #tpu.memory_space<vmem>>, %arg4: memref<1x232x128xf32, #tpu.memory_space<vmem>>, %arg5: memref<1x8x128xf32, #tpu.memory_space<vmem>>) attributes {dimension_semantics = [#tpu.dimension_semantics<parallel>], iteration_bounds = array<i64: 2>, scalar_prefetch = 0 : i64, scratch_operands = 0 : i64, tpu.core_type = #tpu.core_type<tc>, window_params = [{transform_indices = @transform_0, window_bounds = array<i64: 1, 272, 128>}, {pipeline_mode = #tpu.pipeline_mode<synchronous>, transform_indices = @transform_1, window_bounds = array<i64: 9, 128, 128>}, {pipeline_mode = #tpu.pipeline_mode<synchronous>, transform_indices = @transform_2, window_bounds = array<i64: 1, 128>}, {transform_indices = @transform_3, window_bounds = array<i64: 1, 232, 128>}, {transform_indices = @transform_4, window_bounds = array<i64: 1, 8, 128>}]} {
    %c0 = arith.constant 0 : index
    %c0_0 = arith.constant 0 : index
    %c0_1 = arith.constant 0 : index
    %0 = vector.load %arg1[%c0, %c0_0, %c0_1] : memref<1x272x128xf32, #tpu.memory_space<vmem>>, vector<1x272x128xf32>
    %1 = vector.shape_cast %0 : vector<1x272x128xf32> to vector<272x128xf32>
    %2 = vector.extract_strided_slice %1 {offsets = [0, 0], sizes = [232, 128], strides = [1, 1]} : vector<272x128xf32> to vector<232x128xf32>
    %c0_2 = arith.constant 0 : index
    %c0_3 = arith.constant 0 : index
    %c0_4 = arith.constant 0 : index
    %3 = vector.load %arg2[%c0_2, %c0_3, %c0_4] : memref<9x128x128xf32, #tpu.memory_space<vmem>>, vector<1x128x128xf32>
    %4 = vector.shape_cast %3 : vector<1x128x128xf32> to vector<128x128xf32>
    %cst = arith.constant dense<0.000000e+00> : vector<232x128xf32>
    %5 = tpu.matmul %2, %4, %cst {dimension_numbers = #tpu.dot_dimension_numbers<[1], [0], [0], [1], [0, 0, 1, 1], [], []>} : vector<232x128xf32>, vector<128x128xf32>, vector<232x128xf32> -> vector<232x128xf32>
    %6 = vector.extract_strided_slice %1 {offsets = [1, 0], sizes = [232, 128], strides = [1, 1]} : vector<272x128xf32> to vector<232x128xf32>
    %c1 = arith.constant 1 : index
    %c0_5 = arith.constant 0 : index
    %c0_6 = arith.constant 0 : index
    %7 = vector.load %arg2[%c1, %c0_5, %c0_6] : memref<9x128x128xf32, #tpu.memory_space<vmem>>, vector<1x128x128xf32>
    %8 = vector.shape_cast %7 : vector<1x128x128xf32> to vector<128x128xf32>
    %cst_7 = arith.constant dense<0.000000e+00> : vector<232x128xf32>
    %9 = tpu.matmul %6, %8, %cst_7 {dimension_numbers = #tpu.dot_dimension_numbers<[1], [0], [0], [1], [0, 0, 1, 1], [], []>} : vector<232x128xf32>, vector<128x128xf32>, vector<232x128xf32> -> vector<232x128xf32>
    %10 = arith.addf %5, %9 : vector<232x128xf32>
    %11 = vector.extract_strided_slice %1 {offsets = [2, 0], sizes = [232, 128], strides = [1, 1]} : vector<272x128xf32> to vector<232x128xf32>
    %c2 = arith.constant 2 : index
    %c0_8 = arith.constant 0 : index
    %c0_9 = arith.constant 0 : index
    %12 = vector.load %arg2[%c2, %c0_8, %c0_9] : memref<9x128x128xf32, #tpu.memory_space<vmem>>, vector<1x128x128xf32>
    %13 = vector.shape_cast %12 : vector<1x128x128xf32> to vector<128x128xf32>
    %cst_10 = arith.constant dense<0.000000e+00> : vector<232x128xf32>
    %14 = tpu.matmul %11, %13, %cst_10 {dimension_numbers = #tpu.dot_dimension_numbers<[1], [0], [0], [1], [0, 0, 1, 1], [], []>} : vector<232x128xf32>, vector<128x128xf32>, vector<232x128xf32> -> vector<232x128xf32>
    %15 = arith.addf %10, %14 : vector<232x128xf32>
    %16 = vector.extract_strided_slice %1 {offsets = [16, 0], sizes = [232, 128], strides = [1, 1]} : vector<272x128xf32> to vector<232x128xf32>
    %c3 = arith.constant 3 : index
    %c0_11 = arith.constant 0 : index
    %c0_12 = arith.constant 0 : index
    %17 = vector.load %arg2[%c3, %c0_11, %c0_12] : memref<9x128x128xf32, #tpu.memory_space<vmem>>, vector<1x128x128xf32>
    %18 = vector.shape_cast %17 : vector<1x128x128xf32> to vector<128x128xf32>
    %cst_13 = arith.constant dense<0.000000e+00> : vector<232x128xf32>
    %19 = tpu.matmul %16, %18, %cst_13 {dimension_numbers = #tpu.dot_dimension_numbers<[1], [0], [0], [1], [0, 0, 1, 1], [], []>} : vector<232x128xf32>, vector<128x128xf32>, vector<232x128xf32> -> vector<232x128xf32>
    %20 = arith.addf %15, %19 : vector<232x128xf32>
    %21 = vector.extract_strided_slice %1 {offsets = [17, 0], sizes = [232, 128], strides = [1, 1]} : vector<272x128xf32> to vector<232x128xf32>
    %c4 = arith.constant 4 : index
    %c0_14 = arith.constant 0 : index
    %c0_15 = arith.constant 0 : index
    %22 = vector.load %arg2[%c4, %c0_14, %c0_15] : memref<9x128x128xf32, #tpu.memory_space<vmem>>, vector<1x128x128xf32>
    %23 = vector.shape_cast %22 : vector<1x128x128xf32> to vector<128x128xf32>
    %cst_16 = arith.constant dense<0.000000e+00> : vector<232x128xf32>
    %24 = tpu.matmul %21, %23, %cst_16 {dimension_numbers = #tpu.dot_dimension_numbers<[1], [0], [0], [1], [0, 0, 1, 1], [], []>} : vector<232x128xf32>, vector<128x128xf32>, vector<232x128xf32> -> vector<232x128xf32>
    %25 = arith.addf %20, %24 : vector<232x128xf32>
    %26 = vector.extract_strided_slice %1 {offsets = [18, 0], sizes = [232, 128], strides = [1, 1]} : vector<272x128xf32> to vector<232x128xf32>
    %c5 = arith.constant 5 : index
    %c0_17 = arith.constant 0 : index
    %c0_18 = arith.constant 0 : index
    %27 = vector.load %arg2[%c5, %c0_17, %c0_18] : memref<9x128x128xf32, #tpu.memory_space<vmem>>, vector<1x128x128xf32>
    %28 = vector.shape_cast %27 : vector<1x128x128xf32> to vector<128x128xf32>
    %cst_19 = arith.constant dense<0.000000e+00> : vector<232x128xf32>
    %29 = tpu.matmul %26, %28, %cst_19 {dimension_numbers = #tpu.dot_dimension_numbers<[1], [0], [0], [1], [0, 0, 1, 1], [], []>} : vector<232x128xf32>, vector<128x128xf32>, vector<232x128xf32> -> vector<232x128xf32>
    %30 = arith.addf %25, %29 : vector<232x128xf32>
    %31 = vector.extract_strided_slice %1 {offsets = [32, 0], sizes = [232, 128], strides = [1, 1]} : vector<272x128xf32> to vector<232x128xf32>
    %c6 = arith.constant 6 : index
    %c0_20 = arith.constant 0 : index
    %c0_21 = arith.constant 0 : index
    %32 = vector.load %arg2[%c6, %c0_20, %c0_21] : memref<9x128x128xf32, #tpu.memory_space<vmem>>, vector<1x128x128xf32>
    %33 = vector.shape_cast %32 : vector<1x128x128xf32> to vector<128x128xf32>
    %cst_22 = arith.constant dense<0.000000e+00> : vector<232x128xf32>
    %34 = tpu.matmul %31, %33, %cst_22 {dimension_numbers = #tpu.dot_dimension_numbers<[1], [0], [0], [1], [0, 0, 1, 1], [], []>} : vector<232x128xf32>, vector<128x128xf32>, vector<232x128xf32> -> vector<232x128xf32>
    %35 = arith.addf %30, %34 : vector<232x128xf32>
    %36 = vector.extract_strided_slice %1 {offsets = [33, 0], sizes = [232, 128], strides = [1, 1]} : vector<272x128xf32> to vector<232x128xf32>
    %c7 = arith.constant 7 : index
    %c0_23 = arith.constant 0 : index
    %c0_24 = arith.constant 0 : index
    %37 = vector.load %arg2[%c7, %c0_23, %c0_24] : memref<9x128x128xf32, #tpu.memory_space<vmem>>, vector<1x128x128xf32>
    %38 = vector.shape_cast %37 : vector<1x128x128xf32> to vector<128x128xf32>
    %cst_25 = arith.constant dense<0.000000e+00> : vector<232x128xf32>
    %39 = tpu.matmul %36, %38, %cst_25 {dimension_numbers = #tpu.dot_dimension_numbers<[1], [0], [0], [1], [0, 0, 1, 1], [], []>} : vector<232x128xf32>, vector<128x128xf32>, vector<232x128xf32> -> vector<232x128xf32>
    %40 = arith.addf %35, %39 : vector<232x128xf32>
    %41 = vector.extract_strided_slice %1 {offsets = [34, 0], sizes = [232, 128], strides = [1, 1]} : vector<272x128xf32> to vector<232x128xf32>
    %c8 = arith.constant 8 : index
    %c0_26 = arith.constant 0 : index
    %c0_27 = arith.constant 0 : index
    %42 = vector.load %arg2[%c8, %c0_26, %c0_27] : memref<9x128x128xf32, #tpu.memory_space<vmem>>, vector<1x128x128xf32>
    %43 = vector.shape_cast %42 : vector<1x128x128xf32> to vector<128x128xf32>
    %cst_28 = arith.constant dense<0.000000e+00> : vector<232x128xf32>
    %44 = tpu.matmul %41, %43, %cst_28 {dimension_numbers = #tpu.dot_dimension_numbers<[1], [0], [0], [1], [0, 0, 1, 1], [], []>} : vector<232x128xf32>, vector<128x128xf32>, vector<232x128xf32> -> vector<232x128xf32>
    %45 = arith.addf %40, %44 : vector<232x128xf32>
    %c0_29 = arith.constant 0 : index
    %c0_30 = arith.constant 0 : index
    %46 = vector.load %arg3[%c0_29, %c0_30] : memref<1x128xf32, #tpu.memory_space<vmem>>, vector<1x128xf32>
    %47 = vector.broadcast %46 : vector<1x128xf32> to vector<232x128xf32>
    %48 = arith.addf %45, %47 : vector<232x128xf32>
    %c0_31 = arith.constant 0 : index
    %c0_32 = arith.constant 0 : index
    %c0_33 = arith.constant 0 : index
    %49 = vector.load %arg4[%c0_31, %c0_32, %c0_33] : memref<1x232x128xf32, #tpu.memory_space<vmem>>, vector<1x232x128xf32>
    %50 = vector.shape_cast %49 : vector<1x232x128xf32> to vector<232x128xf32>
    %51 = vector.shape_cast %48 : vector<232x128xf32> to vector<1x232x128xf32>
    tpu.vector_store %arg4[%c0_31, %c0_32, %c0_33], %51 {strides = array<i32>} : memref<1x232x128xf32, #tpu.memory_space<vmem>>, vector<1x232x128xf32>,
    %52 = tpu.iota {dimensions = array<i32: 0>} : vector<232x1xi32>
    %c16_i32 = arith.constant 16 : i32
    %c0_i32 = arith.constant 0 : i32
    %53 = arith.cmpi eq, %c16_i32, %c0_i32 : i32
    %c1_i32 = arith.constant 1 : i32
    %54 = arith.select %53, %c1_i32, %c16_i32 : i32
    %55 = vector.broadcast %54 : i32 to vector<232x1xi32>
    %56 = arith.remsi %52, %55 : vector<232x1xi32>
    %c0_i32_34 = arith.constant 0 : i32
    %57 = vector.broadcast %c0_i32_34 : i32 to vector<232x1xi32>
    %58 = arith.cmpi ne, %56, %57 : vector<232x1xi32>
    %c0_i32_35 = arith.constant 0 : i32
    %59 = vector.broadcast %c0_i32_35 : i32 to vector<232x1xi32>
    %60 = arith.cmpi slt, %56, %59 : vector<232x1xi32>
    %c0_i32_36 = arith.constant 0 : i32
    %61 = arith.cmpi slt, %54, %c0_i32_36 : i32
    %62 = vector.broadcast %61 : i1 to vector<232x1xi1>
    %63 = vector.broadcast %62 : vector<232x1xi1> to vector<232x1xi1>
    %64 = arith.xori %60, %63 : vector<232x1xi1>
    %65 = arith.andi %64, %58 : vector<232x1xi1>
    %66 = vector.broadcast %54 : i32 to vector<232x1xi32>
    %67 = arith.addi %56, %66 : vector<232x1xi32>
    %68 = arith.select %65, %67, %56 : vector<232x1xi1>, vector<232x1xi32>
    %c224_i32 = arith.constant 224 : i32
    %69 = vector.broadcast %c224_i32 : i32 to vector<232x1xi32>
    %70 = arith.cmpi slt, %52, %69 : vector<232x1xi32>
    %c14_i32 = arith.constant 14 : i32
    %71 = vector.broadcast %c14_i32 : i32 to vector<232x1xi32>
    %72 = arith.cmpi slt, %68, %71 : vector<232x1xi32>
    %73 = arith.andi %70, %72 : vector<232x1xi1>
    %74 = arith.extui %73 : vector<232x1xi1> to vector<232x1xi32>
    %75 = arith.sitofp %74 : vector<232x1xi32> to vector<232x1xf32>
    %76 = vector.broadcast %75 : vector<232x1xf32> to vector<232x128xf32>
    %77 = arith.mulf %48, %76 : vector<232x128xf32>
    %cst_37 = arith.constant dense<0.000000e+00> : vector<128xf32>
    %78 = vector.multi_reduction <add>, %77, %cst_37 [0] : vector<232x128xf32> to vector<128xf32>
    %79 = vector.shape_cast %78 : vector<128xf32> to vector<1x128xf32>
    %80 = arith.mulf %77, %48 : vector<232x128xf32>
    %cst_38 = arith.constant dense<0.000000e+00> : vector<128xf32>
    %81 = vector.multi_reduction <add>, %80, %cst_38 [0] : vector<232x128xf32> to vector<128xf32>
    %82 = vector.shape_cast %81 : vector<128xf32> to vector<1x128xf32>
    %83 = tpu.iota {dimensions = array<i32: 0>} : vector<8x128xi32>
    %c0_i32_39 = arith.constant 0 : i32
    %84 = vector.broadcast %c0_i32_39 : i32 to vector<8x128xi32>
    %85 = arith.cmpi eq, %83, %84 : vector<8x128xi32>
    %c1_i32_40 = arith.constant 1 : i32
    %86 = vector.broadcast %c1_i32_40 : i32 to vector<8x128xi32>
    %87 = arith.cmpi eq, %83, %86 : vector<8x128xi32>
    %cst_41 = arith.constant 0.000000e+00 : f32
    %88 = vector.shape_cast %82 : vector<1x128xf32> to vector<1x128xf32>
    %89 = vector.broadcast %88 : vector<1x128xf32> to vector<8x128xf32>
    %90 = vector.broadcast %cst_41 : f32 to vector<8x128xf32>
    %91 = arith.select %87, %89, %90 : vector<8x128xi1>, vector<8x128xf32>
    %92 = vector.shape_cast %79 : vector<1x128xf32> to vector<1x128xf32>
    %93 = vector.broadcast %92 : vector<1x128xf32> to vector<8x128xf32>
    %94 = arith.select %85, %93, %91 : vector<8x128xi1>, vector<8x128xf32>
    %c0_42 = arith.constant 0 : index
    %c0_43 = arith.constant 0 : index
    %c0_44 = arith.constant 0 : index
    %95 = vector.load %arg5[%c0_42, %c0_43, %c0_44] : memref<1x8x128xf32, #tpu.memory_space<vmem>>, vector<1x8x128xf32>
    %96 = vector.shape_cast %95 : vector<1x8x128xf32> to vector<8x128xf32>
    %97 = vector.shape_cast %94 : vector<8x128xf32> to vector<1x8x128xf32>
    tpu.vector_store %arg5[%c0_42, %c0_43, %c0_44], %97 {strides = array<i32>} : memref<1x8x128xf32, #tpu.memory_space<vmem>>, vector<1x8x128xf32>,
    return
  }
  func.func @transform_0(%arg0: i32) -> (i32, i32, i32) {
    %c0_i32 = arith.constant 0 : i32
    %c0_i32_0 = arith.constant 0 : i32
    %c0_i32_1 = arith.constant 0 : i32
    return %arg0, %c0_i32, %c0_i32_0 : i32, i32, i32
  }
  func.func @transform_1(%arg0: i32) -> (i32, i32, i32) {
    %c0_i32 = arith.constant 0 : i32
    %c0_i32_0 = arith.constant 0 : i32
    %c0_i32_1 = arith.constant 0 : i32
    %c0_i32_2 = arith.constant 0 : i32
    return %c0_i32, %c0_i32_0, %c0_i32_1 : i32, i32, i32
  }
  func.func @transform_2(%arg0: i32) -> (i32, i32) {
    %c0_i32 = arith.constant 0 : i32
    %c0_i32_0 = arith.constant 0 : i32
    %c0_i32_1 = arith.constant 0 : i32
    return %c0_i32, %c0_i32_0 : i32, i32
  }
  func.func @transform_3(%arg0: i32) -> (i32, i32, i32) {
    %c0_i32 = arith.constant 0 : i32
    %c0_i32_0 = arith.constant 0 : i32
    %c0_i32_1 = arith.constant 0 : i32
    return %arg0, %c0_i32, %c0_i32_0 : i32, i32, i32
  }
  func.func @transform_4(%arg0: i32) -> (i32, i32, i32) {
    %c0_i32 = arith.constant 0 : i32
    %c0_i32_0 = arith.constant 0 : i32
    %c0_i32_1 = arith.constant 0 : i32
    return %arg0, %c0_i32, %c0_i32_0 : i32, i32, i32
  }
}

module attributes {stable_mosaic.version = 11 : i64} {
  func.func @_conv_act_kernel(%arg0: i32, %arg1: memref<1x232x128xf32, #tpu.memory_space<vmem>>, %arg2: memref<1x128xf32, #tpu.memory_space<vmem>>, %arg3: memref<1x128xf32, #tpu.memory_space<vmem>>, %arg4: memref<9x128x128xf32, #tpu.memory_space<vmem>>, %arg5: memref<1x128xf32, #tpu.memory_space<vmem>>, %arg6: memref<1x192x128xf32, #tpu.memory_space<vmem>>, %arg7: memref<1x8x128xf32, #tpu.memory_space<vmem>>) attributes {dimension_semantics = [#tpu.dimension_semantics<parallel>], iteration_bounds = array<i64: 2>, scalar_prefetch = 0 : i64, scratch_operands = 0 : i64, tpu.core_type = #tpu.core_type<tc>, window_params = [{transform_indices = @transform_0, window_bounds = array<i64: 1, 232, 128>}, {pipeline_mode = #tpu.pipeline_mode<synchronous>, transform_indices = @transform_1, window_bounds = array<i64: 1, 128>}, {pipeline_mode = #tpu.pipeline_mode<synchronous>, transform_indices = @transform_2, window_bounds = array<i64: 1, 128>}, {pipeline_mode = #tpu.pipeline_mode<synchronous>, transform_indices = @transform_3, window_bounds = array<i64: 9, 128, 128>}, {pipeline_mode = #tpu.pipeline_mode<synchronous>, transform_indices = @transform_4, window_bounds = array<i64: 1, 128>}, {transform_indices = @transform_5, window_bounds = array<i64: 1, 192, 128>}, {transform_indices = @transform_6, window_bounds = array<i64: 1, 8, 128>}]} {
    %c0 = arith.constant 0 : index
    %c0_0 = arith.constant 0 : index
    %c0_1 = arith.constant 0 : index
    %0 = vector.load %arg1[%c0, %c0_0, %c0_1] : memref<1x232x128xf32, #tpu.memory_space<vmem>>, vector<1x232x128xf32>
    %1 = vector.shape_cast %0 : vector<1x232x128xf32> to vector<232x128xf32>
    %c0_2 = arith.constant 0 : index
    %c0_3 = arith.constant 0 : index
    %2 = vector.load %arg2[%c0_2, %c0_3] : memref<1x128xf32, #tpu.memory_space<vmem>>, vector<1x128xf32>
    %3 = vector.broadcast %2 : vector<1x128xf32> to vector<232x128xf32>
    %4 = arith.mulf %1, %3 : vector<232x128xf32>
    %c0_4 = arith.constant 0 : index
    %c0_5 = arith.constant 0 : index
    %5 = vector.load %arg3[%c0_4, %c0_5] : memref<1x128xf32, #tpu.memory_space<vmem>>, vector<1x128xf32>
    %6 = vector.broadcast %5 : vector<1x128xf32> to vector<232x128xf32>
    %7 = arith.addf %4, %6 : vector<232x128xf32>
    %cst = arith.constant 0.000000e+00 : f32
    %8 = vector.broadcast %cst : f32 to vector<232x128xf32>
    %9 = arith.maximumf %7, %8 : vector<232x128xf32>
    %10 = vector.extract_strided_slice %9 {offsets = [0, 0], sizes = [192, 128], strides = [1, 1]} : vector<232x128xf32> to vector<192x128xf32>
    %c0_6 = arith.constant 0 : index
    %c0_7 = arith.constant 0 : index
    %c0_8 = arith.constant 0 : index
    %11 = vector.load %arg4[%c0_6, %c0_7, %c0_8] : memref<9x128x128xf32, #tpu.memory_space<vmem>>, vector<1x128x128xf32>
    %12 = vector.shape_cast %11 : vector<1x128x128xf32> to vector<128x128xf32>
    %cst_9 = arith.constant dense<0.000000e+00> : vector<192x128xf32>
    %13 = tpu.matmul %10, %12, %cst_9 {dimension_numbers = #tpu.dot_dimension_numbers<[1], [0], [0], [1], [0, 0, 1, 1], [], []>} : vector<192x128xf32>, vector<128x128xf32>, vector<192x128xf32> -> vector<192x128xf32>
    %14 = vector.extract_strided_slice %9 {offsets = [1, 0], sizes = [192, 128], strides = [1, 1]} : vector<232x128xf32> to vector<192x128xf32>
    %c1 = arith.constant 1 : index
    %c0_10 = arith.constant 0 : index
    %c0_11 = arith.constant 0 : index
    %15 = vector.load %arg4[%c1, %c0_10, %c0_11] : memref<9x128x128xf32, #tpu.memory_space<vmem>>, vector<1x128x128xf32>
    %16 = vector.shape_cast %15 : vector<1x128x128xf32> to vector<128x128xf32>
    %cst_12 = arith.constant dense<0.000000e+00> : vector<192x128xf32>
    %17 = tpu.matmul %14, %16, %cst_12 {dimension_numbers = #tpu.dot_dimension_numbers<[1], [0], [0], [1], [0, 0, 1, 1], [], []>} : vector<192x128xf32>, vector<128x128xf32>, vector<192x128xf32> -> vector<192x128xf32>
    %18 = arith.addf %13, %17 : vector<192x128xf32>
    %19 = vector.extract_strided_slice %9 {offsets = [2, 0], sizes = [192, 128], strides = [1, 1]} : vector<232x128xf32> to vector<192x128xf32>
    %c2 = arith.constant 2 : index
    %c0_13 = arith.constant 0 : index
    %c0_14 = arith.constant 0 : index
    %20 = vector.load %arg4[%c2, %c0_13, %c0_14] : memref<9x128x128xf32, #tpu.memory_space<vmem>>, vector<1x128x128xf32>
    %21 = vector.shape_cast %20 : vector<1x128x128xf32> to vector<128x128xf32>
    %cst_15 = arith.constant dense<0.000000e+00> : vector<192x128xf32>
    %22 = tpu.matmul %19, %21, %cst_15 {dimension_numbers = #tpu.dot_dimension_numbers<[1], [0], [0], [1], [0, 0, 1, 1], [], []>} : vector<192x128xf32>, vector<128x128xf32>, vector<192x128xf32> -> vector<192x128xf32>
    %23 = arith.addf %18, %22 : vector<192x128xf32>
    %24 = vector.extract_strided_slice %9 {offsets = [16, 0], sizes = [192, 128], strides = [1, 1]} : vector<232x128xf32> to vector<192x128xf32>
    %c3 = arith.constant 3 : index
    %c0_16 = arith.constant 0 : index
    %c0_17 = arith.constant 0 : index
    %25 = vector.load %arg4[%c3, %c0_16, %c0_17] : memref<9x128x128xf32, #tpu.memory_space<vmem>>, vector<1x128x128xf32>
    %26 = vector.shape_cast %25 : vector<1x128x128xf32> to vector<128x128xf32>
    %cst_18 = arith.constant dense<0.000000e+00> : vector<192x128xf32>
    %27 = tpu.matmul %24, %26, %cst_18 {dimension_numbers = #tpu.dot_dimension_numbers<[1], [0], [0], [1], [0, 0, 1, 1], [], []>} : vector<192x128xf32>, vector<128x128xf32>, vector<192x128xf32> -> vector<192x128xf32>
    %28 = arith.addf %23, %27 : vector<192x128xf32>
    %29 = vector.extract_strided_slice %9 {offsets = [17, 0], sizes = [192, 128], strides = [1, 1]} : vector<232x128xf32> to vector<192x128xf32>
    %c4 = arith.constant 4 : index
    %c0_19 = arith.constant 0 : index
    %c0_20 = arith.constant 0 : index
    %30 = vector.load %arg4[%c4, %c0_19, %c0_20] : memref<9x128x128xf32, #tpu.memory_space<vmem>>, vector<1x128x128xf32>
    %31 = vector.shape_cast %30 : vector<1x128x128xf32> to vector<128x128xf32>
    %cst_21 = arith.constant dense<0.000000e+00> : vector<192x128xf32>
    %32 = tpu.matmul %29, %31, %cst_21 {dimension_numbers = #tpu.dot_dimension_numbers<[1], [0], [0], [1], [0, 0, 1, 1], [], []>} : vector<192x128xf32>, vector<128x128xf32>, vector<192x128xf32> -> vector<192x128xf32>
    %33 = arith.addf %28, %32 : vector<192x128xf32>
    %34 = vector.extract_strided_slice %9 {offsets = [18, 0], sizes = [192, 128], strides = [1, 1]} : vector<232x128xf32> to vector<192x128xf32>
    %c5 = arith.constant 5 : index
    %c0_22 = arith.constant 0 : index
    %c0_23 = arith.constant 0 : index
    %35 = vector.load %arg4[%c5, %c0_22, %c0_23] : memref<9x128x128xf32, #tpu.memory_space<vmem>>, vector<1x128x128xf32>
    %36 = vector.shape_cast %35 : vector<1x128x128xf32> to vector<128x128xf32>
    %cst_24 = arith.constant dense<0.000000e+00> : vector<192x128xf32>
    %37 = tpu.matmul %34, %36, %cst_24 {dimension_numbers = #tpu.dot_dimension_numbers<[1], [0], [0], [1], [0, 0, 1, 1], [], []>} : vector<192x128xf32>, vector<128x128xf32>, vector<192x128xf32> -> vector<192x128xf32>
    %38 = arith.addf %33, %37 : vector<192x128xf32>
    %39 = vector.extract_strided_slice %9 {offsets = [32, 0], sizes = [192, 128], strides = [1, 1]} : vector<232x128xf32> to vector<192x128xf32>
    %c6 = arith.constant 6 : index
    %c0_25 = arith.constant 0 : index
    %c0_26 = arith.constant 0 : index
    %40 = vector.load %arg4[%c6, %c0_25, %c0_26] : memref<9x128x128xf32, #tpu.memory_space<vmem>>, vector<1x128x128xf32>
    %41 = vector.shape_cast %40 : vector<1x128x128xf32> to vector<128x128xf32>
    %cst_27 = arith.constant dense<0.000000e+00> : vector<192x128xf32>
    %42 = tpu.matmul %39, %41, %cst_27 {dimension_numbers = #tpu.dot_dimension_numbers<[1], [0], [0], [1], [0, 0, 1, 1], [], []>} : vector<192x128xf32>, vector<128x128xf32>, vector<192x128xf32> -> vector<192x128xf32>
    %43 = arith.addf %38, %42 : vector<192x128xf32>
    %44 = vector.extract_strided_slice %9 {offsets = [33, 0], sizes = [192, 128], strides = [1, 1]} : vector<232x128xf32> to vector<192x128xf32>
    %c7 = arith.constant 7 : index
    %c0_28 = arith.constant 0 : index
    %c0_29 = arith.constant 0 : index
    %45 = vector.load %arg4[%c7, %c0_28, %c0_29] : memref<9x128x128xf32, #tpu.memory_space<vmem>>, vector<1x128x128xf32>
    %46 = vector.shape_cast %45 : vector<1x128x128xf32> to vector<128x128xf32>
    %cst_30 = arith.constant dense<0.000000e+00> : vector<192x128xf32>
    %47 = tpu.matmul %44, %46, %cst_30 {dimension_numbers = #tpu.dot_dimension_numbers<[1], [0], [0], [1], [0, 0, 1, 1], [], []>} : vector<192x128xf32>, vector<128x128xf32>, vector<192x128xf32> -> vector<192x128xf32>
    %48 = arith.addf %43, %47 : vector<192x128xf32>
    %49 = vector.extract_strided_slice %9 {offsets = [34, 0], sizes = [192, 128], strides = [1, 1]} : vector<232x128xf32> to vector<192x128xf32>
    %c8 = arith.constant 8 : index
    %c0_31 = arith.constant 0 : index
    %c0_32 = arith.constant 0 : index
    %50 = vector.load %arg4[%c8, %c0_31, %c0_32] : memref<9x128x128xf32, #tpu.memory_space<vmem>>, vector<1x128x128xf32>
    %51 = vector.shape_cast %50 : vector<1x128x128xf32> to vector<128x128xf32>
    %cst_33 = arith.constant dense<0.000000e+00> : vector<192x128xf32>
    %52 = tpu.matmul %49, %51, %cst_33 {dimension_numbers = #tpu.dot_dimension_numbers<[1], [0], [0], [1], [0, 0, 1, 1], [], []>} : vector<192x128xf32>, vector<128x128xf32>, vector<192x128xf32> -> vector<192x128xf32>
    %53 = arith.addf %48, %52 : vector<192x128xf32>
    %c0_34 = arith.constant 0 : index
    %c0_35 = arith.constant 0 : index
    %54 = vector.load %arg5[%c0_34, %c0_35] : memref<1x128xf32, #tpu.memory_space<vmem>>, vector<1x128xf32>
    %55 = vector.broadcast %54 : vector<1x128xf32> to vector<192x128xf32>
    %56 = arith.addf %53, %55 : vector<192x128xf32>
    %c0_36 = arith.constant 0 : index
    %c0_37 = arith.constant 0 : index
    %c0_38 = arith.constant 0 : index
    %57 = vector.load %arg6[%c0_36, %c0_37, %c0_38] : memref<1x192x128xf32, #tpu.memory_space<vmem>>, vector<1x192x128xf32>
    %58 = vector.shape_cast %57 : vector<1x192x128xf32> to vector<192x128xf32>
    %59 = vector.shape_cast %56 : vector<192x128xf32> to vector<1x192x128xf32>
    tpu.vector_store %arg6[%c0_36, %c0_37, %c0_38], %59 {strides = array<i32>} : memref<1x192x128xf32, #tpu.memory_space<vmem>>, vector<1x192x128xf32>,
    %60 = tpu.iota {dimensions = array<i32: 0>} : vector<192x1xi32>
    %c16_i32 = arith.constant 16 : i32
    %c0_i32 = arith.constant 0 : i32
    %61 = arith.cmpi eq, %c16_i32, %c0_i32 : i32
    %c1_i32 = arith.constant 1 : i32
    %62 = arith.select %61, %c1_i32, %c16_i32 : i32
    %63 = vector.broadcast %62 : i32 to vector<192x1xi32>
    %64 = arith.remsi %60, %63 : vector<192x1xi32>
    %c0_i32_39 = arith.constant 0 : i32
    %65 = vector.broadcast %c0_i32_39 : i32 to vector<192x1xi32>
    %66 = arith.cmpi ne, %64, %65 : vector<192x1xi32>
    %c0_i32_40 = arith.constant 0 : i32
    %67 = vector.broadcast %c0_i32_40 : i32 to vector<192x1xi32>
    %68 = arith.cmpi slt, %64, %67 : vector<192x1xi32>
    %c0_i32_41 = arith.constant 0 : i32
    %69 = arith.cmpi slt, %62, %c0_i32_41 : i32
    %70 = vector.broadcast %69 : i1 to vector<192x1xi1>
    %71 = vector.broadcast %70 : vector<192x1xi1> to vector<192x1xi1>
    %72 = arith.xori %68, %71 : vector<192x1xi1>
    %73 = arith.andi %72, %66 : vector<192x1xi1>
    %74 = vector.broadcast %62 : i32 to vector<192x1xi32>
    %75 = arith.addi %64, %74 : vector<192x1xi32>
    %76 = arith.select %73, %75, %64 : vector<192x1xi1>, vector<192x1xi32>
    %c192_i32 = arith.constant 192 : i32
    %77 = vector.broadcast %c192_i32 : i32 to vector<192x1xi32>
    %78 = arith.cmpi slt, %60, %77 : vector<192x1xi32>
    %c12_i32 = arith.constant 12 : i32
    %79 = vector.broadcast %c12_i32 : i32 to vector<192x1xi32>
    %80 = arith.cmpi slt, %76, %79 : vector<192x1xi32>
    %81 = arith.andi %78, %80 : vector<192x1xi1>
    %82 = arith.extui %81 : vector<192x1xi1> to vector<192x1xi32>
    %83 = arith.sitofp %82 : vector<192x1xi32> to vector<192x1xf32>
    %84 = vector.broadcast %83 : vector<192x1xf32> to vector<192x128xf32>
    %85 = arith.mulf %56, %84 : vector<192x128xf32>
    %cst_42 = arith.constant dense<0.000000e+00> : vector<128xf32>
    %86 = vector.multi_reduction <add>, %85, %cst_42 [0] : vector<192x128xf32> to vector<128xf32>
    %87 = vector.shape_cast %86 : vector<128xf32> to vector<1x128xf32>
    %88 = arith.mulf %85, %56 : vector<192x128xf32>
    %cst_43 = arith.constant dense<0.000000e+00> : vector<128xf32>
    %89 = vector.multi_reduction <add>, %88, %cst_43 [0] : vector<192x128xf32> to vector<128xf32>
    %90 = vector.shape_cast %89 : vector<128xf32> to vector<1x128xf32>
    %91 = tpu.iota {dimensions = array<i32: 0>} : vector<8x128xi32>
    %c0_i32_44 = arith.constant 0 : i32
    %92 = vector.broadcast %c0_i32_44 : i32 to vector<8x128xi32>
    %93 = arith.cmpi eq, %91, %92 : vector<8x128xi32>
    %c1_i32_45 = arith.constant 1 : i32
    %94 = vector.broadcast %c1_i32_45 : i32 to vector<8x128xi32>
    %95 = arith.cmpi eq, %91, %94 : vector<8x128xi32>
    %cst_46 = arith.constant 0.000000e+00 : f32
    %96 = vector.shape_cast %90 : vector<1x128xf32> to vector<1x128xf32>
    %97 = vector.broadcast %96 : vector<1x128xf32> to vector<8x128xf32>
    %98 = vector.broadcast %cst_46 : f32 to vector<8x128xf32>
    %99 = arith.select %95, %97, %98 : vector<8x128xi1>, vector<8x128xf32>
    %100 = vector.shape_cast %87 : vector<1x128xf32> to vector<1x128xf32>
    %101 = vector.broadcast %100 : vector<1x128xf32> to vector<8x128xf32>
    %102 = arith.select %93, %101, %99 : vector<8x128xi1>, vector<8x128xf32>
    %c0_47 = arith.constant 0 : index
    %c0_48 = arith.constant 0 : index
    %c0_49 = arith.constant 0 : index
    %103 = vector.load %arg7[%c0_47, %c0_48, %c0_49] : memref<1x8x128xf32, #tpu.memory_space<vmem>>, vector<1x8x128xf32>
    %104 = vector.shape_cast %103 : vector<1x8x128xf32> to vector<8x128xf32>
    %105 = vector.shape_cast %102 : vector<8x128xf32> to vector<1x8x128xf32>
    tpu.vector_store %arg7[%c0_47, %c0_48, %c0_49], %105 {strides = array<i32>} : memref<1x8x128xf32, #tpu.memory_space<vmem>>, vector<1x8x128xf32>,
    return
  }
  func.func @transform_0(%arg0: i32) -> (i32, i32, i32) {
    %c0_i32 = arith.constant 0 : i32
    %c0_i32_0 = arith.constant 0 : i32
    %c0_i32_1 = arith.constant 0 : i32
    return %arg0, %c0_i32, %c0_i32_0 : i32, i32, i32
  }
  func.func @transform_1(%arg0: i32) -> (i32, i32) {
    %c0_i32 = arith.constant 0 : i32
    %c0_i32_0 = arith.constant 0 : i32
    %c0_i32_1 = arith.constant 0 : i32
    return %c0_i32, %c0_i32_0 : i32, i32
  }
  func.func @transform_2(%arg0: i32) -> (i32, i32) {
    %c0_i32 = arith.constant 0 : i32
    %c0_i32_0 = arith.constant 0 : i32
    %c0_i32_1 = arith.constant 0 : i32
    return %c0_i32, %c0_i32_0 : i32, i32
  }
  func.func @transform_3(%arg0: i32) -> (i32, i32, i32) {
    %c0_i32 = arith.constant 0 : i32
    %c0_i32_0 = arith.constant 0 : i32
    %c0_i32_1 = arith.constant 0 : i32
    %c0_i32_2 = arith.constant 0 : i32
    return %c0_i32, %c0_i32_0, %c0_i32_1 : i32, i32, i32
  }
  func.func @transform_4(%arg0: i32) -> (i32, i32) {
    %c0_i32 = arith.constant 0 : i32
    %c0_i32_0 = arith.constant 0 : i32
    %c0_i32_1 = arith.constant 0 : i32
    return %c0_i32, %c0_i32_0 : i32, i32
  }
  func.func @transform_5(%arg0: i32) -> (i32, i32, i32) {
    %c0_i32 = arith.constant 0 : i32
    %c0_i32_0 = arith.constant 0 : i32
    %c0_i32_1 = arith.constant 0 : i32
    return %arg0, %c0_i32, %c0_i32_0 : i32, i32, i32
  }
  func.func @transform_6(%arg0: i32) -> (i32, i32, i32) {
    %c0_i32 = arith.constant 0 : i32
    %c0_i32_0 = arith.constant 0 : i32
    %c0_i32_1 = arith.constant 0 : i32
    return %arg0, %c0_i32, %c0_i32_0 : i32, i32, i32
  }
}

module attributes {stable_mosaic.version = 11 : i64} {
  func.func @_bn_relu_matmul_kernel(%arg0: i32, %arg1: memref<1x192x128xf32, #tpu.memory_space<vmem>>, %arg2: memref<1x128xf32, #tpu.memory_space<vmem>>, %arg3: memref<1x128xf32, #tpu.memory_space<vmem>>, %arg4: memref<128x128xf32, #tpu.memory_space<vmem>>, %arg5: memref<1x128xf32, #tpu.memory_space<vmem>>, %arg6: memref<1x192x128xf32, #tpu.memory_space<vmem>>) attributes {dimension_semantics = [#tpu.dimension_semantics<parallel>], iteration_bounds = array<i64: 2>, scalar_prefetch = 0 : i64, scratch_operands = 0 : i64, tpu.core_type = #tpu.core_type<tc>, window_params = [{transform_indices = @transform_0, window_bounds = array<i64: 1, 192, 128>}, {pipeline_mode = #tpu.pipeline_mode<synchronous>, transform_indices = @transform_1, window_bounds = array<i64: 1, 128>}, {pipeline_mode = #tpu.pipeline_mode<synchronous>, transform_indices = @transform_2, window_bounds = array<i64: 1, 128>}, {pipeline_mode = #tpu.pipeline_mode<synchronous>, transform_indices = @transform_3, window_bounds = array<i64: 128, 128>}, {pipeline_mode = #tpu.pipeline_mode<synchronous>, transform_indices = @transform_4, window_bounds = array<i64: 1, 128>}, {transform_indices = @transform_5, window_bounds = array<i64: 1, 192, 128>}]} {
    %c0 = arith.constant 0 : index
    %c0_0 = arith.constant 0 : index
    %c0_1 = arith.constant 0 : index
    %0 = vector.load %arg1[%c0, %c0_0, %c0_1] : memref<1x192x128xf32, #tpu.memory_space<vmem>>, vector<1x192x128xf32>
    %1 = vector.shape_cast %0 : vector<1x192x128xf32> to vector<192x128xf32>
    %c0_2 = arith.constant 0 : index
    %c0_3 = arith.constant 0 : index
    %2 = vector.load %arg2[%c0_2, %c0_3] : memref<1x128xf32, #tpu.memory_space<vmem>>, vector<1x128xf32>
    %3 = vector.broadcast %2 : vector<1x128xf32> to vector<192x128xf32>
    %4 = arith.mulf %1, %3 : vector<192x128xf32>
    %c0_4 = arith.constant 0 : index
    %c0_5 = arith.constant 0 : index
    %5 = vector.load %arg3[%c0_4, %c0_5] : memref<1x128xf32, #tpu.memory_space<vmem>>, vector<1x128xf32>
    %6 = vector.broadcast %5 : vector<1x128xf32> to vector<192x128xf32>
    %7 = arith.addf %4, %6 : vector<192x128xf32>
    %cst = arith.constant 0.000000e+00 : f32
    %8 = vector.broadcast %cst : f32 to vector<192x128xf32>
    %9 = arith.maximumf %7, %8 : vector<192x128xf32>
    %c0_6 = arith.constant 0 : index
    %c0_7 = arith.constant 0 : index
    %10 = vector.load %arg4[%c0_6, %c0_7] : memref<128x128xf32, #tpu.memory_space<vmem>>, vector<128x128xf32>
    %cst_8 = arith.constant dense<0.000000e+00> : vector<192x128xf32>
    %11 = tpu.matmul %9, %10, %cst_8 {dimension_numbers = #tpu.dot_dimension_numbers<[1], [0], [0], [1], [0, 0, 1, 1], [], []>} : vector<192x128xf32>, vector<128x128xf32>, vector<192x128xf32> -> vector<192x128xf32>
    %c0_9 = arith.constant 0 : index
    %c0_10 = arith.constant 0 : index
    %12 = vector.load %arg5[%c0_9, %c0_10] : memref<1x128xf32, #tpu.memory_space<vmem>>, vector<1x128xf32>
    %13 = vector.broadcast %12 : vector<1x128xf32> to vector<192x128xf32>
    %14 = arith.addf %11, %13 : vector<192x128xf32>
    %c0_11 = arith.constant 0 : index
    %c0_12 = arith.constant 0 : index
    %c0_13 = arith.constant 0 : index
    %15 = vector.load %arg6[%c0_11, %c0_12, %c0_13] : memref<1x192x128xf32, #tpu.memory_space<vmem>>, vector<1x192x128xf32>
    %16 = vector.shape_cast %15 : vector<1x192x128xf32> to vector<192x128xf32>
    %17 = vector.shape_cast %14 : vector<192x128xf32> to vector<1x192x128xf32>
    tpu.vector_store %arg6[%c0_11, %c0_12, %c0_13], %17 {strides = array<i32>} : memref<1x192x128xf32, #tpu.memory_space<vmem>>, vector<1x192x128xf32>,
    return
  }
  func.func @transform_0(%arg0: i32) -> (i32, i32, i32) {
    %c0_i32 = arith.constant 0 : i32
    %c0_i32_0 = arith.constant 0 : i32
    %c0_i32_1 = arith.constant 0 : i32
    return %arg0, %c0_i32, %c0_i32_0 : i32, i32, i32
  }
  func.func @transform_1(%arg0: i32) -> (i32, i32) {
    %c0_i32 = arith.constant 0 : i32
    %c0_i32_0 = arith.constant 0 : i32
    %c0_i32_1 = arith.constant 0 : i32
    return %c0_i32, %c0_i32_0 : i32, i32
  }
  func.func @transform_2(%arg0: i32) -> (i32, i32) {
    %c0_i32 = arith.constant 0 : i32
    %c0_i32_0 = arith.constant 0 : i32
    %c0_i32_1 = arith.constant 0 : i32
    return %c0_i32, %c0_i32_0 : i32, i32
  }
  func.func @transform_3(%arg0: i32) -> (i32, i32) {
    %c0_i32 = arith.constant 0 : i32
    %c0_i32_0 = arith.constant 0 : i32
    %c0_i32_1 = arith.constant 0 : i32
    return %c0_i32, %c0_i32_0 : i32, i32
  }
  func.func @transform_4(%arg0: i32) -> (i32, i32) {
    %c0_i32 = arith.constant 0 : i32
    %c0_i32_0 = arith.constant 0 : i32
    %c0_i32_1 = arith.constant 0 : i32
    return %c0_i32, %c0_i32_0 : i32, i32
  }
  func.func @transform_5(%arg0: i32) -> (i32, i32, i32) {
    %c0_i32 = arith.constant 0 : i32
    %c0_i32_0 = arith.constant 0 : i32
    %c0_i32_1 = arith.constant 0 : i32
    return %arg0, %c0_i32, %c0_i32_0 : i32, i32, i32
  }
}

</mosaic_0001>

<bundles_post_ra>
// kernel: tile.8
= control target key start
LH: loop header
LB: loop body
LE: loop exit
PB: predicated region body
PF: predicated region fallthrough
CT: control target
= control target key end

     0   :  { %s22_s0 = inlined_call_operand.vmem [shape: f32[4], index: 0, kind: input, shape index: {}]   ;;  %s23_s1 = inlined_call_operand.vmem [shape: f32[4,4], index: 1, kind: output, shape index: {}]  }
   0x1   :  { %v4_v0 = vld [vmem:[%s22_s0] ss:$0 sm:$0xff] }
   0x2   :  { %5 = vst [vmem:[%s23_s1] sm:$0xf] %v4_v0 }

// kernel: tile.9
= control target key start
LH: loop header
LB: loop body
LE: loop exit
PB: predicated region body
PF: predicated region fallthrough
CT: control target
= control target key end

     0   :  { %s37_s8 = smov 4   ;;  %s38_s9 = smov 8   ;;  %vm7_vm0 = vcmask 31744   ;;  %vm13_vm1 = vcmask 130144   ;;  %vm19_vm2 = vcmask 97344   ;;  %vm25_vm3 = vcmask 64544   ;;  %s55_s0 = inlined_call_operand.vmem [shape: f32[4,4], index: 0, kind: input, shape index: {}]   ;;  %s56_s1 = inlined_call_operand.vmem [shape: f32[16], index: 1, kind: output, shape index: {}]  }
   0x1   :  { %v4_v0 = vld [vmem:[%s55_s0] sm:$0xf]  ;;  %s36_s0 = smov 12  }
   0x2   :  { %5 = vst [vmem:[#allocation1] sm:$0xf] %v4_v0 }
   0x9   :  { %v10_v1 = vld [vmem:[#allocation1 + $0x3] sm:$0x1]   ;;  %v22_v2 = vld [vmem:[#allocation1 + $0x1] sm:$0x1]   ;;  %v16_v3 = vld [vmem:[#allocation1 + $0x2] sm:$0x1]  }
   0xa   :  { %11 = vrot.lane.b32.xlu0 %v10_v1, %s36_s0  ;;  %23 = vrot.lane.b32.xlu1 %v22_v2, %s37_s8  ;;  %v6_v4 = vld [vmem:[#allocation1] sm:$0x1]  }
   0xb   :  { %8 = vst.msk [vmem:[#allocation0] sm:$0x1] %vm7_vm0, %v6_v4  }
  0x12   :  { %17 = vrot.lane.b32.xlu0 %v16_v3, %s38_s9 }
  0x7c   :  { %v12_v5 = vpop.permute.xlu0 %11   ;;  %v24_v6 = vpop.permute.xlu1 %23  }
  0x7d   :  { %14 = vst.msk [vmem:[#allocation0] sm:$0x1] %vm13_vm1, %v12_v5  }
  0x84   :  { %v18_v7 = vpop.permute.xlu0 %17  }
  0x85   :  { %20 = vst.msk [vmem:[#allocation0] sm:$0x1] %vm19_vm2, %v18_v7  }
  0x86   :  { %26 = vst.msk [vmem:[#allocation0] sm:$0x1] %vm25_vm3, %v24_v6  }
  0x8d   :  { %v29_v8 = vld [vmem:[#allocation0] sm:$0x1] }
  0x8e   :  { %32 = vst [vmem:[%s56_s1] sm:$0x1] %v29_v8 }

// kernel: decoder_block.5
= control target key start
LH: loop header
LB: loop body
LE: loop exit
PB: predicated region body
PF: predicated region fallthrough
CT: control target
= control target key end

     0   :  { %s624_s18 = smov 0   ;;  %s835_s0 = inlined_call_operand.vmem [shape: f32[2,192,128], index: 0, kind: input, shape index: {}]   ;;  %s836_s1 = inlined_call_operand.vmem [shape: f32[1,128], index: 1, kind: input, shape index: {}]   ;;  %s837_s2 = inlined_call_operand.vmem [shape: f32[1,128], index: 2, kind: input, shape index: {}]   ;;  %s838_s3 = inlined_call_operand.vmem [shape: f32[128,128], index: 3, kind: input, shape index: {}]   ;;  %s839_s4 = inlined_call_operand.vmem [shape: f32[1,128], index: 4, kind: input, shape index: {}]   ;;  %s840_s5 = inlined_call_operand.vmem [shape: f32[2,192,128], index: 5, kind: output, shape index: {}]  }
   0x1 LB: > { %s517_s19 = sadd.s32 4294967295, %s592_s18   ;;  %p521_p0 = scmp.ge.s32.totalorder %s592_s18, 1  ;;  %s592_s18 = sphi %s624_s18, %s15_s18  }
   0x2   : > { %p187_p1 = scmp.lt.s32.totalorder %s592_s18, 3 }
   0x4   : > { %p188_p2 = pnand %p521_p0, %p187_p1 }
   0x5   : > { %p215_p3 = scmp.lt.s32.totalorder (!%p188_p2), %s517_s19, 1 }
   0x6   : > { %191 = sbr.rel (%p188_p2) target bundleno = 219 (0xdb), region = 40 }
   0xb   : > { %v344_v0 = vld [vmem:[%s838_s3 + $0x78] sm:$0xff]  ;;  %v343_v1 = vld [vmem:[%s838_s3 + $0x70] sm:$0xff]  ;;  %v342_v2 = vld [vmem:[%s838_s3 + $0x68] sm:$0xff]  ;;  %s842_s19 = smov (!%p215_p3, %s517_s19), 1 }
   0xc   : > { %527 = vmatpush.msra.mxu2 %v344_v0  ;;  %528 = vmatpush.msra.mxu3 %v344_v0  ;;  %v341_v3 = vld [vmem:[%s838_s3 + $0x60] sm:$0xff]  ;;  %v340_v4 = vld [vmem:[%s838_s3 + $0x58] sm:$0xff]  ;;  %v339_v5 = vld [vmem:[%s838_s3 + $0x50] sm:$0xff]  ;;  %s574_s9 = smul.u32 192, %s842_s19 }
   0xd   : > { %349 = vmatpush.msra.mxu0 %v344_v0  ;;  %526 = vmatpush.msra.mxu1 %v344_v0  ;;  %v338_v6 = vld [vmem:[%s838_s3 + $0x48] sm:$0xff]  ;;  %v337_v7 = vld [vmem:[%s838_s3 + $0x40] sm:$0xff]  ;;  %v336_v8 = vld [vmem:[%s838_s3 + $0x38] sm:$0xff] }
   0xe   : > { %530 = vmatpush.msra.mxu2 %v343_v1  ;;  %531 = vmatpush.msra.mxu3 %v343_v1  ;;  %s667_s16 = scalar_lea.vmem %s835_s0, %s574_s9  ;;  %v335_v9 = vld [vmem:[%s838_s3 + $0x30] sm:$0xff]  ;;  %v675_v10 = vld [vmem:[%s836_s1] ss:$0 sm:$0xff]  ;;  %v334_v13 = vld [vmem:[%s838_s3 + $0x28] sm:$0xff]  ;;  %s782_s17 = scalar_lea.vmem %s840_s5, %s574_s9 }
   0xf   : > { %350 = vmatpush.msra.mxu0 %v343_v1  ;;  %529 = vmatpush.msra.mxu1 %v343_v1  ;;  %v237_v11 = vld [vmem:[%s667_s16 + $0x60] sm:$0xff]  ;;  %v243_v12 = vld [vmem:[%s667_s16 + $0x90] sm:$0xff]  ;;  %v332_v20 = vld [vmem:[%s838_s3 + $0x18] sm:$0xff] }
  0x10   : > { %533 = vmatpush.msra.mxu2 %v342_v2  ;;  %534 = vmatpush.msra.mxu3 %v342_v2  ;;  %v225_v14 = vld [vmem:[%s667_s16] sm:$0xff]  ;;  %v231_v15 = vld [vmem:[%s667_s16 + $0x30] sm:$0xff]  ;;  %v265_v17 = vmul.f32 %v675_v10, %v237_v11  ;;  %v271_v19 = vmul.f32 %v675_v10, %v243_v12  ;;  %v238_v26 = vld [vmem:[%s667_s16 + $0x68] sm:$0xff] }
  0x11   : > { %351 = vmatpush.msra.mxu0 %v342_v2  ;;  %532 = vmatpush.msra.mxu1 %v342_v2  ;;  %v333_v16 = vld [vmem:[%s838_s3 + $0x20] sm:$0xff]  ;;  %v253_v21 = vmul.f32 %v675_v10, %v225_v14  ;;  %v259_v22 = vmul.f32 %v675_v10, %v231_v15  ;;  %v331_v23 = vld [vmem:[%s838_s3 + $0x10] sm:$0xff]  ;;  %v244_v27 = vld [vmem:[%s667_s16 + $0x98] sm:$0xff]  ;;  %v266_v36 = vmul.f32 %v675_v10, %v238_v26 }
  0x12   : > { %536 = vmatpush.msra.mxu2 %v341_v3  ;;  %537 = vmatpush.msra.mxu3 %v341_v3  ;;  %v691_v18 = vld [vmem:[%s837_s2] ss:$0 sm:$0xff]  ;;  %v330_v28 = vld [vmem:[%s838_s3 + $0x8] sm:$0xff]  ;;  %v232_v32 = vld [vmem:[%s667_s16 + $0x38] sm:$0xff]  ;;  %v272_v37 = vmul.f32 %v675_v10, %v244_v27 }
  0x13   : > { %352 = vmatpush.msra.mxu0 %v341_v3  ;;  %535 = vmatpush.msra.mxu1 %v341_v3  ;;  %v293_v24 = vadd.f32 %v691_v18, %v265_v17  ;;  %v299_v25 = vadd.f32 %v691_v18, %v271_v19  ;;  %v281_v29 = vadd.f32 %v691_v18, %v253_v21  ;;  %v226_v31 = vld [vmem:[%s667_s16 + $0x8] sm:$0xff]  ;;  %v329_v33 = vld [vmem:[%s838_s3] sm:$0xff]  ;;  %v239_v44 = vld [vmem:[%s667_s16 + $0x70] sm:$0xff] }
  0x14   : > { %539 = vmatpush.msra.mxu2 %v340_v4  ;;  %540 = vmatpush.msra.mxu3 %v340_v4  ;;  %v287_v30 = vadd.f32 %v691_v18, %v259_v22  ;;  %v254_v40 = vmul.f32 %v675_v10, %v226_v31  ;;  %v260_v41 = vmul.f32 %v675_v10, %v232_v32  ;;  %v245_v45 = vld [vmem:[%s667_s16 + $0xa0] sm:$0xff]  ;;  %v227_v48 = vld [vmem:[%s667_s16 + $0x10] sm:$0xff]  ;;  %v240_v60 = vld [vmem:[%s667_s16 + $0x78] sm:$0xff] }
  0x15   : > { %353 = vmatpush.msra.mxu0 %v340_v4  ;;  %538 = vmatpush.msra.mxu1 %v340_v4  ;;  %v317_v34 = vmax.f32 %v293_v24, 0.0  ;;  %v323_v35 = vmax.f32 %v299_v25, 0.0  ;;  %v305_v38 = vmax.f32 %v281_v29, 0.0  ;;  %v294_v42 = vadd.f32 %v691_v18, %v266_v36  ;;  %v233_v49 = vld [vmem:[%s667_s16 + $0x40] sm:$0xff]  ;;  %v246_v61 = vld [vmem:[%s667_s16 + $0xa8] sm:$0xff]  ;;  %v228_v0 = vld [vmem:[%s667_s16 + $0x18] sm:$0xff] }
  0x16   : > { %542 = vmatpush.msra.mxu2 %v339_v5  ;;  %543 = vmatpush.msra.mxu3 %v339_v5  ;;  %v311_v39 = vmax.f32 %v287_v30, 0.0  ;;  %v300_v43 = vadd.f32 %v691_v18, %v272_v37  ;;  %v282_v46 = vadd.f32 %v691_v18, %v254_v40  ;;  %v288_v47 = vadd.f32 %v691_v18, %v260_v41  ;;  %v234_v1 = vld [vmem:[%s667_s16 + $0x48] sm:$0xff]  ;;  %v247_v14 = vld [vmem:[%s667_s16 + $0xb0] sm:$0xff]  ;;  %v229_v17 = vld [vmem:[%s667_s16 + $0x20] sm:$0xff] }
  0x17   : > { %354 = vmatpush.msra.mxu0 %v339_v5  ;;  %541 = vmatpush.msra.mxu1 %v339_v5  ;;  %v318_v50 = vmax.f32 %v294_v42, 0.0  ;;  %v267_v52 = vmul.f32 %v675_v10, %v239_v44  ;;  %v273_v53 = vmul.f32 %v675_v10, %v245_v45  ;;  %v255_v56 = vmul.f32 %v675_v10, %v227_v48  ;;  %v235_v19 = vld [vmem:[%s667_s16 + $0x50] sm:$0xff]  ;;  %v242_v30 = vld [vmem:[%s667_s16 + $0x88] sm:$0xff]  ;;  %v248_v31 = vld [vmem:[%s667_s16 + $0xb8] sm:$0xff] }
  0x18   : > { %545 = vmatpush.msra.mxu2 %v338_v6  ;;  %546 = vmatpush.msra.mxu3 %v338_v6  ;;  %v324_v51 = vmax.f32 %v300_v43, 0.0  ;;  %v306_v54 = vmax.f32 %v282_v46, 0.0  ;;  %v312_v55 = vmax.f32 %v288_v47, 0.0  ;;  %v261_v57 = vmul.f32 %v675_v10, %v233_v49 }
  0x19   : > { %355 = vmatpush.msra.mxu0 %v338_v6  ;;  %544 = vmatpush.msra.mxu1 %v338_v6  ;;  %v295_v58 = vadd.f32 %v691_v18, %v267_v52  ;;  %v301_v59 = vadd.f32 %v691_v18, %v273_v53  ;;  %v283_v62 = vadd.f32 %v691_v18, %v255_v56 }
  0x1a   : > { %548 = vmatpush.msra.mxu2 %v337_v7  ;;  %549 = vmatpush.msra.mxu3 %v337_v7  ;;  %v289_v63 = vadd.f32 %v691_v18, %v261_v57  ;;  %v268_v4 = vmul.f32 %v675_v10, %v240_v60  ;;  %v274_v5 = vmul.f32 %v675_v10, %v246_v61 }
  0x1b   : > { %356 = vmatpush.msra.mxu0 %v337_v7  ;;  %547 = vmatpush.msra.mxu1 %v337_v7  ;;  %v319_v2 = vmax.f32 %v295_v58, 0.0  ;;  %v325_v3 = vmax.f32 %v301_v59, 0.0  ;;  %v307_v6 = vmax.f32 %v283_v62, 0.0  ;;  %v257_v26 = vmul.f32 %v675_v10, %v229_v17 }
  0x1c   : > { %551 = vmatpush.msra.mxu2 %v336_v8  ;;  %552 = vmatpush.msra.mxu3 %v336_v8  ;;  %v313_v7 = vmax.f32 %v289_v63, 0.0  ;;  %v296_v11 = vadd.f32 %v691_v18, %v268_v4  ;;  %v302_v12 = vadd.f32 %v691_v18, %v274_v5  ;;  %v263_v27 = vmul.f32 %v675_v10, %v235_v19 }
  0x1d   : > { %357 = vmatpush.msra.mxu0 %v336_v8  ;;  %550 = vmatpush.msra.mxu1 %v336_v8  ;;  %v256_v8 = vmul.f32 %v675_v10, %v228_v0  ;;  %v285_v32 = vadd.f32 %v691_v18, %v257_v26 }
  0x1e   : > { %554 = vmatpush.msra.mxu2 %v335_v9  ;;  %555 = vmatpush.msra.mxu3 %v335_v9  ;;  %v326_v21 = vmax.f32 %v302_v12, 0.0 }
  0x1f   : > { %358 = vmatpush.msra.mxu0 %v335_v9  ;;  %553 = vmatpush.msra.mxu1 %v335_v9  ;;  %v262_v9 = vmul.f32 %v675_v10, %v234_v1  ;;  %v284_v15 = vadd.f32 %v691_v18, %v256_v8  ;;  %v309_v40 = vmax.f32 %v285_v32, 0.0 }
  0x20   : > { %557 = vmatpush.msra.mxu2 %v334_v13  ;;  %558 = vmatpush.msra.mxu3 %v334_v13 }
  0x21   : > { %359 = vmatpush.msra.mxu0 %v334_v13  ;;  %556 = vmatpush.msra.mxu1 %v334_v13  ;;  %v241_v13 = vld [vmem:[%s667_s16 + $0x80] sm:$0xff]  ;;  %v308_v24 = vmax.f32 %v284_v15, 0.0 }
  0x22   : > { %560 = vmatpush.msra.mxu2 %v333_v16  ;;  %561 = vmatpush.msra.mxu3 %v333_v16  ;;  %v269_v22 = vmul.f32 %v675_v10, %v241_v13 }
  0x23   : > { %360 = vmatpush.msra.mxu0 %v333_v16  ;;  %559 = vmatpush.msra.mxu1 %v333_v16  ;;  %v290_v16 = vadd.f32 %v691_v18, %v262_v9 }
  0x24   : > { %563 = vmatpush.msra.mxu2 %v332_v20  ;;  %564 = vmatpush.msra.mxu3 %v332_v20 }
  0x25   : > { %361 = vmatpush.msra.mxu0 %v332_v20  ;;  %562 = vmatpush.msra.mxu1 %v332_v20  ;;  %v320_v20 = vmax.f32 %v296_v11, 0.0  ;;  %v314_v25 = vmax.f32 %v290_v16, 0.0 }
  0x26   : > { %566 = vmatpush.msra.mxu2 %v331_v23  ;;  %567 = vmatpush.msra.mxu3 %v331_v23 }
  0x27   : > { %362 = vmatpush.msra.mxu0 %v331_v23  ;;  %565 = vmatpush.msra.mxu1 %v331_v23  ;;  %v275_v23 = vmul.f32 %v675_v10, %v247_v14 }
  0x28   : > { %569 = vmatpush.msra.mxu2 %v330_v28  ;;  %570 = vmatpush.msra.mxu3 %v330_v28 }
  0x29   : > { %363 = vmatpush.msra.mxu0 %v330_v28  ;;  %568 = vmatpush.msra.mxu1 %v330_v28  ;;  %v297_v28 = vadd.f32 %v691_v18, %v269_v22  ;;  %v303_v29 = vadd.f32 %v691_v18, %v275_v23 }
  0x2a   : > { %572 = vmatpush.msra.mxu2 %v329_v33  ;;  %573 = vmatpush.msra.mxu3 %v329_v33 }
  0x2b   : > { %401 = vmatmul.f32.vlgmr.msra.gmra.mxu2 %v317_v34  ;;  %419 = vmatmul.f32.vlgmr.msra.gmra.mxu3 %v323_v35  ;;  %v230_v34 = vld [vmem:[%s667_s16 + $0x28] sm:$0xff]  ;;  %v236_v35 = vld [vmem:[%s667_s16 + $0x58] sm:$0xff]  ;;  %v321_v36 = vmax.f32 %v297_v28, 0.0  ;;  %v327_v37 = vmax.f32 %v303_v29, 0.0 }
  0x2c   : > { %364 = vmatpush.msra.mxu0 %v329_v33  ;;  %571 = vmatpush.msra.mxu1 %v329_v33  ;;  %v291_v33 = vadd.f32 %v691_v18, %v263_v27  ;;  %v258_v42 = vmul.f32 %v675_v10, %v230_v34  ;;  %v264_v43 = vmul.f32 %v675_v10, %v236_v35 }
  0x2d   : > { %365 = vmatmul.f32.vlgmr.msra.gmra.mxu0 %v305_v38  ;;  %383 = vmatmul.f32.vlgmr.msra.gmra.mxu1 %v311_v39  ;;  %v270_v38 = vmul.f32 %v675_v10, %v242_v30  ;;  %v276_v39 = vmul.f32 %v675_v10, %v248_v31  ;;  %v775_v10 = vld [vmem:[%s839_s4] ss:$0 sm:$0xff] }
  0x2e   : > { %v315_v41 = vmax.f32 %v291_v33, 0.0  ;;  %v286_v46 = vadd.f32 %v691_v18, %v258_v42  ;;  %v292_v47 = vadd.f32 %v691_v18, %v264_v43 }
  0x2f   : > { %v298_v44 = vadd.f32 %v691_v18, %v270_v38  ;;  %v304_v45 = vadd.f32 %v691_v18, %v276_v39 }
  0x31   : > { %v322_v48 = vmax.f32 %v298_v44, 0.0  ;;  %v328_v49 = vmax.f32 %v304_v45, 0.0 }
  0x33   : > { %404 = vmatmul.f32.gmra.mxu2 %v318_v50  ;;  %422 = vmatmul.f32.gmra.mxu3 %v324_v51  ;;  %v310_v50 = vmax.f32 %v286_v46, 0.0  ;;  %v316_v51 = vmax.f32 %v292_v47, 0.0 }
  0x35   : > { %368 = vmatmul.f32.gmra.mxu0 %v306_v54  ;;  %386 = vmatmul.f32.gmra.mxu1 %v312_v55 }
  0x3b   : > { %407 = vmatmul.f32.gmra.mxu2 %v319_v2  ;;  %425 = vmatmul.f32.gmra.mxu3 %v325_v3 }
  0x3d   : > { %371 = vmatmul.f32.gmra.mxu0 %v307_v6  ;;  %389 = vmatmul.f32.gmra.mxu1 %v313_v7 }
  0x43   : > { %410 = vmatmul.f32.gmra.mxu2 %v320_v20  ;;  %428 = vmatmul.f32.gmra.mxu3 %v326_v21 }
  0x45   : > { %374 = vmatmul.f32.gmra.mxu0 %v308_v24  ;;  %392 = vmatmul.f32.gmra.mxu1 %v314_v25 }
  0x4b   : > { %413 = vmatmul.f32.gmra.mxu2 %v321_v36  ;;  %431 = vmatmul.f32.gmra.mxu3 %v327_v37 }
  0x4d   : > { %377 = vmatmul.f32.gmra.mxu0 %v309_v40  ;;  %395 = vmatmul.f32.gmra.mxu1 %v315_v41 }
  0x53   : > { %416 = vmatmul.f32.gmra.mxu2 %v322_v48  ;;  %434 = vmatmul.f32.gmra.mxu3 %v328_v49 }
  0x55   : > { %380 = vmatmul.f32.gmra.mxu0 %v310_v50  ;;  %398 = vmatmul.f32.gmra.mxu1 %v316_v51 }
  0xaa   : > { %v366_v18 = vpop.f32.mrf.mxu0  ;;  %v384_v52 = vpop.f32.mrf.mxu1 }
  0xab   : > { %v367_v53 = vadd.f32 %v775_v10, %v366_v18  ;;  %v385_v54 = vadd.f32 %v775_v10, %v384_v52 }
  0xad   : > { %438 = vst [vmem:[%s782_s17] sm:$0xff] %v367_v53 }
  0xae   : > { %444 = vst [vmem:[%s782_s17 + $0x30] sm:$0xff] %v385_v54  ;;  %v402_v55 = vpop.f32.mrf.mxu2  ;;  %v420_v56 = vpop.f32.mrf.mxu3 }
  0xaf   : > { %v403_v57 = vadd.f32 %v775_v10, %v402_v55  ;;  %v421_v58 = vadd.f32 %v775_v10, %v420_v56 }
  0xb1   : > { %450 = vst [vmem:[%s782_s17 + $0x60] sm:$0xff] %v403_v57 }
  0xb2   : > { %456 = vst [vmem:[%s782_s17 + $0x90] sm:$0xff] %v421_v58  ;;  %v369_v59 = vpop.f32.mrf.mxu0  ;;  %v387_v60 = vpop.f32.mrf.mxu1 }
  0xb3   : > { %v370_v61 = vadd.f32 %v775_v10, %v369_v59  ;;  %v388_v62 = vadd.f32 %v775_v10, %v387_v60 }
  0xb5   : > { %439 = vst [vmem:[%s782_s17 + $0x8] sm:$0xff] %v370_v61 }
  0xb6   : > { %445 = vst [vmem:[%s782_s17 + $0x38] sm:$0xff] %v388_v62  ;;  %v405_v63 = vpop.f32.mrf.mxu2  ;;  %v423_v0 = vpop.f32.mrf.mxu3 }
  0xb7   : > { %v406_v1 = vadd.f32 %v775_v10, %v405_v63  ;;  %v424_v2 = vadd.f32 %v775_v10, %v423_v0 }
  0xb9   : > { %451 = vst [vmem:[%s782_s17 + $0x68] sm:$0xff] %v406_v1 }
  0xba   : > { %457 = vst [vmem:[%s782_s17 + $0x98] sm:$0xff] %v424_v2  ;;  %v372_v3 = vpop.f32.mrf.mxu0  ;;  %v390_v4 = vpop.f32.mrf.mxu1 }
  0xbb   : > { %v373_v5 = vadd.f32 %v775_v10, %v372_v3  ;;  %v391_v6 = vadd.f32 %v775_v10, %v390_v4 }
  0xbd   : > { %440 = vst [vmem:[%s782_s17 + $0x10] sm:$0xff] %v373_v5 }
  0xbe   : > { %446 = vst [vmem:[%s782_s17 + $0x40] sm:$0xff] %v391_v6  ;;  %v408_v7 = vpop.f32.mrf.mxu2  ;;  %v426_v8 = vpop.f32.mrf.mxu3 }
  0xbf   : > { %v409_v9 = vadd.f32 %v775_v10, %v408_v7  ;;  %v427_v11 = vadd.f32 %v775_v10, %v426_v8 }
  0xc1   : > { %452 = vst [vmem:[%s782_s17 + $0x70] sm:$0xff] %v409_v9 }
  0xc2   : > { %458 = vst [vmem:[%s782_s17 + $0xa0] sm:$0xff] %v427_v11  ;;  %v375_v12 = vpop.f32.mrf.mxu0  ;;  %v393_v13 = vpop.f32.mrf.mxu1 }
  0xc3   : > { %v376_v14 = vadd.f32 %v775_v10, %v375_v12  ;;  %v394_v15 = vadd.f32 %v775_v10, %v393_v13 }
  0xc5   : > { %441 = vst [vmem:[%s782_s17 + $0x18] sm:$0xff] %v376_v14 }
  0xc6   : > { %447 = vst [vmem:[%s782_s17 + $0x48] sm:$0xff] %v394_v15  ;;  %v411_v16 = vpop.f32.mrf.mxu2  ;;  %v429_v17 = vpop.f32.mrf.mxu3 }
  0xc7   : > { %v412_v19 = vadd.f32 %v775_v10, %v411_v16  ;;  %v430_v20 = vadd.f32 %v775_v10, %v429_v17 }
  0xc9   : > { %453 = vst [vmem:[%s782_s17 + $0x78] sm:$0xff] %v412_v19 }
  0xca   : > { %459 = vst [vmem:[%s782_s17 + $0xa8] sm:$0xff] %v430_v20  ;;  %v378_v21 = vpop.f32.mrf.mxu0  ;;  %v396_v22 = vpop.f32.mrf.mxu1 }
  0xcb   : > { %v379_v23 = vadd.f32 %v775_v10, %v378_v21  ;;  %v397_v24 = vadd.f32 %v775_v10, %v396_v22 }
  0xcd   : > { %442 = vst [vmem:[%s782_s17 + $0x20] sm:$0xff] %v379_v23 }
  0xce   : > { %448 = vst [vmem:[%s782_s17 + $0x50] sm:$0xff] %v397_v24  ;;  %v414_v25 = vpop.f32.mrf.mxu2  ;;  %v432_v26 = vpop.f32.mrf.mxu3 }
  0xcf   : > { %v415_v27 = vadd.f32 %v775_v10, %v414_v25  ;;  %v433_v28 = vadd.f32 %v775_v10, %v432_v26 }
  0xd1   : > { %454 = vst [vmem:[%s782_s17 + $0x80] sm:$0xff] %v415_v27 }
  0xd2   : > { %460 = vst [vmem:[%s782_s17 + $0xb0] sm:$0xff] %v433_v28  ;;  %v381_v29 = vpop.f32.mrf.mxu0  ;;  %v399_v30 = vpop.f32.mrf.mxu1 }
  0xd3   : > { %v382_v31 = vadd.f32 %v775_v10, %v381_v29  ;;  %v400_v32 = vadd.f32 %v775_v10, %v399_v30 }
  0xd5   : > { %443 = vst [vmem:[%s782_s17 + $0x28] sm:$0xff] %v382_v31 }
  0xd6   : > { %449 = vst [vmem:[%s782_s17 + $0x58] sm:$0xff] %v400_v32  ;;  %v417_v33 = vpop.f32.mrf.mxu2  ;;  %v435_v34 = vpop.f32.mrf.mxu3 }
  0xd7   : > { %v418_v35 = vadd.f32 %v775_v10, %v417_v33  ;;  %v436_v36 = vadd.f32 %v775_v10, %v435_v34 }
  0xd9   : > { %455 = vst [vmem:[%s782_s17 + $0x88] sm:$0xff] %v418_v35 }
  0xda   : > { %461 = vst [vmem:[%s782_s17 + $0xb8] sm:$0xff] %v436_v36 }
  0xdb PF: > { %s15_s18 = sadd.s32 1, %s592_s18  }
  0xdc   : > { %p12_p4 = scmp.ge.s32.totalorder %s15_s18, 4  }
  0xde   :  { %14 = sbr.rel (!%p12_p4) target bundleno = 1 (0x1), region = 70 }

// kernel: decoder_block.3
= control target key start
LH: loop header
LB: loop body
LE: loop exit
PB: predicated region body
PF: predicated region fallthrough
CT: control target
= control target key end

     0   :  { %s2843_s15 = smov 0   ;;  %s4221_s0 = inlined_call_operand.vmem [shape: f32[2,272,128], index: 0, kind: input, shape index: {}]   ;;  %s4222_s1 = inlined_call_operand.vmem [shape: f32[9,128,128], index: 1, kind: input, shape index: {}]   ;;  %s4223_s2 = inlined_call_operand.vmem [shape: f32[1,128], index: 2, kind: input, shape index: {}]   ;;  %s4224_s3 = inlined_call_operand.vmem [shape: f32[2,232,128], index: 3, kind: output, shape index: {0}]   ;;  %s4225_s4 = inlined_call_operand.vmem [shape: f32[2,8,128], index: 4, kind: output, shape index: {1}]  }
   0x1 LB: > { %s2572_s16 = sadd.s32 4294967295, %s2815_s15   ;;  %p2576_p0 = scmp.ge.s32.totalorder %s2815_s15, 1  ;;  %s2815_s15 = sphi %s2843_s15, %s15_s15  }
   0x2   : > { %p165_p1 = scmp.lt.s32.totalorder %s2815_s15, 3 }
   0x4   : > { %p166_p2 = pnand %p2576_p0, %p165_p1 }
   0x6   : > { %169 = sbr.rel (%p166_p2) target bundleno = 724 (0x2d4), region = 32 }
   0xb   : > { %v2595_v0 = vld [vmem:[%s4222_s1 + $0xf8] sm:$0xff]  ;;  %v2594_v1 = vld [vmem:[%s4222_s1 + $0xf0] sm:$0xff]  ;;  %v2593_v2 = vld [vmem:[%s4222_s1 + $0xe8] sm:$0xff]  ;;  %p195_p3 = scmp.lt.s32.totalorder %s2572_s16, 1  ;;  %vm306_vm0 = vcmask 1046528   ;;  %vm620_vm1 = vcmask 1045504  }
   0xc   : > { %2724 = vmatpush.msra.mxu1 %v2595_v0  ;;  %2725 = vmatpush.msra.mxu2 %v2595_v0  ;;  %v2592_v3 = vld [vmem:[%s4222_s1 + $0xe0] sm:$0xff]  ;;  %v2591_v4 = vld [vmem:[%s4222_s1 + $0xd8] sm:$0xff]  ;;  %v2590_v5 = vld [vmem:[%s4222_s1 + $0xd0] sm:$0xff] }
   0xd   : > { %395 = vmatpush.msra.mxu0 %v2595_v0  ;;  %2726 = vmatpush.msra.mxu3 %v2595_v0  ;;  %v2589_v6 = vld [vmem:[%s4222_s1 + $0xc8] sm:$0xff]  ;;  %s4359_s16 = smov (!%p195_p3, %s2572_s16), 1  ;;  %v2588_v7 = vld [vmem:[%s4222_s1 + $0xc0] sm:$0xff]  ;;  %v2587_v8 = vld [vmem:[%s4222_s1 + $0xb8] sm:$0xff] }
   0xe   : > { %2727 = vmatpush.msra.mxu1 %v2594_v1  ;;  %2728 = vmatpush.msra.mxu2 %v2594_v1  ;;  %s2772_s9 = smul.u32 272, %s4359_s16  ;;  %v2586_v9 = vld [vmem:[%s4222_s1 + $0xb0] sm:$0xff]  ;;  %v2585_v10 = vld [vmem:[%s4222_s1 + $0xa8] sm:$0xff]  ;;  %v2584_v11 = vld [vmem:[%s4222_s1 + $0xa0] sm:$0xff] }
   0xf   : > { %396 = vmatpush.msra.mxu0 %v2594_v1  ;;  %2729 = vmatpush.msra.mxu3 %v2594_v1  ;;  %v2583_v14 = vld [vmem:[%s4222_s1 + $0x98] sm:$0xff]  ;;  %v2582_v17 = vld [vmem:[%s4222_s1 + $0x90] sm:$0xff]  ;;  %v2581_v20 = vld [vmem:[%s4222_s1 + $0x88] sm:$0xff]  ;;  %s2773_s6 = smul.u32 232, %s4359_s16 }
  0x10   : > { %2730 = vmatpush.msra.mxu1 %v2593_v2  ;;  %2731 = vmatpush.msra.mxu2 %v2593_v2  ;;  %s2894_s18 = scalar_lea.vmem %s4221_s0, %s2772_s9  ;;  %v2580_v27 = vld [vmem:[%s4222_s1 + $0x80] sm:$0xff]  ;;  %v2611_v31 = vld [vmem:[%s4222_s1 + $0x178] sm:$0xff]  ;;  %v2610_v38 = vld [vmem:[%s4222_s1 + $0x170] sm:$0xff] }
  0x11   : > { %397 = vmatpush.msra.mxu0 %v2593_v2  ;;  %2732 = vmatpush.msra.mxu3 %v2593_v2  ;;  %v2900_v12 = vld [vmem:[%s2894_s18 + $0x40] sm:$0xff]  ;;  %v2903_v13 = vld [vmem:[%s2894_s18 + $0x48] sm:$0xff]  ;;  %v258_v35 = vld [vmem:[%s4222_s1 + $0x78] sm:$0xff]  ;;  %s4039_s11 = scalar_lea.vmem %s4224_s3, %s2773_s6 }
  0x12   : > { %2733 = vmatpush.msra.mxu1 %v2592_v3  ;;  %2734 = vmatpush.msra.mxu2 %v2592_v3  ;;  %v2909_v15 = vld [vmem:[%s2894_s18 + $0x80] sm:$0xff]  ;;  %v2912_v16 = vld [vmem:[%s2894_s18 + $0x88] sm:$0xff]  ;;  %v4227_v18 = vrot.slane %v2900_v12, 1  ;;  %v324_v19 = vrot.slane %v2903_v13, 1  ;;  %v2960_v36 = vld [vmem:[%s2894_s18 + $0x50] sm:$0xff] }
  0x13   : > { %398 = vmatpush.msra.mxu0 %v2592_v3  ;;  %2735 = vmatpush.msra.mxu3 %v2592_v3  ;;  %v338_v21 = vrot.slane %v2909_v15, 1  ;;  %v340_v22 = vrot.slane %v2912_v16, 1  ;;  %v2925_v23 = vld [vmem:[%s2894_s18] sm:$0xff]  ;;  %v2928_v24 = vld [vmem:[%s2894_s18 + $0x8] sm:$0xff]  ;;  %v2963_v37 = vld [vmem:[%s2894_s18 + $0x90] sm:$0xff]  ;;  %v326_v40 = vrot.slane %v2960_v36, 1 }
  0x14   : > { %2736 = vmatpush.msra.mxu1 %v2591_v4  ;;  %2737 = vmatpush.msra.mxu2 %v2591_v4  ;;  %v2931_v25 = vld [vmem:[%s2894_s18 + $0xc0] sm:$0xff]  ;;  %v2934_v26 = vld [vmem:[%s2894_s18 + $0xc8] sm:$0xff]  ;;  %v2942_v28 = vsel %vm306_vm0, %v4227_v18, %v324_v19  ;;  %v307_v29 = vrot.slane %v2925_v23, 1  ;;  %v308_v32 = vrot.slane %v2928_v24, 1  ;;  %v257_v39 = vld [vmem:[%s4222_s1 + $0x70] sm:$0xff]  ;;  %v342_v41 = vrot.slane %v2963_v37, 1 }
  0x15   : > { %399 = vmatpush.msra.mxu0 %v2591_v4  ;;  %2738 = vmatpush.msra.mxu3 %v2591_v4  ;;  %v2948_v30 = vsel %vm306_vm0, %v338_v21, %v340_v22  ;;  %v4228_v33 = vrot.slane %v2931_v25, 1  ;;  %v356_v34 = vrot.slane %v2934_v26, 1  ;;  %v2609_v44 = vld [vmem:[%s4222_s1 + $0x168] sm:$0xff]  ;;  %v2643_v45 = vld [vmem:[%s4222_s1 + $0x278] sm:$0xff]  ;;  %v2990_v46 = vld [vmem:[%s2894_s18 + $0x10] sm:$0xff]  ;;  %v3009_v52 = vsel %vm306_vm0, %v324_v19, %v326_v40 }
  0x16   : > { %2739 = vmatpush.msra.mxu1 %v2590_v5  ;;  %2740 = vmatpush.msra.mxu2 %v2590_v5  ;;  %4265 = vst [vmem:[#allocation2_spill] sm:$0xff] %v2948_v30  ;;  %v309_v42 = vsel %vm306_vm0, %v307_v29, %v308_v32  ;;  %v256_v47 = vld [vmem:[%s4222_s1 + $0x68] sm:$0xff]  ;;  %v2627_v48 = vld [vmem:[%s4222_s1 + $0x1f8] sm:$0xff]  ;;  %v2608_v49 = vld [vmem:[%s4222_s1 + $0x160] sm:$0xff]  ;;  %v3012_v53 = vsel %vm306_vm0, %v340_v22, %v342_v41  ;;  %v310_v55 = vrot.slane %v2990_v46, 1 }
  0x17   : > { %400 = vmatpush.msra.mxu0 %v2590_v5  ;;  %2741 = vmatpush.msra.mxu3 %v2590_v5  ;;  %v2981_v43 = vsel %vm306_vm0, %v4228_v33, %v356_v34  ;;  %v2642_v50 = vld [vmem:[%s4222_s1 + $0x270] sm:$0xff]  ;;  %4266 = vst [vmem:[#allocation3_spill] sm:$0xff] %v3009_v52  ;;  %v3015_v54 = vld [vmem:[%s2894_s18 + $0x58] sm:$0xff]  ;;  %v255_v57 = vld [vmem:[%s4222_s1 + $0x60] sm:$0xff] }
  0x18   : > { %2742 = vmatpush.msra.mxu1 %v2589_v6  ;;  %2743 = vmatpush.msra.mxu2 %v2589_v6  ;;  %v3006_v51 = vld [vmem:[%s2894_s18 + $0xd0] sm:$0xff]  ;;  %4267 = vst [vmem:[#allocation4_spill] sm:$0xff] %v3012_v53  ;;  %v3019_v56 = vld [vmem:[%s2894_s18 + $0x98] sm:$0xff]  ;;  %v2641_v59 = vld [vmem:[%s4222_s1 + $0x268] sm:$0xff]  ;;  %v328_v0 = vrot.slane %v3015_v54, 1  ;;  %v311_v2 = vsel %vm306_vm0, %v308_v32, %v310_v55 }
  0x19   : > { %401 = vmatpush.msra.mxu0 %v2589_v6  ;;  %2744 = vmatpush.msra.mxu3 %v2589_v6  ;;  %v2607_v58 = vld [vmem:[%s4222_s1 + $0x158] sm:$0xff]  ;;  %v2626_v60 = vld [vmem:[%s4222_s1 + $0x1f0] sm:$0xff]  ;;  %v358_v61 = vrot.slane %v3006_v51, 1  ;;  %v344_v1 = vrot.slane %v3019_v56, 1  ;;  %v2625_v3 = vld [vmem:[%s4222_s1 + $0x1e8] sm:$0xff] }
  0x1a   : > { %2745 = vmatpush.msra.mxu1 %v2588_v7  ;;  %2746 = vmatpush.msra.mxu2 %v2588_v7  ;;  %v254_v62 = vld [vmem:[%s4222_s1 + $0x58] sm:$0xff]  ;;  %v2606_v63 = vld [vmem:[%s4222_s1 + $0x150] sm:$0xff]  ;;  %v2640_v4 = vld [vmem:[%s4222_s1 + $0x260] sm:$0xff] }
  0x1b   : > { %402 = vmatpush.msra.mxu0 %v2588_v7  ;;  %2747 = vmatpush.msra.mxu3 %v2588_v7  ;;  %v253_v5 = vld [vmem:[%s4222_s1 + $0x50] sm:$0xff]  ;;  %v3055_v6 = vld [vmem:[%s2894_s18 + $0x18] sm:$0xff]  ;;  %v2605_v7 = vld [vmem:[%s4222_s1 + $0x148] sm:$0xff] }
  0x1c   : > { %2748 = vmatpush.msra.mxu1 %v2587_v8  ;;  %2749 = vmatpush.msra.mxu2 %v2587_v8  ;;  %v312_v19 = vrot.slane %v3055_v6, 1  ;;  %v2604_v22 = vld [vmem:[%s4222_s1 + $0x140] sm:$0xff]  ;;  %v2638_v26 = vld [vmem:[%s4222_s1 + $0x250] sm:$0xff]  ;;  %v2637_v32 = vld [vmem:[%s4222_s1 + $0x248] sm:$0xff] }
  0x1d   : > { %403 = vmatpush.msra.mxu0 %v2587_v8  ;;  %2750 = vmatpush.msra.mxu3 %v2587_v8  ;;  %v3065_v8 = vsel %vm306_vm0, %v356_v34, %v358_v61  ;;  %v2624_v29 = vld [vmem:[%s4222_s1 + $0x1e0] sm:$0xff]  ;;  %v3108_v34 = vld [vmem:[%s2894_s18 + $0xd8] sm:$0xff] }
  0x1e   : > { %2751 = vmatpush.msra.mxu1 %v2586_v9  ;;  %2752 = vmatpush.msra.mxu2 %v2586_v9  ;;  %v3177_v51 = vld [vmem:[%s2894_s18 + $0xe0] sm:$0xff]  ;;  %v2659_v18 = vld [vmem:[%s4222_s1 + $0x2f8] sm:$0xff] }
  0x1f   : > { %404 = vmatpush.msra.mxu0 %v2586_v9  ;;  %2753 = vmatpush.msra.mxu3 %v2586_v9  ;;  %v2639_v9 = vld [vmem:[%s4222_s1 + $0x258] sm:$0xff] }
  0x20   : > { %2754 = vmatpush.msra.mxu1 %v2585_v10  ;;  %2755 = vmatpush.msra.mxu2 %v2585_v10 }
  0x21   : > { %405 = vmatpush.msra.mxu0 %v2585_v10  ;;  %2756 = vmatpush.msra.mxu3 %v2585_v10  ;;  %v252_v10 = vld [vmem:[%s4222_s1 + $0x48] sm:$0xff] }
  0x22   : > { %2757 = vmatpush.msra.mxu1 %v2584_v11  ;;  %2758 = vmatpush.msra.mxu2 %v2584_v11 }
  0x23   : > { %406 = vmatpush.msra.mxu0 %v2584_v11  ;;  %2759 = vmatpush.msra.mxu3 %v2584_v11  ;;  %v3074_v11 = vsel %vm306_vm0, %v326_v40, %v328_v0  ;;  %v250_v40 = vld [vmem:[%s4222_s1 + $0x38] sm:$0xff] }
  0x24   : > { %2760 = vmatpush.msra.mxu1 %v2583_v14  ;;  %2761 = vmatpush.msra.mxu2 %v2583_v14  ;;  %4268 = vst [vmem:[#allocation5_spill] sm:$0xff] %v3074_v11 }
  0x25   : > { %407 = vmatpush.msra.mxu0 %v2583_v14  ;;  %2762 = vmatpush.msra.mxu3 %v2583_v14  ;;  %v3077_v14 = vsel %vm306_vm0, %v342_v41, %v344_v1  ;;  %v3119_v41 = vld [vmem:[%s2894_s18 + $0x20] sm:$0xff] }
  0x26   : > { %2763 = vmatpush.msra.mxu1 %v2582_v17  ;;  %2764 = vmatpush.msra.mxu2 %v2582_v17 }
  0x27   : > { %408 = vmatpush.msra.mxu0 %v2582_v17  ;;  %2765 = vmatpush.msra.mxu3 %v2582_v17  ;;  %v3080_v17 = vld [vmem:[%s2894_s18 + $0x60] sm:$0xff] }
  0x28   : > { %2766 = vmatpush.msra.mxu1 %v2581_v20  ;;  %2767 = vmatpush.msra.mxu2 %v2581_v20 }
  0x29   : > { %409 = vmatpush.msra.mxu0 %v2581_v20  ;;  %2768 = vmatpush.msra.mxu3 %v2581_v20  ;;  %v3084_v20 = vld [vmem:[%s2894_s18 + $0xa0] sm:$0xff] }
  0x2a   : > { %2769 = vmatpush.msra.mxu1 %v2580_v27  ;;  %2770 = vmatpush.msra.mxu2 %v2580_v27 }
  0x2b   : > { %435 = vmatmul.f32.vlgmr.msra.gmra.mxu1 %v2942_v28  ;;  %459 = vmatmul.f32.vlgmr.msra.gmra.mxu2 %v2948_v30 }
  0x2c   : > { %709 = vmatpush.msrb.mxu2 %v2611_v31  ;;  %499 = vmatpush.msrb.mxu1 %v258_v35  ;;  %v2603_v31 = vld [vmem:[%s4222_s1 + $0x138] sm:$0xff]  ;;  %v330_v35 = vrot.slane %v3080_v17, 1 }
  0x2d   : > { %410 = vmatpush.msra.mxu0 %v2580_v27  ;;  %2771 = vmatpush.msra.mxu3 %v2580_v27  ;;  %v251_v27 = vld [vmem:[%s4222_s1 + $0x40] sm:$0xff] }
  0x2e   : > { %710 = vmatpush.msrb.mxu2 %v2610_v38  ;;  %500 = vmatpush.msrb.mxu1 %v257_v39  ;;  %v346_v38 = vrot.slane %v3084_v20, 1  ;;  %v3113_v39 = vsel %vm306_vm0, %v310_v55, %v312_v19  ;;  %v3142_v55 = vsel %vm306_vm0, %v328_v0, %v330_v35 }
  0x2f   : > { %411 = vmatmul.f32.vlgmr.msra.gmra.mxu0 %v309_v42  ;;  %483 = vmatmul.f32.vlgmr.msra.gmra.mxu3 %v2981_v43  ;;  %v2602_v42 = vld [vmem:[%s4222_s1 + $0x130] sm:$0xff]  ;;  %4269 = vst [vmem:[#allocation6_spill] sm:$0xff] %v3142_v55 }
  0x30   : > { %711 = vmatpush.msrb.mxu2 %v2609_v44  ;;  %1017 = vmatpush.msrb.mxu0 %v2643_v45  ;;  %v2623_v44 = vld [vmem:[%s4222_s1 + $0x1d8] sm:$0xff]  ;;  %v2636_v45 = vld [vmem:[%s4222_s1 + $0x240] sm:$0xff] }
  0x31   : > { %501 = vmatpush.msrb.mxu1 %v256_v47  ;;  %859 = vmatpush.msrb.mxu3 %v2627_v48  ;;  %v249_v47 = vld [vmem:[%s4222_s1 + $0x30] sm:$0xff]  ;;  %v360_v48 = vrot.slane %v3108_v34, 1 }
  0x32   : > { %712 = vmatpush.msrb.mxu2 %v2608_v49  ;;  %1018 = vmatpush.msrb.mxu0 %v2642_v50  ;;  %v2622_v49 = vld [vmem:[%s4222_s1 + $0x1d0] sm:$0xff]  ;;  %v2601_v50 = vld [vmem:[%s4222_s1 + $0x128] sm:$0xff] }
  0x33   : > { %438 = vmatmul.f32.gmra.mxu1 %v3009_v52  ;;  %462 = vmatmul.f32.gmra.mxu2 %v3012_v53  ;;  %v3163_v0 = vsel %vm306_vm0, %v358_v61, %v360_v48 }
  0x34   : > { %502 = vmatpush.msrb.mxu1 %v255_v57  ;;  %713 = vmatpush.msrb.mxu2 %v2607_v58  ;;  %v3145_v57 = vsel %vm306_vm0, %v344_v1, %v346_v38  ;;  %v3148_v58 = vld [vmem:[%s2894_s18 + $0x68] sm:$0xff] }
  0x35   : > { %1019 = vmatpush.msrb.mxu0 %v2641_v59  ;;  %860 = vmatpush.msrb.mxu3 %v2626_v60  ;;  %v314_v59 = vrot.slane %v3119_v41, 1  ;;  %v3152_v60 = vld [vmem:[%s2894_s18 + $0xa8] sm:$0xff]  ;;  %v332_v61 = vrot.slane %v3148_v58, 1 }
  0x36   : > { %503 = vmatpush.msrb.mxu1 %v254_v62  ;;  %714 = vmatpush.msrb.mxu2 %v2606_v63  ;;  %v2621_v62 = vld [vmem:[%s4222_s1 + $0x1c8] sm:$0xff]  ;;  %v2635_v63 = vld [vmem:[%s4222_s1 + $0x238] sm:$0xff] }
  0x37   : > { %414 = vmatmul.f32.gmra.mxu0 %v311_v2  ;;  %861 = vmatpush.msrb.mxu3 %v2625_v3  ;;  %v248_v1 = vld [vmem:[%s4222_s1 + $0x28] sm:$0xff]  ;;  %v2600_v2 = vld [vmem:[%s4222_s1 + $0x120] sm:$0xff] }
  0x38   : > { %1020 = vmatpush.msrb.mxu0 %v2640_v4  ;;  %504 = vmatpush.msrb.mxu1 %v253_v5  ;;  %v2620_v3 = vld [vmem:[%s4222_s1 + $0x1c0] sm:$0xff]  ;;  %v348_v4 = vrot.slane %v3152_v60, 1  ;;  %v3182_v5 = vsel %vm306_vm0, %v312_v19, %v314_v59  ;;  %v2634_v19 = vld [vmem:[%s4222_s1 + $0x230] sm:$0xff] }
  0x39   : > { %715 = vmatpush.msrb.mxu2 %v2605_v7  ;;  %486 = vmatmul.f32.gmra.mxu3 %v3065_v8  ;;  %v247_v7 = vld [vmem:[%s4222_s1 + $0x20] sm:$0xff] }
  0x3a   : > { %1021 = vmatpush.msrb.mxu0 %v2639_v9  ;;  %505 = vmatpush.msrb.mxu1 %v252_v10  ;;  %v3188_v9 = vld [vmem:[%s2894_s18 + $0x28] sm:$0xff]  ;;  %v2619_v10 = vld [vmem:[%s4222_s1 + $0x1b8] sm:$0xff] }
  0x3b   : > { %441 = vmatmul.f32.gmra.mxu1 %v3074_v11  ;;  %465 = vmatmul.f32.gmra.mxu2 %v3077_v14 }
  0x3c   : > { %716 = vmatpush.msrb.mxu2 %v2604_v22  ;;  %1022 = vmatpush.msrb.mxu0 %v2638_v26  ;;  %v2599_v22 = vld [vmem:[%s4222_s1 + $0x118] sm:$0xff]  ;;  %v362_v26 = vrot.slane %v3177_v51, 1 }
  0x3d   : > { %506 = vmatpush.msrb.mxu1 %v251_v27  ;;  %862 = vmatpush.msrb.mxu3 %v2624_v29  ;;  %v246_v27 = vld [vmem:[%s4222_s1 + $0x18] sm:$0xff]  ;;  %v2618_v29 = vld [vmem:[%s4222_s1 + $0x1b0] sm:$0xff] }
  0x3e   : > { %717 = vmatpush.msrb.mxu2 %v2603_v31  ;;  %1023 = vmatpush.msrb.mxu0 %v2637_v32  ;;  %v2633_v31 = vld [vmem:[%s4222_s1 + $0x228] sm:$0xff]  ;;  %v3212_v32 = vsel %vm306_vm0, %v330_v35, %v332_v61  ;;  %v2598_v35 = vld [vmem:[%s4222_s1 + $0x110] sm:$0xff] }
  0x3f   : > { %417 = vmatmul.f32.gmra.mxu0 %v3113_v39  ;;  %507 = vmatpush.msrb.mxu1 %v250_v40  ;;  %4270 = vst [vmem:[#allocation7_spill] sm:$0xff] %v3212_v32  ;;  %v3215_v40 = vsel %vm306_vm0, %v346_v38, %v348_v4  ;;  %v3231_v38 = vsel %vm306_vm0, %v360_v48, %v362_v26 }
  0x40   : > { %718 = vmatpush.msrb.mxu2 %v2602_v42  ;;  %863 = vmatpush.msrb.mxu3 %v2623_v44  ;;  %v3218_v42 = vld [vmem:[%s2894_s18 + $0x70] sm:$0xff]  ;;  %v316_v44 = vrot.slane %v3188_v9, 1 }
  0x41   : > { %1024 = vmatpush.msrb.mxu0 %v2636_v45  ;;  %508 = vmatpush.msrb.mxu1 %v249_v47  ;;  %v3222_v45 = vld [vmem:[%s2894_s18 + $0xb0] sm:$0xff]  ;;  %v2617_v47 = vld [vmem:[%s4222_s1 + $0x1a8] sm:$0xff]  ;;  %v334_v48 = vrot.slane %v3218_v42, 1 }
  0x42   : > { %864 = vmatpush.msrb.mxu3 %v2622_v49  ;;  %719 = vmatpush.msrb.mxu2 %v2601_v50  ;;  %v2632_v49 = vld [vmem:[%s4222_s1 + $0x220] sm:$0xff] }
  0x43   : > { %444 = vmatmul.f32.gmra.mxu1 %v3142_v55  ;;  %468 = vmatmul.f32.gmra.mxu2 %v3145_v57  ;;  %v2616_v50 = vld [vmem:[%s4222_s1 + $0x1a0] sm:$0xff] }
  0x44   : > { %865 = vmatpush.msrb.mxu3 %v2621_v62  ;;  %1025 = vmatpush.msrb.mxu0 %v2635_v63  ;;  %v245_v62 = vld [vmem:[%s4222_s1 + $0x10] sm:$0xff]  ;;  %v3245_v63 = vld [vmem:[%s2894_s18 + $0xe8] sm:$0xff] }
  0x45   : > { %489 = vmatmul.f32.gmra.mxu3 %v3163_v0  ;;  %509 = vmatpush.msrb.mxu1 %v248_v1  ;;  %v350_v1 = vrot.slane %v3222_v45, 1 }
  0x46   : > { %720 = vmatpush.msrb.mxu2 %v2600_v2  ;;  %866 = vmatpush.msrb.mxu3 %v2620_v3  ;;  %v3250_v2 = vsel %vm306_vm0, %v314_v59, %v316_v44  ;;  %v2597_v3 = vld [vmem:[%s4222_s1 + $0x108] sm:$0xff]  ;;  %v2631_v59 = vld [vmem:[%s4222_s1 + $0x218] sm:$0xff] }
  0x47   : > { %420 = vmatmul.f32.gmra.mxu0 %v3182_v5  ;;  %510 = vmatpush.msrb.mxu1 %v247_v7  ;;  %v3256_v7 = vld [vmem:[%s2894_s18 + $0x30] sm:$0xff] }
  0x48   : > { %867 = vmatpush.msrb.mxu3 %v2619_v10  ;;  %1026 = vmatpush.msrb.mxu0 %v2634_v19  ;;  %v2615_v10 = vld [vmem:[%s4222_s1 + $0x198] sm:$0xff]  ;;  %v4226_v19 = vrot.slane %v3245_v63, 1 }
  0x49   : > { %721 = vmatpush.msrb.mxu2 %v2599_v22  ;;  %511 = vmatpush.msrb.mxu1 %v246_v27  ;;  %v244_v22 = vld [vmem:[%s4222_s1 + $0x8] sm:$0xff]  ;;  %v2596_v27 = vld [vmem:[%s4222_s1 + $0x100] sm:$0xff] }
  0x4a   : > { %868 = vmatpush.msrb.mxu3 %v2618_v29  ;;  %1027 = vmatpush.msrb.mxu0 %v2633_v31  ;;  %v2614_v29 = vld [vmem:[%s4222_s1 + $0x190] sm:$0xff] }
  0x4b   : > { %447 = vmatmul.f32.gmra.mxu1 %v3212_v32  ;;  %471 = vmatmul.f32.gmra.mxu2 %v3215_v40  ;;  %v2630_v31 = vld [vmem:[%s4222_s1 + $0x210] sm:$0xff] }
  0x4c   : > { %869 = vmatpush.msrb.mxu3 %v2617_v47  ;;  %722 = vmatpush.msrb.mxu2 %v2598_v35  ;;  %v3280_v47 = vsel %vm306_vm0, %v332_v61, %v334_v48  ;;  %v3283_v35 = vsel %vm306_vm0, %v348_v4, %v350_v1  ;;  %v243_v61 = vld [vmem:[%s4222_s1] sm:$0xff]  ;;  %v3301_v4 = vsel %vm306_vm0, %v362_v26, %v4226_v19  ;;  %v3323_v19 = vld [vmem:[%s2894_s18 + $0x38] sm:$0xff] }
  0x4d   : > { %492 = vmatmul.f32.gmra.mxu3 %v3231_v38  ;;  %1028 = vmatpush.msrb.mxu0 %v2632_v49  ;;  %4271 = vst [vmem:[#allocation8_spill] sm:$0xff] %v3280_v47  ;;  %v3286_v49 = vld [vmem:[%s2894_s18 + $0x78] sm:$0xff] }
  0x4e   : > { %870 = vmatpush.msrb.mxu3 %v2616_v50  ;;  %512 = vmatpush.msrb.mxu1 %v245_v62  ;;  %v318_v50 = vrot.slane %v3256_v7, 1  ;;  %v3290_v62 = vld [vmem:[%s2894_s18 + $0xb8] sm:$0xff]  ;;  %v336_v26 = vrot.slane %v3286_v49, 1 }
  0x4f   : > { %423 = vmatmul.f32.gmra.mxu0 %v3250_v2  ;;  %723 = vmatpush.msrb.mxu2 %v2597_v3  ;;  %v2613_v3 = vld [vmem:[%s4222_s1 + $0x188] sm:$0xff] }
  0x50   : > { %871 = vmatpush.msrb.mxu3 %v2615_v10  ;;  %1029 = vmatpush.msrb.mxu0 %v2631_v59  ;;  %v2675_v10 = vld [vmem:[%s4222_s1 + $0x378] sm:$0xff]  ;;  %v2612_v59 = vld [vmem:[%s4222_s1 + $0x180] sm:$0xff] }
  0x51   : > { %513 = vmatpush.msrb.mxu1 %v244_v22  ;;  %724 = vmatpush.msrb.mxu2 %v2596_v27  ;;  %v2629_v22 = vld [vmem:[%s4222_s1 + $0x208] sm:$0xff]  ;;  %v352_v27 = vrot.slane %v3290_v62, 1 }
  0x52   : > { %872 = vmatpush.msrb.mxu3 %v2614_v29  ;;  %1030 = vmatpush.msrb.mxu0 %v2630_v31  ;;  %v3317_v29 = vsel %vm306_vm0, %v316_v44, %v318_v50  ;;  %v2691_v31 = vld [vmem:[%s4222_s1 + $0x3f8] sm:$0xff]  ;;  %v2628_v44 = vld [vmem:[%s4222_s1 + $0x200] sm:$0xff] }
  0x53   : > { %450 = vmatmul.f32.gmra.mxu1 %v3280_v47  ;;  %474 = vmatmul.f32.gmra.mxu2 %v3283_v35  ;;  %v3343_v33 = vsel %vm306_vm0, %v350_v1, %v352_v27 }
  0x54   : > { %873 = vmatpush.msrb.mxu3 %v2613_v3  ;;  %514 = vmatpush.msrb.mxu1 %v243_v61  ;;  %v2707_v3 = vld [vmem:[%s4222_s1 + $0x478] sm:$0xff]  ;;  %v2674_v61 = vld [vmem:[%s4222_s1 + $0x370] sm:$0xff] }
  0x55   : > { %495 = vmatmul.f32.gmra.mxu3 %v3301_v4  ;;  %1323 = vmatpush.msra.mxu2 %v2675_v10  ;;  %v3340_v10 = vsel %vm306_vm0, %v334_v48, %v336_v26  ;;  %v2658_v48 = vld [vmem:[%s4222_s1 + $0x2f0] sm:$0xff] }
  0x56   : > { %874 = vmatpush.msrb.mxu3 %v2612_v59  ;;  %1031 = vmatpush.msrb.mxu0 %v2629_v22  ;;  %4272 = vst [vmem:[#allocation9_spill] sm:$0xff] %v3340_v10  ;;  %v320_v59 = vrot.slane %v3323_v19, 1  ;;  %v2690_v22 = vld [vmem:[%s4222_s1 + $0x3f0] sm:$0xff] }
  0x57   : > { %426 = vmatmul.f32.gmra.mxu0 %v3317_v29  ;;  %1173 = vmatpush.msra.mxu1 %v2659_v18  ;;  %v3362_v18 = vsel %vm306_vm0, %v336_v26, %v338_v21  ;;  %v2689_v21 = vld [vmem:[%s4222_s1 + $0x3e8] sm:$0xff]  ;;  %v622_v26 = vrot.slane %v2928_v24, 2 }
  0x58   : > { %1481 = vmatpush.msra.mxu3 %v2691_v31  ;;  %1032 = vmatpush.msrb.mxu0 %v2628_v44  ;;  %v3355_v1 = vsel %vm306_vm0, %v318_v50, %v320_v59  ;;  %4273 = vst [vmem:[#allocation10_spill] sm:$0xff] %v3362_v18  ;;  %v4274_v31 = vrot.slane %v2931_v25, 1  ;;  %v2706_v50 = vld [vmem:[%s4222_s1 + $0x470] sm:$0xff]  ;;  %v621_v25 = vrot.slane %v2925_v23, 2 }
  0x59   : > { %1324 = vmatpush.msra.mxu2 %v2674_v61  ;;  %1174 = vmatpush.msra.mxu1 %v2658_v48  ;;  %v2657_v48 = vld [vmem:[%s4222_s1 + $0x2e8] sm:$0xff] }
  0x5a   : > { %1637 = vmatpush.msra.mxu0 %v2707_v3  ;;  %1482 = vmatpush.msra.mxu3 %v2690_v22  ;;  %v3367_v44 = vsel %vm306_vm0, %v352_v27, %v4274_v31  ;;  %v2673_v3 = vld [vmem:[%s4222_s1 + $0x368] sm:$0xff]  ;;  %v4275_v27 = vrot.slane %v2900_v12, 1  ;;  %v623_v22 = vsel %vm620_vm1, %v621_v25, %v622_v26  ;;  %v624_v31 = vrot.slane %v2990_v46, 2  ;;  %v2704_v25 = vld [vmem:[%s4222_s1 + $0x460] sm:$0xff] }
  0x5b   : > { %453 = vmatmul.f32.gmra.mxu1 %v3340_v10  ;;  %477 = vmatmul.f32.gmra.mxu2 %v3343_v33 }
  0x5c   : > { %v3385_v61 = vsel %vm306_vm0, %v320_v59, %v4275_v27  ;;  %1638 = vmatpush.msra.mxu0 %v2706_v50  ;;  %1325 = vmatpush.msra.mxu2 %v2673_v3  ;;  %v2705_v59 = vld [vmem:[%s4222_s1 + $0x468] sm:$0xff]  ;;  %v625_v50 = vsel %vm620_vm1, %v622_v26, %v624_v31  ;;  %v2688_v3 = vld [vmem:[%s4222_s1 + $0x3e0] sm:$0xff]  ;;  %v628_v26 = vrot.slane %v3119_v41, 2  ;;  %v2687_v27 = vld [vmem:[%s4222_s1 + $0x3d8] sm:$0xff] }
  0x5d   : > { %875 = vmatmul.f32.vlgmr.msrb.gmra.mxu3 %v2990_v46  ;;  %1175 = vmatpush.msra.mxu1 %v2657_v48  ;;  %v2655_v48 = vld [vmem:[%s4222_s1 + $0x2d8] sm:$0xff] }
  0x5e   : > { %1483 = vmatpush.msra.mxu3 %v2689_v21  ;;  %1639 = vmatpush.msra.mxu0 %v2705_v59  ;;  %v626_v21 = vrot.slane %v3055_v6, 2  ;;  %v632_v59 = vrot.slane %v3256_v7, 2 }
  0x5f   : > { %429 = vmatmul.f32.gmra.mxu0 %v3355_v1 }
  0x60   : > { %1484 = vmatpush.msra.mxu3 %v2688_v3  ;;  %1640 = vmatpush.msra.mxu0 %v2704_v25  ;;  %v2686_v3 = vld [vmem:[%s4222_s1 + $0x3d0] sm:$0xff] }
  0x61   : > { %v2702_v25 = vld [vmem:[%s4222_s1 + $0x450] sm:$0xff] }
  0x62   : > { %1485 = vmatpush.msra.mxu3 %v2687_v27  ;;  %v638_v27 = vrot.slane %v2903_v13, 2 }
  0x63   : > { %456 = vmatmul.f32.gmra.mxu1 %v3362_v18  ;;  %480 = vmatmul.f32.gmra.mxu2 %v3367_v44 }
  0x64   : > { %1486 = vmatpush.msra.mxu3 %v2686_v3 }
  0x65   : > { %878 = vmatmul.f32.gmra.mxu3 %v3055_v6 }
  0x67   : > { %432 = vmatmul.f32.gmra.mxu0 %v3385_v61 }
  0x6b   : > { %515 = vmatmul.f32.vlgmr.msrb.gmra.mxu1 %v2925_v23  ;;  %725 = vmatmul.f32.vlgmr.msrb.gmra.mxu2 %v623_v22  ;;  %v2672_v23 = vld [vmem:[%s4222_s1 + $0x360] sm:$0xff]  ;;  %v630_v22 = vrot.slane %v3188_v9, 2 }
  0x6c   : > { %1326 = vmatpush.msra.mxu2 %v2672_v23  ;;  %v634_v23 = vrot.slane %v3323_v19, 2 }
  0x6d   : > { %881 = vmatmul.f32.gmra.mxu3 %v3119_v41 }
  0x6f   : > { %1033 = vmatmul.f32.vlgmr.msrb.gmra.mxu0 %v3113_v39  ;;  %v3412_v39 = vsel %vm620_vm1, %v624_v31, %v626_v21  ;;  %v2703_v31 = vld [vmem:[%s4222_s1 + $0x458] sm:$0xff] }
  0x70   : > { %1641 = vmatpush.msra.mxu0 %v2703_v31  ;;  %v2701_v31 = vld [vmem:[%s4222_s1 + $0x448] sm:$0xff] }
  0x72   : > { %1642 = vmatpush.msra.mxu0 %v2702_v25  ;;  %v2684_v25 = vld [vmem:[%s4222_s1 + $0x3c0] sm:$0xff] }
  0x73   : > { %518 = vmatmul.f32.gmra.mxu1 %v2928_v24  ;;  %728 = vmatmul.f32.gmra.mxu2 %v625_v50  ;;  %v2656_v24 = vld [vmem:[%s4222_s1 + $0x2e0] sm:$0xff]  ;;  %v3454_v50 = vsel %vm620_vm1, %v630_v22, %v632_v59 }
  0x74   : > { %1176 = vmatpush.msra.mxu1 %v2656_v24  ;;  %v636_v24 = vrot.slane %v2900_v12, 2  ;;  %1643 = vmatpush.msra.mxu0 %v2701_v31 }
  0x75   : > { %884 = vmatmul.f32.gmra.mxu3 %v3188_v9 }
  0x76   : > { %1177 = vmatpush.msra.mxu1 %v2655_v48 }
  0x77   : > { %1036 = vmatmul.f32.gmra.mxu0 %v3182_v5  ;;  %v2671_v5 = vld [vmem:[%s4222_s1 + $0x358] sm:$0xff] }
  0x78   : > { %1327 = vmatpush.msra.mxu2 %v2671_v5  ;;  %v2685_v5 = vld [vmem:[%s4222_s1 + $0x3c8] sm:$0xff] }
  0x79   : > { %1487 = vmatpush.msra.mxu3 %v2685_v5 }
  0x7b   : > { %521 = vmatmul.f32.gmra.mxu1 %v2990_v46  ;;  %731 = vmatmul.f32.gmra.mxu2 %v3412_v39  ;;  %v3426_v46 = vsel %vm620_vm1, %v626_v21, %v628_v26  ;;  %v2654_v21 = vld [vmem:[%s4222_s1 + $0x2d0] sm:$0xff] }
  0x7c   : > { %1178 = vmatpush.msra.mxu1 %v2654_v21  ;;  %1488 = vmatpush.msra.mxu3 %v2684_v25  ;;  %v2700_v25 = vld [vmem:[%s4222_s1 + $0x440] sm:$0xff] }
  0x7d   : > { %887 = vmatmul.f32.gmra.mxu3 %v3256_v7  ;;  %1644 = vmatpush.msra.mxu0 %v2700_v25  ;;  %v2683_v25 = vld [vmem:[%s4222_s1 + $0x3b8] sm:$0xff] }
  0x7e   : > { %1489 = vmatpush.msra.mxu3 %v2683_v25 }
  0x7f   : > { %1039 = vmatmul.f32.gmra.mxu0 %v3250_v2 }
  0x83   : > { %524 = vmatmul.f32.gmra.mxu1 %v3055_v6  ;;  %734 = vmatmul.f32.gmra.mxu2 %v3426_v46  ;;  %v3440_v6 = vsel %vm620_vm1, %v628_v26, %v630_v22  ;;  %v3482_v26 = vsel %vm620_vm1, %v634_v23, %v636_v24  ;;  %v2653_v22 = vld [vmem:[%s4222_s1 + $0x2c8] sm:$0xff] }
  0x84   : > { %4276 = vst [vmem:[#allocation11_spill] sm:$0xff] %v3482_v26  ;;  %1179 = vmatpush.msra.mxu1 %v2653_v22 }
  0x85   : > { %890 = vmatmul.f32.gmra.mxu3 %v3323_v19 }
  0x87   : > { %1042 = vmatmul.f32.gmra.mxu0 %v3317_v29 }
  0x8b   : > { %527 = vmatmul.f32.gmra.mxu1 %v3119_v41  ;;  %737 = vmatmul.f32.gmra.mxu2 %v3440_v6  ;;  %v2670_v41 = vld [vmem:[%s4222_s1 + $0x350] sm:$0xff] }
  0x8c   : > { %1328 = vmatpush.msra.mxu2 %v2670_v41 }
  0x8d   : > { %893 = vmatmul.f32.gmra.mxu3 %v2900_v12 }
  0x8f   : > { %1045 = vmatmul.f32.gmra.mxu0 %v3355_v1 }
  0x93   : > { %530 = vmatmul.f32.gmra.mxu1 %v3188_v9  ;;  %740 = vmatmul.f32.gmra.mxu2 %v3454_v50  ;;  %v3468_v9 = vsel %vm620_vm1, %v632_v59, %v634_v23  ;;  %v3501_v59 = vsel %vm620_vm1, %v636_v24, %v638_v27  ;;  %v640_v23 = vrot.slane %v2960_v36, 2  ;;  %v2668_v24 = vld [vmem:[%s4222_s1 + $0x340] sm:$0xff] }
  0x94   : > { %4277 = vst [vmem:[#allocation12_spill] sm:$0xff] %v3501_v59 }
  0x95   : > { %896 = vmatmul.f32.gmra.mxu3 %v2903_v13 }
  0x97   : > { %1048 = vmatmul.f32.gmra.mxu0 %v3385_v61 }
  0x9b   : > { %533 = vmatmul.f32.gmra.mxu1 %v3256_v7  ;;  %743 = vmatmul.f32.gmra.mxu2 %v3468_v9  ;;  %v2669_v7 = vld [vmem:[%s4222_s1 + $0x348] sm:$0xff] }
  0x9c   : > { %1329 = vmatpush.msra.mxu2 %v2669_v7  ;;  %v2652_v7 = vld [vmem:[%s4222_s1 + $0x2c0] sm:$0xff] }
  0x9d   : > { %899 = vmatmul.f32.gmra.mxu3 %v2960_v36  ;;  %1180 = vmatpush.msra.mxu1 %v2652_v7 }
  0x9e   : > { %1330 = vmatpush.msra.mxu2 %v2668_v24 }
  0x9f   : > { %1051 = vmatmul.f32.gmra.mxu0 %v2942_v28 }
  0xa3   : > { %536 = vmatmul.f32.gmra.mxu1 %v3323_v19  ;;  %746 = vmatmul.f32.gmra.mxu2 %v3482_v26 }
  0xa5   : > { %902 = vmatmul.f32.gmra.mxu3 %v3015_v54 }
  0xa7   : > { %1054 = vmatmul.f32.gmra.mxu0 %v3009_v52 }
  0xa8   : > { %v3498_v48 = vpop.f32.mrf.mxu1 }
  0xab   : > { %539 = vmatmul.f32.gmra.mxu1 %v2900_v12  ;;  %749 = vmatmul.f32.gmra.mxu2 %v3501_v59  ;;  %v3518_v12 = vsel %vm620_vm1, %v638_v27, %v640_v23  ;;  %v642_v27 = vrot.slane %v3015_v54, 2 }
  0xac   : > { %v3508_v41 = vpop.f32.mrf.mxu0  ;;  %4278 = vst [vmem:[#allocation13_spill] sm:$0xff] %v3518_v12 }
  0xad   : > { %905 = vmatmul.f32.gmra.mxu3 %v3080_v17  ;;  %v3543_v24 = vsel %vm620_vm1, %v640_v23, %v642_v27 }
  0xae   : > { %v3512_v3 = vpop.f32.mrf.mxu2  ;;  %4281 = vst [vmem:[#allocation16_spill] sm:$0xff] %v3543_v24 }
  0xaf   : > { %1057 = vmatmul.f32.gmra.mxu0 %v3074_v11  ;;  %v656_v11 = vrot.slane %v2963_v37, 2 }
  0xb0   : > { %v3515_v21 = vpop.f32.mrf.mxu1 }
  0xb2   : > { %v3534_v22 = vpop.f32.mrf.mxu3 }
  0xb3   : > { %542 = vmatmul.f32.gmra.mxu1 %v2903_v13  ;;  %752 = vmatmul.f32.gmra.mxu2 %v3518_v12  ;;  %4279 = vst [vmem:[#allocation14_spill] sm:$0xff] %v3534_v22  ;;  %v644_v22 = vrot.slane %v3080_v17, 2 }
  0xb4   : > { %v3531_v5 = vpop.f32.mrf.mxu0 }
  0xb5   : > { %908 = vmatmul.f32.gmra.mxu3 %v3148_v58 }
  0xb6   : > { %v3537_v13 = vpop.f32.mrf.mxu2 }
  0xb7   : > { %4280 = vst [vmem:[#allocation15_spill] sm:$0xff] %v3537_v13  ;;  %1060 = vmatmul.f32.gmra.mxu0 %v3142_v55 }
  0xb8   : > { %v3540_v31 = vpop.f32.mrf.mxu1 }
  0xbb   : > { %545 = vmatmul.f32.gmra.mxu1 %v2960_v36  ;;  %755 = vmatmul.f32.gmra.mxu2 %v3543_v24  ;;  %v2667_v36 = vld [vmem:[%s4222_s1 + $0x338] sm:$0xff]  ;;  %v3565_v24 = vsel %vm620_vm1, %v642_v27, %v644_v22 }
  0xbc   : > { %v3550_v7 = vpop.f32.mrf.mxu0  ;;  %v3556_v55 = vpop.f32.mrf.mxu3  ;;  %1331 = vmatpush.msra.mxu2 %v2667_v36  ;;  %4284 = vst [vmem:[#allocation19_spill] sm:$0xff] %v3565_v24  ;;  %v646_v36 = vrot.slane %v3148_v58, 2 }
  0xbd   : > { %911 = vmatmul.f32.gmra.mxu3 %v3218_v42  ;;  %4283 = vst [vmem:[#allocation18_spill] sm:$0xff] %v3556_v55  ;;  %v2651_v55 = vld [vmem:[%s4222_s1 + $0x2b8] sm:$0xff] }
  0xbe   : > { %v3554_v12 = vpop.f32.mrf.mxu2  ;;  %1181 = vmatpush.msra.mxu1 %v2651_v55 }
  0xbf   : > { %4282 = vst [vmem:[#allocation17_spill] sm:$0xff] %v3554_v12  ;;  %1063 = vmatmul.f32.gmra.mxu0 %v3212_v32  ;;  %v2699_v12 = vld [vmem:[%s4222_s1 + $0x438] sm:$0xff] }
  0xc0   : > { %v3562_v23 = vpop.f32.mrf.mxu1  ;;  %1645 = vmatpush.msra.mxu0 %v2699_v12 }
  0xc3   : > { %548 = vmatmul.f32.gmra.mxu1 %v3015_v54  ;;  %758 = vmatmul.f32.gmra.mxu2 %v3565_v24  ;;  %v3585_v54 = vsel %vm620_vm1, %v644_v22, %v646_v36  ;;  %v2666_v22 = vld [vmem:[%s4222_s1 + $0x330] sm:$0xff] }
  0xc4   : > { %v3575_v32 = vpop.f32.mrf.mxu0  ;;  %4286 = vst [vmem:[#allocation21_spill] sm:$0xff] %v3585_v54  ;;  %1332 = vmatpush.msra.mxu2 %v2666_v22 }
  0xc5   : > { %914 = vmatmul.f32.gmra.mxu3 %v3286_v49 }
  0xc6   : > { %v3579_v27 = vpop.f32.mrf.mxu2 }
  0xc7   : > { %4285 = vst [vmem:[#allocation20_spill] sm:$0xff] %v3579_v27  ;;  %1066 = vmatmul.f32.gmra.mxu0 %v3280_v47  ;;  %v648_v47 = vrot.slane %v3218_v42, 2 }
  0xc8   : > { %v3582_v25 = vpop.f32.mrf.mxu1  ;;  %v3587_v24 = vpop.f32.mrf.mxu3 }
  0xc9   : > { %4287 = vst [vmem:[#allocation22_spill] sm:$0xff] %v3587_v24 }
  0xcb   : > { %551 = vmatmul.f32.gmra.mxu1 %v3080_v17  ;;  %761 = vmatmul.f32.gmra.mxu2 %v3585_v54  ;;  %v3607_v17 = vsel %vm620_vm1, %v646_v36, %v648_v47  ;;  %v2682_v54 = vld [vmem:[%s4222_s1 + $0x3b0] sm:$0xff]  ;;  %v650_v36 = vrot.slane %v3286_v49, 2 }
  0xcc   : > { %v3594_v55 = vpop.f32.mrf.mxu0  ;;  %4289 = vst [vmem:[#allocation24_spill] sm:$0xff] %v3607_v17  ;;  %1490 = vmatpush.msra.mxu3 %v2682_v54 }
  0xcd   : > { %917 = vmatmul.f32.gmra.mxu3 %v2909_v15 }
  0xce   : > { %v3598_v27 = vpop.f32.mrf.mxu2 }
  0xcf   : > { %4288 = vst [vmem:[#allocation23_spill] sm:$0xff] %v3598_v27  ;;  %1069 = vmatmul.f32.gmra.mxu0 %v3340_v10  ;;  %v2650_v10 = vld [vmem:[%s4222_s1 + $0x2b0] sm:$0xff] }
  0xd0   : > { %v3604_v24 = vpop.f32.mrf.mxu1  ;;  %v3609_v12 = vpop.f32.mrf.mxu3  ;;  %1182 = vmatpush.msra.mxu1 %v2650_v10  ;;  %v2665_v10 = vld [vmem:[%s4222_s1 + $0x328] sm:$0xff] }
  0xd1   : > { %4290 = vst [vmem:[#allocation25_spill] sm:$0xff] %v3609_v12  ;;  %1333 = vmatpush.msra.mxu2 %v2665_v10  ;;  %v2649_v10 = vld [vmem:[%s4222_s1 + $0x2a8] sm:$0xff] }
  0xd2   : > { %1183 = vmatpush.msra.mxu1 %v2649_v10 }
  0xd3   : > { %554 = vmatmul.f32.gmra.mxu1 %v3148_v58  ;;  %764 = vmatmul.f32.gmra.mxu2 %v3607_v17  ;;  %v3629_v58 = vsel %vm620_vm1, %v648_v47, %v650_v36  ;;  %v2698_v17 = vld [vmem:[%s4222_s1 + $0x430] sm:$0xff]  ;;  %v652_v47 = vrot.slane %v2909_v15, 2 }
  0xd4   : > { %v3619_v27 = vpop.f32.mrf.mxu0  ;;  %4292 = vst [vmem:[#allocation27_spill] sm:$0xff] %v3629_v58  ;;  %1646 = vmatpush.msra.mxu0 %v2698_v17 }
  0xd5   : > { %920 = vmatmul.f32.gmra.mxu3 %v2912_v16 }
  0xd6   : > { %v3623_v22 = vpop.f32.mrf.mxu2 }
  0xd7   : > { %4291 = vst [vmem:[#allocation26_spill] sm:$0xff] %v3623_v22  ;;  %1072 = vmatmul.f32.gmra.mxu0 %v3362_v18 }
  0xd8   : > { %v3626_v54 = vpop.f32.mrf.mxu1  ;;  %v3631_v12 = vpop.f32.mrf.mxu3 }
  0xd9   : > { %4293 = vst [vmem:[#allocation28_spill] sm:$0xff] %v3631_v12 }
  0xdb   : > { %557 = vmatmul.f32.gmra.mxu1 %v3218_v42  ;;  %767 = vmatmul.f32.gmra.mxu2 %v3629_v58  ;;  %v2681_v42 = vld [vmem:[%s4222_s1 + $0x3a8] sm:$0xff]  ;;  %v3654_v58 = vsel %vm620_vm1, %v650_v36, %v652_v47 }
  0xdc   : > { %v3641_v18 = vpop.f32.mrf.mxu0  ;;  %4295 = vst [vmem:[#allocation30_spill] sm:$0xff] %v3654_v58  ;;  %1491 = vmatpush.msra.mxu3 %v2681_v42  ;;  %v2697_v36 = vld [vmem:[%s4222_s1 + $0x428] sm:$0xff] }
  0xdd   : > { %923 = vmatmul.f32.gmra.mxu3 %v2963_v37  ;;  %1647 = vmatpush.msra.mxu0 %v2697_v36 }
  0xde   : > { %v3645_v12 = vpop.f32.mrf.mxu2 }
  0xdf   : > { %4294 = vst [vmem:[#allocation29_spill] sm:$0xff] %v3645_v12  ;;  %1075 = vmatmul.f32.gmra.mxu0 %v2948_v30  ;;  %v654_v12 = vrot.slane %v2912_v16, 2 }
  0xe0   : > { %v3651_v17 = vpop.f32.mrf.mxu1  ;;  %v876_v22 = vpop.f32.mrf.mxu3 }
  0xe1   : > { %v3672_v10 = vsel %vm620_vm1, %v652_v47, %v654_v12  ;;  %v3690_v26 = vsel %vm620_vm1, %v654_v12, %v656_v11 }
  0xe2   : > { %4297 = vst [vmem:[#allocation32_spill] sm:$0xff] %v3672_v10 }
  0xe3   : > { %560 = vmatmul.f32.gmra.mxu1 %v3286_v49  ;;  %770 = vmatmul.f32.gmra.mxu2 %v3654_v58  ;;  %v2664_v58 = vld [vmem:[%s4222_s1 + $0x320] sm:$0xff] }
  0xe4   : > { %v3661_v30 = vpop.f32.mrf.mxu0  ;;  %1334 = vmatpush.msra.mxu2 %v2664_v58 }
  0xe5   : > { %926 = vmatmul.f32.gmra.mxu3 %v3019_v56 }
  0xe6   : > { %v3665_v59 = vpop.f32.mrf.mxu2 }
  0xe7   : > { %4296 = vst [vmem:[#allocation31_spill] sm:$0xff] %v3665_v59  ;;  %1078 = vmatmul.f32.gmra.mxu0 %v3012_v53  ;;  %v2680_v53 = vld [vmem:[%s4222_s1 + $0x3a0] sm:$0xff] }
  0xe8   : > { %v516_v42 = vpop.f32.mrf.mxu1  ;;  %v879_v49 = vpop.f32.mrf.mxu3  ;;  %1492 = vmatpush.msra.mxu3 %v2680_v53 }
  0xe9   : > { %v517_v47 = vadd.f32 %v516_v42, %v3508_v41  ;;  %v2696_v41 = vld [vmem:[%s4222_s1 + $0x420] sm:$0xff] }
  0xea   : > { %1648 = vmatpush.msra.mxu0 %v2696_v41 }
  0xeb   : > { %563 = vmatmul.f32.gmra.mxu1 %v2909_v15  ;;  %773 = vmatmul.f32.gmra.mxu2 %v3672_v10  ;;  %v2648_v10 = vld [vmem:[%s4222_s1 + $0x2a0] sm:$0xff] }
  0xec   : > { %v1034_v59 = vpop.f32.mrf.mxu0  ;;  %1184 = vmatpush.msra.mxu1 %v2648_v10 }
  0xed   : > { %929 = vmatmul.f32.gmra.mxu3 %v3084_v20 }
  0xee   : > { %v726_v15 = vpop.f32.mrf.mxu2 }
  0xef   : > { %v813_v36 = vadd.f32 %v726_v15, %v517_v47  ;;  %1081 = vmatmul.f32.gmra.mxu0 %v3077_v14  ;;  %v658_v47 = vrot.slane %v3019_v56, 2 }
  0xf0   : > { %v519_v13 = vpop.f32.mrf.mxu1  ;;  %v882_v52 = vpop.f32.mrf.mxu3 }
  0xf1   : > { %v963_v58 = vadd.f32 %v876_v22, %v813_v36  ;;  %v520_v12 = vadd.f32 %v519_v13, %v3531_v5  ;;  %v2679_v5 = vld [vmem:[%s4222_s1 + $0x398] sm:$0xff] }
  0xf2   : > { %1493 = vmatpush.msra.mxu3 %v2679_v5  ;;  %v662_v5 = vrot.slane %v3152_v60, 2 }
  0xf3   : > { %v3692_v53 = vadd.f32 %v1034_v59, %v963_v58  ;;  %566 = vmatmul.f32.gmra.mxu1 %v2912_v16  ;;  %776 = vmatmul.f32.gmra.mxu2 %v3690_v26  ;;  %v3704_v16 = vsel %vm620_vm1, %v656_v11, %v658_v47  ;;  %v2663_v58 = vld [vmem:[%s4222_s1 + $0x318] sm:$0xff] }
  0xf4   : > { %v1037_v42 = vpop.f32.mrf.mxu0  ;;  %1335 = vmatpush.msra.mxu2 %v2663_v58  ;;  %v2647_v11 = vld [vmem:[%s4222_s1 + $0x298] sm:$0xff] }
  0xf5   : > { %932 = vmatmul.f32.gmra.mxu3 %v3152_v60  ;;  %1185 = vmatpush.msra.mxu1 %v2647_v11 }
  0xf6   : > { %v729_v10 = vpop.f32.mrf.mxu2 }
  0xf7   : > { %v814_v22 = vadd.f32 %v729_v10, %v520_v12  ;;  %1084 = vmatmul.f32.gmra.mxu0 %v3145_v57 }
  0xf8   : > { %v522_v59 = vpop.f32.mrf.mxu1  ;;  %v885_v15 = vpop.f32.mrf.mxu3 }
  0xf9   : > { %v964_v36 = vadd.f32 %v879_v49, %v814_v22  ;;  %v660_v49 = vrot.slane %v3084_v20, 2 }
  0xfb   : > { %v3709_v41 = vadd.f32 %v1037_v42, %v964_v36  ;;  %569 = vmatmul.f32.gmra.mxu1 %v2963_v37  ;;  %779 = vmatmul.f32.gmra.mxu2 %v3704_v16  ;;  %v523_v42 = vadd.f32 %v522_v59, %v3550_v7  ;;  %v3724_v22 = vsel %vm620_vm1, %v658_v47, %v660_v49  ;;  %v2695_v7 = vld [vmem:[%s4222_s1 + $0x418] sm:$0xff] }
  0xfc   : > { %v1040_v13 = vpop.f32.mrf.mxu0  ;;  %1649 = vmatpush.msra.mxu0 %v2695_v7 }
  0xfd   : > { %4298 = vst [vmem:[#allocation33_spill] sm:$0xff] %v3709_v41  ;;  %935 = vmatmul.f32.gmra.mxu3 %v3222_v45 }
  0xfe   : > { %v732_v37 = vpop.f32.mrf.mxu2 }
  0xff   : > { %v815_v12 = vadd.f32 %v732_v37, %v523_v42  ;;  %1087 = vmatmul.f32.gmra.mxu0 %v3215_v40 }
 0x100   : > { %v525_v10 = vpop.f32.mrf.mxu1  ;;  %v888_v36 = vpop.f32.mrf.mxu3 }
 0x101   : > { %v965_v58 = vadd.f32 %v882_v52, %v815_v12  ;;  %v526_v11 = vadd.f32 %v525_v10, %v3575_v32  ;;  %v2662_v12 = vld [vmem:[%s4222_s1 + $0x310] sm:$0xff]  ;;  %v664_v10 = vrot.slane %v3222_v45, 2 }
 0x102   : > { %1336 = vmatpush.msra.mxu2 %v2662_v12  ;;  %v2678_v32 = vld [vmem:[%s4222_s1 + $0x390] sm:$0xff] }
 0x103   : > { %v3726_v41 = vadd.f32 %v1040_v13, %v965_v58  ;;  %572 = vmatmul.f32.gmra.mxu1 %v3019_v56  ;;  %782 = vmatmul.f32.gmra.mxu2 %v3724_v22  ;;  %v3738_v56 = vsel %vm620_vm1, %v660_v49, %v662_v5  ;;  %v2646_v49 = vld [vmem:[%s4222_s1 + $0x290] sm:$0xff] }
 0x104   : > { %v1043_v59 = vpop.f32.mrf.mxu0  ;;  %1494 = vmatpush.msra.mxu3 %v2678_v32  ;;  %1186 = vmatpush.msra.mxu1 %v2646_v49  ;;  %v666_v32 = vrot.slane %v3290_v62, 2 }
 0x105   : > { %938 = vmatmul.f32.gmra.mxu3 %v3290_v62 }
 0x106   : > { %v735_v47 = vpop.f32.mrf.mxu2 }
 0x107   : > { %v816_v52 = vadd.f32 %v735_v47, %v526_v11  ;;  %1090 = vmatmul.f32.gmra.mxu0 %v3283_v35 }
 0x108   : > { %v528_v13 = vpop.f32.mrf.mxu1  ;;  %v891_v42 = vpop.f32.mrf.mxu3 }
 0x109   : > { %v966_v37 = vadd.f32 %v885_v15, %v816_v52  ;;  %v529_v7 = vadd.f32 %v528_v13, %v3594_v55  ;;  %v3761_v52 = vsel %vm620_vm1, %v662_v5, %v664_v10  ;;  %v2694_v55 = vld [vmem:[%s4222_s1 + $0x410] sm:$0xff]  ;;  %v3773_v5 = vld [vmem:[%s2894_s18 + $0xc8] sm:$0xff] }
 0x10a   : > { %1650 = vmatpush.msra.mxu0 %v2694_v55  ;;  %v2645_v55 = vld [vmem:[%s4222_s1 + $0x288] sm:$0xff] }
 0x10b   : > { %v3743_v58 = vadd.f32 %v1043_v59, %v966_v37  ;;  %575 = vmatmul.f32.gmra.mxu1 %v3084_v20  ;;  %785 = vmatmul.f32.gmra.mxu2 %v3738_v56  ;;  %v3756_v59 = vld [vmem:[%s2894_s18 + $0xc0] sm:$0xff] }
 0x10c   : > { %v1046_v15 = vpop.f32.mrf.mxu0  ;;  %1187 = vmatpush.msra.mxu1 %v2645_v55  ;;  %v2693_v55 = vld [vmem:[%s4222_s1 + $0x408] sm:$0xff] }
 0x10d   : > { %4299 = vst [vmem:[#allocation34_spill] sm:$0xff] %v3743_v58  ;;  %941 = vmatmul.f32.gmra.mxu3 %v3756_v59  ;;  %1651 = vmatpush.msra.mxu0 %v2693_v55 }
 0x10e   : > { %v738_v20 = vpop.f32.mrf.mxu2 }
 0x10f   : > { %v817_v11 = vadd.f32 %v738_v20, %v529_v7  ;;  %1093 = vmatmul.f32.gmra.mxu0 %v3343_v33  ;;  %v3781_v20 = vsel %vm620_vm1, %v664_v10, %v666_v32 }
 0x110   : > { %v531_v47 = vpop.f32.mrf.mxu1  ;;  %v894_v37 = vpop.f32.mrf.mxu3 }
 0x111   : > { %v967_v12 = vadd.f32 %v888_v36, %v817_v11  ;;  %v532_v49 = vadd.f32 %v531_v47, %v3619_v27  ;;  %v2677_v47 = vld [vmem:[%s4222_s1 + $0x388] sm:$0xff] }
 0x112   : > { %1495 = vmatpush.msra.mxu3 %v2677_v47 }
 0x113   : > { %v3763_v58 = vadd.f32 %v1046_v15, %v967_v12  ;;  %578 = vmatmul.f32.gmra.mxu1 %v3152_v60  ;;  %788 = vmatmul.f32.gmra.mxu2 %v3761_v52  ;;  %v2661_v60 = vld [vmem:[%s4222_s1 + $0x308] sm:$0xff] }
 0x114   : > { %v1049_v13 = vpop.f32.mrf.mxu0  ;;  %1337 = vmatpush.msra.mxu2 %v2661_v60 }
 0x115   : > { %944 = vmatmul.f32.gmra.mxu3 %v3773_v5 }
 0x116   : > { %v741_v36 = vpop.f32.mrf.mxu2 }
 0x117   : > { %v818_v15 = vadd.f32 %v741_v36, %v532_v49  ;;  %1096 = vmatmul.f32.gmra.mxu0 %v3367_v44  ;;  %v668_v49 = vrot.slane %v3756_v59, 2  ;;  %v3796_v36 = vld [vmem:[%s2894_s18 + $0xd0] sm:$0xff] }
 0x118   : > { %v534_v7 = vpop.f32.mrf.mxu1  ;;  %v897_v11 = vpop.f32.mrf.mxu3 }
 0x119   : > { %v968_v27 = vadd.f32 %v891_v42, %v818_v15  ;;  %v535_v42 = vadd.f32 %v534_v7, %v3641_v18  ;;  %v3801_v60 = vsel %vm620_vm1, %v666_v32, %v668_v49  ;;  %v2660_v7 = vld [vmem:[%s4222_s1 + $0x300] sm:$0xff]  ;;  %v670_v32 = vrot.slane %v3773_v5, 2 }
 0x11a   : > { %1338 = vmatpush.msra.mxu2 %v2660_v7  ;;  %v672_v7 = vrot.slane %v3796_v36, 2 }
 0x11b   : > { %v3786_v12 = vadd.f32 %v1049_v13, %v968_v27  ;;  %581 = vmatmul.f32.gmra.mxu1 %v3222_v45  ;;  %791 = vmatmul.f32.gmra.mxu2 %v3781_v20 }
 0x11c   : > { %v1052_v10 = vpop.f32.mrf.mxu0 }
 0x11d   : > { %947 = vmatmul.f32.gmra.mxu3 %v3796_v36 }
 0x11e   : > { %v744_v13 = vpop.f32.mrf.mxu2 }
 0x11f   : > { %v819_v15 = vadd.f32 %v744_v13, %v535_v42  ;;  %1099 = vmatmul.f32.gmra.mxu0 %v2981_v43 }
 0x120   : > { %v537_v45 = vpop.f32.mrf.mxu1  ;;  %v900_v27 = vpop.f32.mrf.mxu3 }
 0x121   : > { %v969_v47 = vadd.f32 %v894_v37, %v819_v15  ;;  %v538_v37 = vadd.f32 %v537_v45, %v3661_v30  ;;  %v2644_v30 = vld [vmem:[%s4222_s1 + $0x280] sm:$0xff] }
 0x122   : > { %1188 = vmatpush.msra.mxu1 %v2644_v30 }
 0x123   : > { %v3806_v18 = vadd.f32 %v1052_v10, %v969_v47  ;;  %584 = vmatmul.f32.gmra.mxu1 %v3290_v62  ;;  %794 = vmatmul.f32.gmra.mxu2 %v3801_v60  ;;  %v2676_v62 = vld [vmem:[%s4222_s1 + $0x380] sm:$0xff]  ;;  %v3821_v47 = vsel %vm620_vm1, %v668_v49, %v670_v32 }
 0x124   : > { %v1055_v42 = vpop.f32.mrf.mxu0  ;;  %1496 = vmatpush.msra.mxu3 %v2676_v62 }
 0x125   : > { %4300 = vst [vmem:[#allocation35_spill] sm:$0xff] %v3806_v18  ;;  %950 = vmatmul.f32.gmra.mxu3 %v3108_v34 }
 0x126   : > { %v747_v13 = vpop.f32.mrf.mxu2 }
 0x127   : > { %v820_v15 = vadd.f32 %v747_v13, %v538_v37  ;;  %1102 = vmatmul.f32.gmra.mxu0 %v3065_v8  ;;  %v3838_v13 = vsel %vm620_vm1, %v670_v32, %v672_v7 }
 0x128   : > { %v540_v10 = vpop.f32.mrf.mxu1  ;;  %v903_v55 = vpop.f32.mrf.mxu3 }
 0x129   : > { %v970_v18 = vadd.f32 %v897_v11, %v820_v15  ;;  %v541_v49 = vadd.f32 %v540_v10, %v3498_v48  ;;  %v3845_v10 = vld [vmem:[%s2894_s18 + $0xd8] sm:$0xff] }
 0x12a   : > { %4303 = vst [vmem:[#allocation38_spill] sm:$0xff] %v3845_v10 }
 0x12b   : > { %v3826_v34 = vadd.f32 %v1055_v42, %v970_v18  ;;  %587 = vmatmul.f32.gmra.mxu1 %v3756_v59  ;;  %797 = vmatmul.f32.gmra.mxu2 %v3821_v47  ;;  %v2692_v18 = vld [vmem:[%s4222_s1 + $0x400] sm:$0xff] }
 0x12c   : > { %v1058_v45 = vpop.f32.mrf.mxu0  ;;  %1652 = vmatpush.msra.mxu0 %v2692_v18 }
 0x12d   : > { %4301 = vst [vmem:[#allocation36_spill] sm:$0xff] %v3826_v34  ;;  %953 = vmatmul.f32.gmra.mxu3 %v3177_v51 }
 0x12e   : > { %v750_v11 = vpop.f32.mrf.mxu2 }
 0x12f   : > { %v821_v37 = vadd.f32 %v750_v11, %v541_v49  ;;  %1105 = vmatmul.f32.gmra.mxu0 %v3163_v0  ;;  %v674_v49 = vrot.slane %v3845_v10, 2 }
 0x130   : > { %v543_v42 = vpop.f32.mrf.mxu1  ;;  %v906_v15 = vpop.f32.mrf.mxu3 }
 0x131   : > { %v971_v62 = vadd.f32 %v900_v27, %v821_v37  ;;  %v544_v11 = vadd.f32 %v543_v42, %v3515_v21  ;;  %v676_v21 = vrot.slane %v3177_v51, 2  ;;  %v3860_v42 = vld [vmem:[%s2894_s18 + $0xf0] sm:$0xff] }
 0x132   : > { %4305 = vst [vmem:[#allocation40_spill] sm:$0xff] %v3860_v42 }
 0x133   : > { %v3840_v30 = vadd.f32 %v1058_v45, %v971_v62  ;;  %590 = vmatmul.f32.gmra.mxu1 %v3773_v5  ;;  %800 = vmatmul.f32.gmra.mxu2 %v3838_v13  ;;  %v3852_v45 = vsel %vm620_vm1, %v672_v7, %v674_v49 }
 0x134   : > { %v1061_v48 = vpop.f32.mrf.mxu0 }
 0x135   : > { %4302 = vst [vmem:[#allocation37_spill] sm:$0xff] %v3840_v30  ;;  %956 = vmatmul.f32.gmra.mxu3 %v3245_v63 }
 0x136   : > { %v753_v32 = vpop.f32.mrf.mxu2 }
 0x137   : > { %v822_v34 = vadd.f32 %v753_v32, %v544_v11  ;;  %1108 = vmatmul.f32.gmra.mxu0 %v3231_v38 }
 0x138   : > { %v546_v27 = vpop.f32.mrf.mxu1  ;;  %v909_v37 = vpop.f32.mrf.mxu3 }
 0x139   : > { %v972_v18 = vadd.f32 %v903_v55, %v822_v34  ;;  %v547_v11 = vadd.f32 %v546_v27, %v3540_v31  ;;  %v3866_v34 = vsel %vm620_vm1, %v674_v49, %v676_v21  ;;  %v4263_v27 = vrot.slane %v3245_v63, 2 }
 0x13a   : > { %4306 = vst [vmem:[#allocation41_spill] sm:$0xff] %v3866_v34 }
 0x13b   : > { %v3854_v62 = vadd.f32 %v1061_v48, %v972_v18  ;;  %593 = vmatmul.f32.gmra.mxu1 %v3796_v36  ;;  %803 = vmatmul.f32.gmra.mxu2 %v3852_v45  ;;  %v1011_v48 = vrot.slane %v3860_v42, 1 }
 0x13c   : > { %v1064_v30 = vpop.f32.mrf.mxu0 }
 0x13d   : > { %4304 = vst [vmem:[#allocation39_spill] sm:$0xff] %v3854_v62  ;;  %959 = vmatmul.f32.gmra.mxu3 %v3860_v42  ;;  %v3881_v42 = vld [vmem:[%s2894_s18 + $0xf8] sm:$0xff] }
 0x13e   : > { %v756_v7 = vpop.f32.mrf.mxu2 }
 0x13f   : > { %v823_v32 = vadd.f32 %v756_v7, %v547_v11  ;;  %1111 = vmatmul.f32.gmra.mxu0 %v3301_v4  ;;  %v4308_v11 = vrot.slane %v3245_v63, 1 }
 0x140   : > { %v549_v55 = vpop.f32.mrf.mxu1  ;;  %v912_v18 = vpop.f32.mrf.mxu3 }
 0x141   : > { %v973_v62 = vadd.f32 %v906_v15, %v823_v32  ;;  %v3877_v7 = vsel %vm306_vm0, %v4308_v11, %v1011_v48  ;;  %v550_v49 = vadd.f32 %v549_v55, %v3562_v23  ;;  %v3888_v32 = vsel %vm620_vm1, %v676_v21, %v4263_v27  ;;  %v3894_v23 = vld [vmem:[%s2894_s18 + $0xe0] sm:$0xff] }
 0x142   : > { %v2789_v27 = vld [vmem:[%s2894_s18 + $0x20] sm:$0xff] }
 0x143   : > { %v3869_v51 = vadd.f32 %v1064_v30, %v973_v62  ;;  %596 = vmatmul.f32.gmra.mxu1 %v3845_v10  ;;  %806 = vmatmul.f32.gmra.mxu2 %v3866_v34 }
 0x144   : > { %v1067_v31 = vpop.f32.mrf.mxu0 }
 0x145   : > { %4307 = vst [vmem:[#allocation42_spill] sm:$0xff] %v3869_v51  ;;  %1497 = vmatmul.f32.vlgmr.msra.gmra.mxu3 %v3250_v2  ;;  %v4264_v51 = vrot.slane %v3881_v42, 1 }
 0x146   : > { %v759_v15 = vpop.f32.mrf.mxu2 }
 0x147   : > { %v824_v30 = vadd.f32 %v759_v15, %v550_v49  ;;  %1114 = vmatmul.f32.gmra.mxu0 %v3877_v7  ;;  %v3901_v55 = vsel %vm306_vm0, %v1011_v48, %v4264_v51 }
 0x148   : > { %v552_v62 = vpop.f32.mrf.mxu1  ;;  %v915_v11 = vpop.f32.mrf.mxu3 }
 0x149   : > { %v974_v34 = vadd.f32 %v909_v37, %v824_v30  ;;  %v553_v21 = vadd.f32 %v552_v62, %v3582_v25 }
 0x14b   : > { %v3891_v10 = vadd.f32 %v1067_v31, %v974_v34  ;;  %599 = vmatmul.f32.gmra.mxu1 %v3894_v23  ;;  %809 = vmatmul.f32.gmra.mxu2 %v3888_v32 }
 0x14c   : > { %v1070_v2 = vpop.f32.mrf.mxu0 }
 0x14d   : > { %1500 = vmatmul.f32.gmra.mxu3 %v3317_v29 }
 0x14e   : > { %v762_v37 = vpop.f32.mrf.mxu2 }
 0x14f   : > { %v825_v34 = vadd.f32 %v762_v37, %v553_v21  ;;  %1117 = vmatmul.f32.gmra.mxu0 %v3901_v55 }
 0x150   : > { %v555_v31 = vpop.f32.mrf.mxu1  ;;  %v918_v49 = vpop.f32.mrf.mxu3 }
 0x151   : > { %v975_v15 = vadd.f32 %v912_v18, %v825_v34  ;;  %v556_v51 = vadd.f32 %v555_v31, %v3604_v24 }
 0x153   : > { %v3906_v30 = vadd.f32 %v1070_v2, %v975_v15  ;;  %1189 = vmatmul.f32.vlgmr.msra.gmra.mxu1 %v3412_v39  ;;  %1339 = vmatmul.f32.vlgmr.msra.gmra.mxu2 %v2789_v27  ;;  %v2790_v39 = vld [vmem:[%s2894_s18 + $0x28] sm:$0xff]  ;;  %v2791_v15 = vld [vmem:[%s2894_s18 + $0x30] sm:$0xff] }
 0x154   : > { %v1073_v48 = vpop.f32.mrf.mxu0 }
 0x155   : > { %1503 = vmatmul.f32.gmra.mxu3 %v3355_v1 }
 0x156   : > { %v765_v29 = vpop.f32.mrf.mxu2 }
 0x157   : > { %v826_v25 = vadd.f32 %v765_v29, %v556_v51  ;;  %1653 = vmatmul.f32.vlgmr.msra.gmra.mxu0 %v3440_v6 }
 0x158   : > { %v558_v62 = vpop.f32.mrf.mxu1  ;;  %v921_v21 = vpop.f32.mrf.mxu3 }
 0x159   : > { %v976_v37 = vadd.f32 %v915_v11, %v826_v25  ;;  %v559_v2 = vadd.f32 %v558_v62, %v3626_v54 }
 0x15b   : > { %v3913_v18 = vadd.f32 %v1073_v48, %v976_v37  ;;  %1192 = vmatmul.f32.gmra.mxu1 %v3426_v46  ;;  %1342 = vmatmul.f32.gmra.mxu2 %v2790_v39 }
 0x15c   : > { %v1076_v27 = vpop.f32.mrf.mxu0 }
 0x15d   : > { %1506 = vmatmul.f32.gmra.mxu3 %v3385_v61 }
 0x15e   : > { %v768_v1 = vpop.f32.mrf.mxu2 }
 0x15f   : > { %v827_v24 = vadd.f32 %v768_v1, %v559_v2  ;;  %1656 = vmatmul.f32.gmra.mxu0 %v3454_v50 }
 0x160   : > { %v561_v51 = vpop.f32.mrf.mxu1  ;;  %v924_v34 = vpop.f32.mrf.mxu3 }
 0x161   : > { %v977_v31 = vadd.f32 %v918_v49, %v827_v24  ;;  %v562_v48 = vadd.f32 %v561_v51, %v3651_v17  ;;  %v4309_v17 = vld [vmem:[#allocation3_spill] sm:$0xff] }
 0x162   : > { %v4311_v51 = vld [vmem:[#allocation15_spill] sm:$0xff] }
 0x163   : > { %v3920_v11 = vadd.f32 %v1076_v27, %v977_v31  ;;  %1195 = vmatmul.f32.gmra.mxu1 %v3440_v6  ;;  %1345 = vmatmul.f32.gmra.mxu2 %v2791_v15  ;;  %v4310_v27 = vld [vmem:[#allocation11_spill] sm:$0xff] }
 0x164   : > { %v1079_v46 = vpop.f32.mrf.mxu0 }
 0x165   : > { %1509 = vmatmul.f32.gmra.mxu3 %v2942_v28 }
 0x166   : > { %v771_v54 = vpop.f32.mrf.mxu2 }
 0x167   : > { %v828_v61 = vadd.f32 %v771_v54, %v562_v48  ;;  %1659 = vmatmul.f32.gmra.mxu0 %v3468_v9  ;;  %v4313_v48 = vld [vmem:[#allocation12_spill] sm:$0xff] }
 0x168   : > { %v564_v29 = vpop.f32.mrf.mxu1  ;;  %v927_v25 = vpop.f32.mrf.mxu3 }
 0x169   : > { %v978_v62 = vadd.f32 %v921_v21, %v828_v61  ;;  %v565_v37 = vadd.f32 %v564_v29, %v3512_v3  ;;  %v4312_v3 = vld [vmem:[#allocation5_spill] sm:$0xff] }
 0x16b   : > { %v3927_v49 = vadd.f32 %v1079_v46, %v978_v62  ;;  %1198 = vmatmul.f32.gmra.mxu1 %v3454_v50  ;;  %1348 = vmatmul.f32.gmra.mxu2 %v3323_v19  ;;  %v2792_v50 = vld [vmem:[%s2894_s18 + $0x40] sm:$0xff] }
 0x16c   : > { %v1082_v6 = vpop.f32.mrf.mxu0 }
 0x16d   : > { %1512 = vmatmul.f32.gmra.mxu3 %v4309_v17  ;;  %v4315_v17 = vld [vmem:[#allocation6_spill] sm:$0xff] }
 0x16e   : > { %v774_v28 = vpop.f32.mrf.mxu2 }
 0x16f   : > { %v829_v39 = vadd.f32 %v774_v28, %v565_v37  ;;  %1662 = vmatmul.f32.gmra.mxu0 %v4310_v27 }
 0x170   : > { %v567_v2 = vpop.f32.mrf.mxu1  ;;  %v930_v1 = vpop.f32.mrf.mxu3 }
 0x171   : > { %v979_v24 = vadd.f32 %v924_v34, %v829_v39  ;;  %v568_v31 = vadd.f32 %v567_v2, %v4311_v51  ;;  %v4316_v2 = vld [vmem:[#allocation13_spill] sm:$0xff] }
 0x173   : > { %v3934_v21 = vadd.f32 %v1082_v6, %v979_v24  ;;  %1201 = vmatmul.f32.gmra.mxu1 %v3468_v9  ;;  %1351 = vmatmul.f32.gmra.mxu2 %v2792_v50  ;;  %v2793_v9 = vld [vmem:[%s2894_s18 + $0x48] sm:$0xff]  ;;  %v4314_v6 = vld [vmem:[#allocation17_spill] sm:$0xff] }
 0x174   : > { %v1085_v19 = vpop.f32.mrf.mxu0 }
 0x175   : > { %1515 = vmatmul.f32.gmra.mxu3 %v4312_v3 }
 0x176   : > { %v777_v15 = vpop.f32.mrf.mxu2 }
 0x177   : > { %v830_v46 = vadd.f32 %v777_v15, %v568_v31  ;;  %1665 = vmatmul.f32.gmra.mxu0 %v4313_v48  ;;  %v4317_v31 = vld [vmem:[#allocation20_spill] sm:$0xff]  ;;  %v4318_v15 = vld [vmem:[#allocation7_spill] sm:$0xff] }
 0x178   : > { %v570_v54 = vpop.f32.mrf.mxu1  ;;  %v933_v61 = vpop.f32.mrf.mxu3 }
 0x179   : > { %v980_v29 = vadd.f32 %v927_v25, %v830_v46  ;;  %v571_v37 = vadd.f32 %v570_v54, %v4314_v6 }
 0x17b   : > { %v3941_v34 = vadd.f32 %v1085_v19, %v980_v29  ;;  %1204 = vmatmul.f32.gmra.mxu1 %v4310_v27  ;;  %1354 = vmatmul.f32.gmra.mxu2 %v2793_v9  ;;  %v2794_v27 = vld [vmem:[%s2894_s18 + $0x50] sm:$0xff] }
 0x17c   : > { %v1088_v62 = vpop.f32.mrf.mxu0  ;;  %v4319_v29 = vld [vmem:[#allocation16_spill] sm:$0xff] }
 0x17d   : > { %1518 = vmatmul.f32.gmra.mxu3 %v4315_v17  ;;  %v4320_v17 = vld [vmem:[#allocation23_spill] sm:$0xff] }
 0x17e   : > { %v780_v28 = vpop.f32.mrf.mxu2 }
 0x17f   : > { %v831_v39 = vadd.f32 %v780_v28, %v571_v37  ;;  %1668 = vmatmul.f32.gmra.mxu0 %v4316_v2 }
 0x180   : > { %v573_v24 = vpop.f32.mrf.mxu1  ;;  %v936_v50 = vpop.f32.mrf.mxu3 }
 0x181   : > { %v981_v51 = vadd.f32 %v930_v1, %v831_v39  ;;  %v574_v3 = vadd.f32 %v573_v24, %v4317_v31  ;;  %v4321_v39 = vld [vmem:[#allocation8_spill] sm:$0xff] }
 0x183   : > { %v3948_v25 = vadd.f32 %v1088_v62, %v981_v51  ;;  %1207 = vmatmul.f32.gmra.mxu1 %v4313_v48  ;;  %1357 = vmatmul.f32.gmra.mxu2 %v2794_v27  ;;  %v2795_v48 = vld [vmem:[%s2894_s18 + $0x58] sm:$0xff]  ;;  %v4322_v27 = vld [vmem:[#allocation19_spill] sm:$0xff] }
 0x184   : > { %v1091_v19 = vpop.f32.mrf.mxu0 }
 0x185   : > { %1521 = vmatmul.f32.gmra.mxu3 %v4318_v15 }
 0x186   : > { %v783_v46 = vpop.f32.mrf.mxu2 }
 0x187   : > { %v832_v54 = vadd.f32 %v783_v46, %v574_v3  ;;  %1671 = vmatmul.f32.gmra.mxu0 %v4319_v29  ;;  %v4324_v46 = vld [vmem:[#allocation26_spill] sm:$0xff] }
 0x188   : > { %v576_v9 = vpop.f32.mrf.mxu1  ;;  %v939_v6 = vpop.f32.mrf.mxu3 }
 0x189   : > { %v982_v37 = vadd.f32 %v933_v61, %v832_v54  ;;  %v577_v28 = vadd.f32 %v576_v9, %v4320_v17  ;;  %v4325_v9 = vld [vmem:[#allocation9_spill] sm:$0xff] }
 0x18a   : > { %v4326_v17 = vld [vmem:[#allocation21_spill] sm:$0xff] }
 0x18b   : > { %v3955_v1 = vadd.f32 %v1091_v19, %v982_v37  ;;  %1210 = vmatmul.f32.gmra.mxu1 %v4316_v2  ;;  %1360 = vmatmul.f32.gmra.mxu2 %v2795_v48  ;;  %v2796_v2 = vld [vmem:[%s2894_s18 + $0x60] sm:$0xff] }
 0x18c   : > { %v1094_v62 = vpop.f32.mrf.mxu0 }
 0x18d   : > { %1524 = vmatmul.f32.gmra.mxu3 %v4321_v39 }
 0x18e   : > { %v786_v24 = vpop.f32.mrf.mxu2 }
 0x18f   : > { %v833_v51 = vadd.f32 %v786_v24, %v577_v28  ;;  %1674 = vmatmul.f32.gmra.mxu0 %v4322_v27 }
 0x190   : > { %v579_v31 = vpop.f32.mrf.mxu1  ;;  %v942_v3 = vpop.f32.mrf.mxu3 }
 0x191   : > { %v983_v15 = vadd.f32 %v936_v50, %v833_v51  ;;  %v580_v54 = vadd.f32 %v579_v31, %v4324_v46  ;;  %v4328_v51 = vld [vmem:[#allocation29_spill] sm:$0xff]  ;;  %v4329_v31 = vld [vmem:[#allocation10_spill] sm:$0xff] }
 0x193   : > { %v3962_v61 = vadd.f32 %v1094_v62, %v983_v15  ;;  %1213 = vmatmul.f32.gmra.mxu1 %v4319_v29  ;;  %1363 = vmatmul.f32.gmra.mxu2 %v2796_v2  ;;  %v2797_v29 = vld [vmem:[%s2894_s18 + $0x68] sm:$0xff] }
 0x194   : > { %v1097_v19 = vpop.f32.mrf.mxu0 }
 0x195   : > { %4323 = vst [vmem:[#allocation3_spill] sm:$0xff] %v3962_v61  ;;  %1527 = vmatmul.f32.gmra.mxu3 %v4325_v9 }
 0x196   : > { %v789_v37 = vpop.f32.mrf.mxu2 }
 0x197   : > { %v834_v48 = vadd.f32 %v789_v37, %v580_v54  ;;  %1677 = vmatmul.f32.gmra.mxu0 %v4326_v17  ;;  %v4330_v54 = vld [vmem:[#allocation24_spill] sm:$0xff] }
 0x198   : > { %v582_v28 = vpop.f32.mrf.mxu1  ;;  %v945_v39 = vpop.f32.mrf.mxu3 }
 0x199   : > { %v984_v24 = vadd.f32 %v939_v6, %v834_v48  ;;  %v583_v15 = vadd.f32 %v582_v28, %v4328_v51  ;;  %v4332_v48 = vld [vmem:[#allocation31_spill] sm:$0xff]  ;;  %v4333_v28 = vld [vmem:[#allocation2_spill] sm:$0xff] }
 0x19b   : > { %v3969_v50 = vadd.f32 %v1097_v19, %v984_v24  ;;  %1216 = vmatmul.f32.gmra.mxu1 %v4322_v27  ;;  %1366 = vmatmul.f32.gmra.mxu2 %v2797_v29  ;;  %v2798_v27 = vld [vmem:[%s2894_s18 + $0x70] sm:$0xff] }
 0x19c   : > { %v1100_v62 = vpop.f32.mrf.mxu0 }
 0x19d   : > { %4327 = vst [vmem:[#allocation11_spill] sm:$0xff] %v3969_v50  ;;  %1530 = vmatmul.f32.gmra.mxu3 %v4329_v31 }
 0x19e   : > { %v792_v2 = vpop.f32.mrf.mxu2 }
 0x19f   : > { %v835_v46 = vadd.f32 %v792_v2, %v583_v15  ;;  %1680 = vmatmul.f32.gmra.mxu0 %v4330_v54  ;;  %v4334_v15 = vld [vmem:[#allocation27_spill] sm:$0xff] }
 0x1a0   : > { %v585_v9 = vpop.f32.mrf.mxu1  ;;  %v948_v37 = vpop.f32.mrf.mxu3 }
 0x1a1   : > { %v985_v61 = vadd.f32 %v942_v3, %v835_v46  ;;  %v586_v24 = vadd.f32 %v585_v9, %v4332_v48  ;;  %v4336_v9 = vld [vmem:[#allocation4_spill] sm:$0xff] }
 0x1a3   : > { %v3976_v6 = vadd.f32 %v1100_v62, %v985_v61  ;;  %1219 = vmatmul.f32.gmra.mxu1 %v4326_v17  ;;  %1369 = vmatmul.f32.gmra.mxu2 %v2798_v27  ;;  %v2799_v61 = vld [vmem:[%s2894_s18 + $0x78] sm:$0xff]  ;;  %v4335_v62 = vld [vmem:[#allocation14_spill] sm:$0xff] }
 0x1a4   : > { %v1103_v19 = vpop.f32.mrf.mxu0 }
 0x1a5   : > { %4331 = vst [vmem:[#allocation15_spill] sm:$0xff] %v3976_v6  ;;  %1533 = vmatmul.f32.gmra.mxu3 %v4333_v28 }
 0x1a6   : > { %v795_v29 = vpop.f32.mrf.mxu2 }
 0x1a7   : > { %v836_v51 = vadd.f32 %v795_v29, %v586_v24  ;;  %1683 = vmatmul.f32.gmra.mxu0 %v4334_v15  ;;  %v4337_v24 = vld [vmem:[#allocation30_spill] sm:$0xff] }
 0x1a8   : > { %v588_v31 = vpop.f32.mrf.mxu1  ;;  %v951_v2 = vpop.f32.mrf.mxu3 }
 0x1a9   : > { %v986_v50 = vadd.f32 %v945_v39, %v836_v51  ;;  %v589_v46 = vadd.f32 %v588_v31, %v4335_v62  ;;  %v4339_v62 = vld [vmem:[#allocation32_spill] sm:$0xff] }
 0x1ab   : > { %v3983_v3 = vadd.f32 %v1103_v19, %v986_v50  ;;  %1222 = vmatmul.f32.gmra.mxu1 %v4330_v54  ;;  %1372 = vmatmul.f32.gmra.mxu2 %v2799_v61  ;;  %v2800_v50 = vld [vmem:[%s2894_s18 + $0x80] sm:$0xff] }
 0x1ac   : > { %v1106_v17 = vpop.f32.mrf.mxu0  ;;  %v4338_v19 = vld [vmem:[#allocation18_spill] sm:$0xff] }
 0x1ad   : > { %1536 = vmatmul.f32.gmra.mxu3 %v4336_v9 }
 0x1ae   : > { %v798_v27 = vpop.f32.mrf.mxu2 }
 0x1af   : > { %v837_v48 = vadd.f32 %v798_v27, %v589_v46  ;;  %1686 = vmatmul.f32.gmra.mxu0 %v4337_v24 }
 0x1b0   : > { %v591_v28 = vpop.f32.mrf.mxu1  ;;  %v954_v29 = vpop.f32.mrf.mxu3 }
 0x1b1   : > { %v987_v6 = vadd.f32 %v948_v37, %v837_v48  ;;  %v592_v51 = vadd.f32 %v591_v28, %v4338_v19 }
 0x1b3   : > { %v3990_v39 = vadd.f32 %v1106_v17, %v987_v6  ;;  %1225 = vmatmul.f32.gmra.mxu1 %v4334_v15  ;;  %1375 = vmatmul.f32.gmra.mxu2 %v2800_v50  ;;  %v2801_v6 = vld [vmem:[%s2894_s18 + $0x88] sm:$0xff]  ;;  %v4340_v17 = vld [vmem:[#allocation22_spill] sm:$0xff] }
 0x1b4   : > { %v1109_v54 = vpop.f32.mrf.mxu0 }
 0x1b5   : > { %1539 = vmatmul.f32.gmra.mxu3 %v3077_v14 }
 0x1b6   : > { %v801_v31 = vpop.f32.mrf.mxu2 }
 0x1b7   : > { %v838_v61 = vadd.f32 %v801_v31, %v592_v51  ;;  %1689 = vmatmul.f32.gmra.mxu0 %v4339_v62  ;;  %v4341_v31 = vld [vmem:[#allocation25_spill] sm:$0xff] }
 0x1b8   : > { %v594_v46 = vpop.f32.mrf.mxu1  ;;  %v957_v9 = vpop.f32.mrf.mxu3 }
 0x1b9   : > { %v988_v27 = vadd.f32 %v951_v2, %v838_v61  ;;  %v595_v48 = vadd.f32 %v594_v46, %v4340_v17 }
 0x1bb   : > { %v3997_v37 = vadd.f32 %v1109_v54, %v988_v27  ;;  %1228 = vmatmul.f32.gmra.mxu1 %v4337_v24  ;;  %1378 = vmatmul.f32.gmra.mxu2 %v2801_v6  ;;  %v2802_v24 = vld [vmem:[%s2894_s18 + $0x90] sm:$0xff] }
 0x1bc   : > { %v1112_v15 = vpop.f32.mrf.mxu0 }
 0x1bd   : > { %1542 = vmatmul.f32.gmra.mxu3 %v3145_v57 }
 0x1be   : > { %v804_v14 = vpop.f32.mrf.mxu2 }
 0x1bf   : > { %v839_v28 = vadd.f32 %v804_v14, %v595_v48  ;;  %1692 = vmatmul.f32.gmra.mxu0 %v3690_v26  ;;  %v4342_v48 = vld [vmem:[#allocation28_spill] sm:$0xff] }
 0x1c0   : > { %v597_v50 = vpop.f32.mrf.mxu1  ;;  %v960_v19 = vpop.f32.mrf.mxu3 }
 0x1c1   : > { %v989_v51 = vadd.f32 %v954_v29, %v839_v28  ;;  %v598_v61 = vadd.f32 %v597_v50, %v4341_v31 }
 0x1c3   : > { %v4004_v2 = vadd.f32 %v1112_v15, %v989_v51  ;;  %1231 = vmatmul.f32.gmra.mxu1 %v4339_v62  ;;  %1381 = vmatmul.f32.gmra.mxu2 %v2802_v24  ;;  %v2803_v62 = vld [vmem:[%s2894_s18 + $0x98] sm:$0xff]  ;;  %v1832_v24 = vlaneseq }
 0x1c4   : > { %v1115_v54 = vpop.f32.mrf.mxu0 }
 0x1c5   : > { %1545 = vmatmul.f32.gmra.mxu3 %v3215_v40 }
 0x1c6   : > { %v807_v57 = vpop.f32.mrf.mxu2 }
 0x1c7   : > { %v840_v46 = vadd.f32 %v807_v57, %v598_v61  ;;  %1695 = vmatmul.f32.gmra.mxu0 %v3704_v16 }
 0x1c8   : > { %v600_v27 = vpop.f32.mrf.mxu1  ;;  %v1498_v6 = vpop.f32.mrf.mxu3 }
 0x1c9   : > { %v990_v17 = vadd.f32 %v957_v9, %v840_v46  ;;  %v601_v14 = vadd.f32 %v600_v27, %v4342_v48 }
 0x1cb   : > { %v4011_v29 = vadd.f32 %v1115_v54, %v990_v17  ;;  %1234 = vmatmul.f32.gmra.mxu1 %v3690_v26  ;;  %1384 = vmatmul.f32.gmra.mxu2 %v2803_v62  ;;  %v2804_v26 = vld [vmem:[%s2894_s18 + $0xa0] sm:$0xff] }
 0x1cc   : > { %v1118_v15 = vpop.f32.mrf.mxu0 }
 0x1cd   : > { %1548 = vmatmul.f32.gmra.mxu3 %v3283_v35  ;;  %v4023_v35 = vshrl.u32 %v1832_v24, 7 }
 0x1ce   : > { %v810_v40 = vpop.f32.mrf.mxu2 }
 0x1cf   : > { %v841_v28 = vadd.f32 %v810_v40, %v601_v14  ;;  %1698 = vmatmul.f32.gmra.mxu0 %v3724_v22  ;;  %v1834_v62 = vadd.s32 8, %v4023_v35 }
 0x1d0   : > { %v1190_v50 = vpop.f32.mrf.mxu1  ;;  %v1501_v51 = vpop.f32.mrf.mxu3 }
 0x1d1   : > { %v991_v9 = vadd.f32 %v960_v19, %v841_v28  ;;  %v1277_v61 = vadd.f32 %v1190_v50, %v3692_v53  ;;  %v1873_v40 = vand.u32 15, %v1834_v62 }
 0x1d3   : > { %v4018_v54 = vadd.f32 %v1118_v15, %v991_v9  ;;  %1237 = vmatmul.f32.gmra.mxu1 %v3704_v16  ;;  %1387 = vmatmul.f32.gmra.mxu2 %v2804_v26  ;;  %v4031_v16 = vld [vmem:[%s4223_s2] ss:$0 sm:$0xff]  ;;  %v2805_v15 = vld [vmem:[%s2894_s18 + $0xa8] sm:$0xff]  ;;  %vm2240_vm2 = vcmp.lt.s32.totalorder %v1873_v40, 14 }
 0x1d4   : > { %v1654_v31 = vpop.f32.mrf.mxu0 }
 0x1d5   : > { %1551 = vmatmul.f32.gmra.mxu3 %v3343_v33 }
 0x1d6   : > { %v1340_v57 = vpop.f32.mrf.mxu2 }
 0x1d7   : > { %v1427_v46 = vadd.f32 %v1340_v57, %v1277_v61  ;;  %1701 = vmatmul.f32.gmra.mxu0 %v3738_v56  ;;  %v2817_v61 = vmov 0.0  }
 0x1d8   : > { %v1193_v19 = vpop.f32.mrf.mxu1  ;;  %v1504_v27 = vpop.f32.mrf.mxu3  ;;  %v2708_v57 = vsel %vm2240_vm2, 1.0, %v2817_v61 }
 0x1d9   : > { %v1585_v17 = vadd.f32 %v1498_v6, %v1427_v46  ;;  %v4343_v6 = vld [vmem:[#allocation33_spill] sm:$0xff] }
 0x1da   : > { %v1278_v48 = vadd.f32 %v1193_v19, %v4343_v6 }
 0x1db   : > { %v1741_v53 = vadd.f32 %v1654_v31, %v1585_v17  ;;  %1240 = vmatmul.f32.gmra.mxu1 %v3724_v22  ;;  %1390 = vmatmul.f32.gmra.mxu2 %v2805_v15  ;;  %v2806_v31 = vld [vmem:[%s2894_s18 + $0xb0] sm:$0xff] }
 0x1dc   : > { %v1657_v33 = vpop.f32.mrf.mxu0 }
 0x1dd   : > { %v1774_v14 = vadd.f32 %v4031_v16, %v1741_v53  ;;  %1554 = vmatmul.f32.gmra.mxu3 %v3367_v44  ;;  %v1836_v53 = vadd.s32 24, %v4023_v35 }
 0x1de   : > { %v1343_v28 = vpop.f32.mrf.mxu2 }
 0x1df   : > { %1803 = vst [vmem:[%s4039_s11] sm:$0xff] %v1774_v14  ;;  %v1428_v22 = vadd.f32 %v1343_v28, %v1278_v48  ;;  %1704 = vmatmul.f32.gmra.mxu0 %v3761_v52 }
 0x1e0   : > { %v1196_v50 = vpop.f32.mrf.mxu1  ;;  %v1507_v9 = vpop.f32.mrf.mxu3 }
 0x1e1   : > { %v1586_v24 = vadd.f32 %v1501_v51, %v1428_v22  ;;  %v1279_v44 = vadd.f32 %v1196_v50, %v3726_v41  ;;  %v4344_v50 = vld [vmem:[#allocation34_spill] sm:$0xff] }
 0x1e3   : > { %v1742_v26 = vadd.f32 %v1657_v33, %v1586_v24  ;;  %1243 = vmatmul.f32.gmra.mxu1 %v3738_v56  ;;  %1393 = vmatmul.f32.gmra.mxu2 %v2806_v31  ;;  %v2418_v33 = vmul.f32 %v1774_v14, %v1774_v14  ;;  %v1887_v31 = vand.u32 15, %v1836_v53 }
 0x1e4   : > { %v1660_v46 = vpop.f32.mrf.mxu0 }
 0x1e5   : > { %v1775_v19 = vadd.f32 %v4031_v16, %v1742_v26  ;;  %1557 = vmatmul.f32.gmra.mxu3 %v2981_v43  ;;  %v2807_v43 = vld [vmem:[%s2894_s18 + $0xb8] sm:$0xff]  ;;  %vm2242_vm3 = vcmp.lt.s32.totalorder %v1887_v31, 14 }
 0x1e6   : > { %v1346_v17 = vpop.f32.mrf.mxu2 }
 0x1e7   : > { %1804 = vst [vmem:[%s4039_s11 + $0x8] sm:$0xff] %v1775_v19  ;;  %v2356_v51 = vmul.f32 %v2708_v57, %v1775_v19  ;;  %v1429_v62 = vadd.f32 %v1346_v17, %v1279_v44  ;;  %1707 = vmatmul.f32.gmra.mxu0 %v3781_v20 }
 0x1e8   : > { %v1199_v56 = vpop.f32.mrf.mxu1  ;;  %v1510_v15 = vpop.f32.mrf.mxu3 }
 0x1e9   : > { %v2419_v6 = vmul.f32 %v2356_v51, %v1775_v19  ;;  %v1587_v48 = vadd.f32 %v1504_v27, %v1429_v62  ;;  %v2384_v41 = vadd.f32 %v2356_v51, %v1774_v14  ;;  %v1280_v24 = vadd.f32 %v1199_v56, %v4344_v50 }
 0x1eb   : > { %v2447_v40 = vadd.f32 %v2419_v6, %v2418_v33  ;;  %v1743_v28 = vadd.f32 %v1660_v46, %v1587_v48  ;;  %1246 = vmatmul.f32.gmra.mxu1 %v3761_v52  ;;  %1396 = vmatmul.f32.gmra.mxu2 %v2807_v43 }
 0x1ec   : > { %v1663_v22 = vpop.f32.mrf.mxu0 }
 0x1ed   : > { %v1776_v26 = vadd.f32 %v4031_v16, %v1743_v28  ;;  %1560 = vmatmul.f32.gmra.mxu3 %v3065_v8  ;;  %v2709_v8 = vsel %vm2242_vm3, 1.0, %v2817_v61  ;;  %v1838_v28 = vadd.s32 40, %v4023_v35 }
 0x1ee   : > { %v1349_v57 = vpop.f32.mrf.mxu2 }
 0x1ef   : > { %1805 = vst [vmem:[%s4039_s11 + $0x10] sm:$0xff] %v1776_v26  ;;  %v2385_v44 = vadd.f32 %v2384_v41, %v1776_v26  ;;  %v2420_v19 = vmul.f32 %v1776_v26, %v1776_v26  ;;  %v1430_v27 = vadd.f32 %v1349_v57, %v1280_v24  ;;  %1710 = vmatmul.f32.gmra.mxu0 %v3801_v60  ;;  %v1901_v24 = vand.u32 15, %v1838_v28 }
 0x1f0   : > { %v1202_v14 = vpop.f32.mrf.mxu1  ;;  %v1513_v52 = vpop.f32.mrf.mxu3 }
 0x1f1   : > { %v2448_v46 = vadd.f32 %v2447_v40, %v2420_v19  ;;  %v1588_v17 = vadd.f32 %v1507_v9, %v1430_v27  ;;  %v1281_v56 = vadd.f32 %v1202_v14, %v3763_v58  ;;  %vm2244_vm4 = vcmp.lt.s32.totalorder %v1901_v24, 14  ;;  %v4345_v14 = vld [vmem:[#allocation35_spill] sm:$0xff] }
 0x1f3   : > { %v1744_v51 = vadd.f32 %v1663_v22, %v1588_v17  ;;  %1249 = vmatmul.f32.gmra.mxu1 %v3781_v20  ;;  %1399 = vmatmul.f32.gmra.mxu2 %v3756_v59 }
 0x1f4   : > { %v1666_v62 = vpop.f32.mrf.mxu0 }
 0x1f5   : > { %v1777_v53 = vadd.f32 %v4031_v16, %v1744_v51  ;;  %1563 = vmatmul.f32.gmra.mxu3 %v3163_v0 }
 0x1f6   : > { %v1352_v33 = vpop.f32.mrf.mxu2 }
 0x1f7   : > { %1806 = vst [vmem:[%s4039_s11 + $0x18] sm:$0xff] %v1777_v53  ;;  %v2358_v6 = vmul.f32 %v2709_v8, %v1777_v53  ;;  %v1431_v48 = vadd.f32 %v1352_v33, %v1281_v56  ;;  %1713 = vmatmul.f32.gmra.mxu0 %v3821_v47  ;;  %v1840_v33 = vadd.s32 56, %v4023_v35 }
 0x1f8   : > { %v1205_v9 = vpop.f32.mrf.mxu1  ;;  %v1516_v20 = vpop.f32.mrf.mxu3 }
 0x1f9   : > { %v2421_v41 = vmul.f32 %v2358_v6, %v1777_v53  ;;  %v1589_v59 = vadd.f32 %v1510_v15, %v1431_v48  ;;  %v2386_v40 = vadd.f32 %v2385_v44, %v2358_v6  ;;  %v1282_v22 = vadd.f32 %v1205_v9, %v3786_v12  ;;  %v4346_v9 = vld [vmem:[#allocation38_spill] sm:$0xff] }
 0x1fa   : > { %v1915_v28 = vand.u32 15, %v1840_v33  ;;  %v4114_v33 = vld [vmem:[%s2894_s18 + $0x108] sm:$0xff] }
 0x1fb   : > { %v2449_v43 = vadd.f32 %v2448_v46, %v2421_v41  ;;  %v1745_v58 = vadd.f32 %v1666_v62, %v1589_v59  ;;  %1252 = vmatmul.f32.gmra.mxu1 %v3801_v60  ;;  %1402 = vmatmul.f32.gmra.mxu2 %v3773_v5  ;;  %v4347_v41 = vld [vmem:[#allocation36_spill] sm:$0xff] }
 0x1fc   : > { %v1669_v0 = vpop.f32.mrf.mxu0  ;;  %vm2246_vm5 = vcmp.lt.s32.totalorder %v1915_v28, 14  ;;  %v1477_v28 = vrot.slane %v4114_v33, 1 }
 0x1fd   : > { %v1778_v50 = vadd.f32 %v4031_v16, %v1745_v58  ;;  %1566 = vmatmul.f32.gmra.mxu3 %v3231_v38  ;;  %v2710_v38 = vsel %vm2244_vm4, 1.0, %v2817_v61 }
 0x1fe   : > { %v1355_v26 = vpop.f32.mrf.mxu2 }
 0x1ff   : > { %1807 = vst [vmem:[%s4039_s11 + $0x20] sm:$0xff] %v1778_v50  ;;  %v2387_v15 = vadd.f32 %v2386_v40, %v1778_v50  ;;  %v2422_v31 = vmul.f32 %v1778_v50, %v1778_v50  ;;  %v1432_v57 = vadd.f32 %v1355_v26, %v1282_v22  ;;  %1716 = vmatmul.f32.gmra.mxu0 %v3838_v13  ;;  %v4348_v22 = vld [vmem:[#allocation41_spill] sm:$0xff] }
 0x200   : > { %v1208_v44 = vpop.f32.mrf.mxu1  ;;  %v1519_v60 = vpop.f32.mrf.mxu3 }
 0x201   : > { %v2450_v19 = vadd.f32 %v2449_v43, %v2422_v31  ;;  %v1590_v5 = vadd.f32 %v1513_v52, %v1432_v57  ;;  %v1283_v46 = vadd.f32 %v1208_v44, %v4345_v14  ;;  %v4097_v31 = vld [vmem:[%s2894_s18 + $0x100] sm:$0xff]  ;;  %v4349_v44 = vld [vmem:[#allocation37_spill] sm:$0xff] }
 0x203   : > { %v1746_v27 = vadd.f32 %v1669_v0, %v1590_v5  ;;  %1255 = vmatmul.f32.gmra.mxu1 %v3821_v47  ;;  %1405 = vmatmul.f32.gmra.mxu2 %v3796_v36 }
 0x204   : > { %v1672_v12 = vpop.f32.mrf.mxu0 }
 0x205   : > { %v1779_v17 = vadd.f32 %v4031_v16, %v1746_v27  ;;  %1569 = vmatmul.f32.gmra.mxu3 %v3301_v4 }
 0x206   : > { %v1358_v51 = vpop.f32.mrf.mxu2 }
 0x207   : > { %1808 = vst [vmem:[%s4039_s11 + $0x28] sm:$0xff] %v1779_v17  ;;  %v2360_v8 = vmul.f32 %v2710_v38, %v1779_v17  ;;  %v1433_v62 = vadd.f32 %v1358_v51, %v1283_v46  ;;  %1719 = vmatmul.f32.gmra.mxu0 %v3852_v45 }
 0x208   : > { %v1211_v52 = vpop.f32.mrf.mxu1  ;;  %v1522_v47 = vpop.f32.mrf.mxu3 }
 0x209   : > { %v2423_v56 = vmul.f32 %v2360_v8, %v1779_v17  ;;  %v1591_v36 = vadd.f32 %v1516_v20, %v1433_v62  ;;  %v2388_v53 = vadd.f32 %v2387_v15, %v2360_v8  ;;  %v1284_v59 = vadd.f32 %v1211_v52, %v4347_v41 }
 0x20a   : > { %v1842_v62 = vadd.s32 72, %v4023_v35 }
 0x20b   : > { %v2451_v6 = vadd.f32 %v2450_v19, %v2423_v56  ;;  %v1747_v48 = vadd.f32 %v1672_v12, %v1591_v36  ;;  %1258 = vmatmul.f32.gmra.mxu1 %v3838_v13  ;;  %1408 = vmatmul.f32.gmra.mxu2 %v4346_v9  ;;  %v4350_v12 = vld [vmem:[#allocation40_spill] sm:$0xff]  ;;  %v4353_v9 = vld [vmem:[#allocation39_spill] sm:$0xff] }
 0x20c   : > { %v1675_v4 = vpop.f32.mrf.mxu0  ;;  %v1167_v14 = vrot.slane %v4350_v12, 2 }
 0x20d   : > { %v1780_v40 = vadd.f32 %v4031_v16, %v1747_v48  ;;  %1572 = vmatmul.f32.gmra.mxu3 %v3877_v7  ;;  %v2711_v7 = vsel %vm2246_vm5, 1.0, %v2817_v61  ;;  %v4352_v48 = vrot.slane %v3245_v63, 2 }
 0x20e   : > { %v1361_v43 = vpop.f32.mrf.mxu2 }
 0x20f   : > { %1809 = vst [vmem:[%s4039_s11 + $0x30] sm:$0xff] %v1780_v40  ;;  %v2389_v20 = vadd.f32 %v2388_v53, %v1780_v40  ;;  %v2424_v58 = vmul.f32 %v1780_v40, %v1780_v40  ;;  %v1434_v0 = vadd.f32 %v1361_v43, %v1284_v59  ;;  %1722 = vmatmul.f32.gmra.mxu0 %v4348_v22  ;;  %v2808_v53 = vld [vmem:[%s2894_s18 + $0xe8] sm:$0xff]  ;;  %v1929_v59 = vand.u32 15, %v1842_v62  ;;  %s2579_s18 = sshll.u32 %s4359_s16, 3 }
 0x210   : > { %v1214_v50 = vpop.f32.mrf.mxu1  ;;  %v1525_v13 = vpop.f32.mrf.mxu3  ;;  %s208_s14 = scalar_lea.vmem %s4225_s4, %s2579_s18 }
 0x211   : > { %v2452_v24 = vadd.f32 %v2451_v6, %v2424_v58  ;;  %v1592_v26 = vadd.f32 %v1519_v60, %v1434_v0  ;;  %v1285_v19 = vadd.f32 %v1214_v50, %v4349_v44  ;;  %v1475_v60 = vrot.slane %v4097_v31, 1 }
 0x212   : > { %vm2248_vm6 = vcmp.lt.s32.totalorder %v1929_v59, 14 }
 0x213   : > { %v1748_v15 = vadd.f32 %v1675_v4, %v1592_v26  ;;  %1261 = vmatmul.f32.gmra.mxu1 %v3852_v45  ;;  %1411 = vmatmul.f32.gmra.mxu2 %v3894_v23  ;;  %v1478_v26 = vsel %vm306_vm0, %v1475_v60, %v1477_v28 }
 0x214   : > { %v1678_v57 = vpop.f32.mrf.mxu0 }
 0x215   : > { %v1781_v5 = vadd.f32 %v4031_v16, %v1748_v15  ;;  %1575 = vmatmul.f32.gmra.mxu3 %v3901_v55  ;;  %v4351_v55 = vrot.slane %v3881_v42, 1 }
 0x216   : > { %v1364_v27 = vpop.f32.mrf.mxu2 }
 0x217   : > { %1810 = vst [vmem:[%s4039_s11 + $0x38] sm:$0xff] %v1781_v5  ;;  %v2362_v38 = vmul.f32 %v2711_v7, %v1781_v5  ;;  %v1435_v45 = vadd.f32 %v1364_v27, %v1285_v19  ;;  %1725 = vmatmul.f32.gmra.mxu0 %v3888_v32  ;;  %v1476_v52 = vsel %vm306_vm0, %v4351_v55, %v1475_v60  ;;  %v2712_v7 = vsel %vm2248_vm6, 1.0, %v2817_v61  ;;  %v4354_v19 = vld [vmem:[#allocation42_spill] sm:$0xff] }
 0x218   : > { %v1217_v23 = vpop.f32.mrf.mxu1  ;;  %v1528_v46 = vpop.f32.mrf.mxu3  ;;  %vm2482_vm0 = vcmp.eq.s32.totalorder %v4023_v35, 1 }
 0x219   : > { %v2425_v17 = vmul.f32 %v2362_v38, %v1781_v5  ;;  %v1593_v51 = vadd.f32 %v1522_v47, %v1435_v45  ;;  %v2390_v8 = vadd.f32 %v2389_v20, %v2362_v38  ;;  %v1168_v47 = vsel %vm620_vm1, %v4352_v48, %v1167_v14 }
 0x21a   : > { %v1286_v4 = vadd.f32 %v1217_v23, %v4353_v9 }
 0x21b   : > { %v2453_v56 = vadd.f32 %v2452_v24, %v2425_v17  ;;  %v1749_v36 = vadd.f32 %v1678_v57, %v1593_v51  ;;  %1264 = vmatmul.f32.gmra.mxu1 %v4348_v22  ;;  %1414 = vmatmul.f32.gmra.mxu2 %v2808_v53  ;;  %v1169_v22 = vrot.slane %v3881_v42, 2 }
 0x21c   : > { %v1681_v6 = vpop.f32.mrf.mxu0 }
 0x21d   : > { %v1782_v41 = vadd.f32 %v4031_v16, %v1749_v36  ;;  %1578 = vmatmul.f32.gmra.mxu3 %v1476_v52  ;;  %v1170_v44 = vsel %vm620_vm1, %v1167_v14, %v1169_v22  ;;  %v1844_v14 = vadd.s32 88, %v4023_v35 }
 0x21e   : > { %v1367_v40 = vpop.f32.mrf.mxu2 }
 0x21f   : > { %1811 = vst [vmem:[%s4039_s11 + $0x40] sm:$0xff] %v1782_v41  ;;  %v2391_v43 = vadd.f32 %v2390_v8, %v1782_v41  ;;  %v2426_v20 = vmul.f32 %v1782_v41, %v1782_v41  ;;  %v1436_v58 = vadd.f32 %v1367_v40, %v1286_v4  ;;  %1728 = vmatmul.f32.gmra.mxu0 %v1168_v47  ;;  %v1943_v53 = vand.u32 15, %v1844_v14 }
 0x220   : > { %v1220_v0 = vpop.f32.mrf.mxu1  ;;  %v1531_v63 = vpop.f32.mrf.mxu3 }
 0x221   : > { %v2454_v50 = vadd.f32 %v2453_v56, %v2426_v20  ;;  %v1594_v24 = vadd.f32 %v1525_v13, %v1436_v58  ;;  %v1287_v5 = vadd.f32 %v1220_v0, %v4354_v19  ;;  %vm2250_vm7 = vcmp.lt.s32.totalorder %v1943_v53, 14 }
 0x223   : > { %v1750_v15 = vadd.f32 %v1681_v6, %v1594_v24  ;;  %1267 = vmatmul.f32.gmra.mxu1 %v3888_v32  ;;  %1417 = vmatmul.f32.gmra.mxu2 %v4350_v12  ;;  %v1631_v32 = vrot.slane %v4097_v31, 2 }
 0x224   : > { %v1684_v57 = vpop.f32.mrf.mxu0 }
 0x225   : > { %v1783_v27 = vadd.f32 %v4031_v16, %v1750_v15  ;;  %1581 = vmatmul.f32.gmra.mxu3 %v1478_v26  ;;  %v1632_v52 = vsel %vm620_vm1, %v1169_v22, %v1631_v32  ;;  %v1846_v15 = vadd.s32 104, %v4023_v35 }
 0x226   : > { %v1370_v38 = vpop.f32.mrf.mxu2 }
 0x227   : > { %1812 = vst [vmem:[%s4039_s11 + $0x48] sm:$0xff] %v1783_v27  ;;  %v2364_v13 = vmul.f32 %v2712_v7, %v1783_v27  ;;  %v1437_v45 = vadd.f32 %v1370_v38, %v1287_v5  ;;  %1731 = vmatmul.f32.gmra.mxu0 %v1170_v44  ;;  %v1957_v5 = vand.u32 15, %v1846_v15 }
 0x228   : > { %v1223_v60 = vpop.f32.mrf.mxu1  ;;  %v1534_v23 = vpop.f32.mrf.mxu3 }
 0x229   : > { %v2427_v12 = vmul.f32 %v2364_v13, %v1783_v27  ;;  %v1595_v17 = vadd.f32 %v1528_v46, %v1437_v45  ;;  %v2392_v51 = vadd.f32 %v2391_v43, %v2364_v13  ;;  %v1288_v56 = vadd.f32 %v1223_v60, %v3891_v10 }
 0x22a   : > { %v2713_v10 = vsel %vm2250_vm7, 1.0, %v2817_v61  ;;  %vm2252_vm8 = vcmp.lt.s32.totalorder %v1957_v5, 14 }
 0x22b   : > { %v2455_v8 = vadd.f32 %v2454_v50, %v2427_v12  ;;  %v1751_v62 = vadd.f32 %v1684_v57, %v1595_v17  ;;  %1270 = vmatmul.f32.gmra.mxu1 %v1168_v47  ;;  %1420 = vmatmul.f32.gmra.mxu2 %v3881_v42  ;;  %v1633_v47 = vrot.slane %v4114_v33, 2 }
 0x22c   : > { %v1687_v55 = vpop.f32.mrf.mxu0 }
 0x22d   : > { %v1784_v36 = vadd.f32 %v4031_v16, %v1751_v62  ;;  %v1634_v43 = vsel %vm620_vm1, %v1631_v32, %v1633_v47  ;;  %vm2481_vm1 = vcmp.eq.s32.totalorder %v4023_v35, 0 }
 0x22e   : > { %v1373_v6 = vpop.f32.mrf.mxu2 }
 0x22f   : > { %1813 = vst [vmem:[%s4039_s11 + $0x50] sm:$0xff] %v1784_v36  ;;  %v2393_v48 = vadd.f32 %v2392_v51, %v1784_v36  ;;  %v2428_v46 = vmul.f32 %v1784_v36, %v1784_v36  ;;  %v1438_v9 = vadd.f32 %v1373_v6, %v1288_v56  ;;  %1734 = vmatmul.f32.gmra.mxu0 %v1632_v52  ;;  %v2714_v51 = vsel %vm2252_vm8, 1.0, %v2817_v61 }
 0x230   : > { %v1226_v4 = vpop.f32.mrf.mxu1  ;;  %v1537_v41 = vpop.f32.mrf.mxu3 }
 0x231   : > { %v2456_v42 = vadd.f32 %v2455_v8, %v2428_v46  ;;  %v1596_v59 = vadd.f32 %v1531_v63, %v1438_v9  ;;  %v1289_v20 = vadd.f32 %v1226_v4, %v3906_v30  ;;  %v1848_v46 = vadd.s32 120, %v4023_v35 }
 0x233   : > { %v1752_v40 = vadd.f32 %v1687_v55, %v1596_v59  ;;  %1273 = vmatmul.f32.gmra.mxu1 %v1170_v44  ;;  %1423 = vmatmul.f32.gmra.mxu2 %v4097_v31 }
 0x234   : > { %v1690_v28 = vpop.f32.mrf.mxu0 }
 0x235   : > { %v1785_v58 = vadd.f32 %v4031_v16, %v1752_v40 }
 0x236   : > { %v1376_v0 = vpop.f32.mrf.mxu2 }
 0x237   : > { %1814 = vst [vmem:[%s4039_s11 + $0x58] sm:$0xff] %v1785_v58  ;;  %v2366_v33 = vmul.f32 %v2713_v10, %v1785_v58  ;;  %v1439_v22 = vadd.f32 %v1376_v0, %v1289_v20  ;;  %1737 = vmatmul.f32.gmra.mxu0 %v1634_v43 }
 0x238   : > { %v1229_v63 = vpop.f32.mrf.mxu1  ;;  %v1540_v50 = vpop.f32.mrf.mxu3 }
 0x239   : > { %v2429_v24 = vmul.f32 %v2366_v33, %v1785_v58  ;;  %v1597_v26 = vadd.f32 %v1534_v23, %v1439_v22  ;;  %v2394_v31 = vadd.f32 %v2393_v48, %v2366_v33  ;;  %v1290_v30 = vadd.f32 %v1229_v63, %v3913_v18 }
 0x23b   : > { %v2457_v7 = vadd.f32 %v2456_v42, %v2429_v24  ;;  %v1753_v57 = vadd.f32 %v1690_v28, %v1597_v26  ;;  %v1971_v42 = vand.u32 15, %v1848_v46 }
 0x23c   : > { %v1693_v44 = vpop.f32.mrf.mxu0 }
 0x23d   : > { %v1786_v19 = vadd.f32 %v4031_v16, %v1753_v57  ;;  %vm2254_vm9 = vcmp.lt.s32.totalorder %v1971_v42, 14 }
 0x23e   : > { %v1379_v27 = vpop.f32.mrf.mxu2  ;;  %v2715_v22 = vsel %vm2254_vm9, 1.0, %v2817_v61 }
 0x23f   : > { %1815 = vst [vmem:[%s4039_s11 + $0x60] sm:$0xff] %v1786_v19  ;;  %v2395_v38 = vadd.f32 %v2394_v31, %v1786_v19  ;;  %v2430_v13 = vmul.f32 %v1786_v19, %v1786_v19  ;;  %v1440_v45 = vadd.f32 %v1379_v27, %v1290_v30  ;;  %v1850_v19 = vadd.s32 136, %v4023_v35 }
 0x240   : > { %v1232_v60 = vpop.f32.mrf.mxu1  ;;  %v1543_v32 = vpop.f32.mrf.mxu3 }
 0x241   : > { %v2458_v23 = vadd.f32 %v2457_v7, %v2430_v13  ;;  %v1598_v12 = vadd.f32 %v1537_v41, %v1440_v45  ;;  %v1291_v18 = vadd.f32 %v1232_v60, %v3920_v11  ;;  %v1985_v45 = vand.u32 15, %v1850_v19 }
 0x243   : > { %v1754_v17 = vadd.f32 %v1693_v44, %v1598_v12  ;;  %vm2256_vm10 = vcmp.lt.s32.totalorder %v1985_v45, 14  ;;  %v4356_v45 = vld [vmem:[#allocation11_spill] sm:$0xff] }
 0x244   : > { %v1696_v14 = vpop.f32.mrf.mxu0 }
 0x245   : > { %v1787_v8 = vadd.f32 %v4031_v16, %v1754_v17 }
 0x246   : > { %v1382_v62 = vpop.f32.mrf.mxu2 }
 0x247   : > { %1816 = vst [vmem:[%s4039_s11 + $0x68] sm:$0xff] %v1787_v8  ;;  %v2368_v55 = vmul.f32 %v2714_v51, %v1787_v8  ;;  %v1441_v52 = vadd.f32 %v1382_v62, %v1291_v18  ;;  %v2716_v62 = vsel %vm2256_vm10, 1.0, %v2817_v61 }
 0x248   : > { %v1235_v56 = vpop.f32.mrf.mxu1  ;;  %v1546_v36 = vpop.f32.mrf.mxu3 }
 0x249   : > { %v2431_v53 = vmul.f32 %v2368_v55, %v1787_v8  ;;  %v1599_v6 = vadd.f32 %v1540_v50, %v1441_v52  ;;  %v2396_v48 = vadd.f32 %v2395_v38, %v2368_v55  ;;  %v1292_v41 = vadd.f32 %v1235_v56, %v3927_v49 }
 0x24b   : > { %v2459_v9 = vadd.f32 %v2458_v23, %v2431_v53  ;;  %v1755_v4 = vadd.f32 %v1696_v14, %v1599_v6 }
 0x24c   : > { %v1699_v47 = vpop.f32.mrf.mxu0 }
 0x24d   : > { %v1788_v11 = vadd.f32 %v4031_v16, %v1755_v4 }
 0x24e   : > { %v1385_v59 = vpop.f32.mrf.mxu2 }
 0x24f   : > { %1817 = vst [vmem:[%s4039_s11 + $0x70] sm:$0xff] %v1788_v11  ;;  %v2397_v40 = vadd.f32 %v2396_v48, %v1788_v11  ;;  %v2432_v10 = vmul.f32 %v1788_v11, %v1788_v11  ;;  %v1442_v28 = vadd.f32 %v1385_v59, %v1292_v41 }
 0x250   : > { %v1238_v43 = vpop.f32.mrf.mxu1  ;;  %v1549_v20 = vpop.f32.mrf.mxu3 }
 0x251   : > { %v2460_v58 = vadd.f32 %v2459_v9, %v2432_v10  ;;  %v1600_v0 = vadd.f32 %v1543_v32, %v1442_v28  ;;  %v1293_v49 = vadd.f32 %v1238_v43, %v3934_v21 }
 0x253   : > { %v1756_v33 = vadd.f32 %v1699_v47, %v1600_v0  ;;  %v1852_v47 = vadd.s32 152, %v4023_v35 }
 0x254   : > { %v1702_v63 = vpop.f32.mrf.mxu0 }
 0x255   : > { %v1789_v50 = vadd.f32 %v4031_v16, %v1756_v33 }
 0x256   : > { %v1388_v24 = vpop.f32.mrf.mxu2 }
 0x257   : > { %1818 = vst [vmem:[%s4039_s11 + $0x78] sm:$0xff] %v1789_v50  ;;  %v2370_v26 = vmul.f32 %v2715_v22, %v1789_v50  ;;  %v1443_v31 = vadd.f32 %v1388_v24, %v1293_v49  ;;  %v4355_v24 = vld [vmem:[#allocation3_spill] sm:$0xff] }
 0x258   : > { %v1241_v15 = vpop.f32.mrf.mxu1  ;;  %v1552_v7 = vpop.f32.mrf.mxu3 }
 0x259   : > { %v2433_v57 = vmul.f32 %v2370_v26, %v1789_v50  ;;  %v1601_v44 = vadd.f32 %v1546_v36, %v1443_v31  ;;  %v2398_v30 = vadd.f32 %v2397_v40, %v2370_v26  ;;  %v1294_v13 = vadd.f32 %v1241_v15, %v3941_v34 }
 0x25a   : > { %v1999_v40 = vand.u32 15, %v1852_v47 }
 0x25b   : > { %v2461_v5 = vadd.f32 %v2460_v58, %v2433_v57  ;;  %v1757_v27 = vadd.f32 %v1702_v63, %v1601_v44 }
 0x25c   : > { %v1705_v38 = vpop.f32.mrf.mxu0  ;;  %vm2258_vm11 = vcmp.lt.s32.totalorder %v1999_v40, 14 }
 0x25d   : > { %v1790_v21 = vadd.f32 %v4031_v16, %v1757_v27  ;;  %v2717_v49 = vsel %vm2258_vm11, 1.0, %v2817_v61 }
 0x25e   : > { %v1391_v60 = vpop.f32.mrf.mxu2 }
 0x25f   : > { %1819 = vst [vmem:[%s4039_s11 + $0x80] sm:$0xff] %v1790_v21  ;;  %v2399_v32 = vadd.f32 %v2398_v30, %v1790_v21  ;;  %v2434_v23 = vmul.f32 %v1790_v21, %v1790_v21  ;;  %v1444_v12 = vadd.f32 %v1391_v60, %v1294_v13 }
 0x260   : > { %v1244_v17 = vpop.f32.mrf.mxu1  ;;  %v1555_v51 = vpop.f32.mrf.mxu3 }
 0x261   : > { %v2462_v14 = vadd.f32 %v2461_v5, %v2434_v23  ;;  %v1602_v18 = vadd.f32 %v1549_v20, %v1444_v12  ;;  %v1295_v34 = vadd.f32 %v1244_v17, %v3948_v25  ;;  %v1854_v5 = vadd.s32 168, %v4023_v35 }
 0x263   : > { %v1758_v8 = vadd.f32 %v1705_v38, %v1602_v18  ;;  %v2013_v23 = vand.u32 15, %v1854_v5 }
 0x264   : > { %v1708_v55 = vpop.f32.mrf.mxu0 }
 0x265   : > { %v1791_v52 = vadd.f32 %v4031_v16, %v1758_v8  ;;  %vm2260_vm12 = vcmp.lt.s32.totalorder %v2013_v23, 14 }
 0x266   : > { %v1394_v56 = vpop.f32.mrf.mxu2 }
 0x267   : > { %1820 = vst [vmem:[%s4039_s11 + $0x88] sm:$0xff] %v1791_v52  ;;  %v2372_v36 = vmul.f32 %v2716_v62, %v1791_v52  ;;  %v1445_v53 = vadd.f32 %v1394_v56, %v1295_v34  ;;  %v2718_v34 = vsel %vm2260_vm12, 1.0, %v2817_v61 }
 0x268   : > { %v1247_v6 = vpop.f32.mrf.mxu1  ;;  %v1558_v48 = vpop.f32.mrf.mxu3 }
 0x269   : > { %v2435_v46 = vmul.f32 %v2372_v36, %v1791_v52  ;;  %v1603_v9 = vadd.f32 %v1552_v7, %v1445_v53  ;;  %v2400_v4 = vadd.f32 %v2399_v32, %v2372_v36  ;;  %v1296_v59 = vadd.f32 %v1247_v6, %v3955_v1  ;;  %v4357_v36 = vld [vmem:[#allocation15_spill] sm:$0xff] }
 0x26b   : > { %v2463_v41 = vadd.f32 %v2462_v14, %v2435_v46  ;;  %v1759_v11 = vadd.f32 %v1708_v55, %v1603_v9 }
 0x26c   : > { %v1711_v42 = vpop.f32.mrf.mxu0 }
 0x26d   : > { %v1792_v25 = vadd.f32 %v4031_v16, %v1759_v11 }
 0x26e   : > { %v1397_v10 = vpop.f32.mrf.mxu2 }
 0x26f   : > { %1821 = vst [vmem:[%s4039_s11 + $0x90] sm:$0xff] %v1792_v25  ;;  %v2401_v28 = vadd.f32 %v2400_v4, %v1792_v25  ;;  %v2436_v43 = vmul.f32 %v1792_v25, %v1792_v25  ;;  %v1446_v20 = vadd.f32 %v1397_v10, %v1296_v59 }
 0x270   : > { %v1250_v58 = vpop.f32.mrf.mxu1  ;;  %v1561_v0 = vpop.f32.mrf.mxu3 }
 0x271   : > { %v2464_v33 = vadd.f32 %v2463_v41, %v2436_v43  ;;  %v1604_v22 = vadd.f32 %v1555_v51, %v1446_v20  ;;  %v1297_v1 = vadd.f32 %v1250_v58, %v4355_v24 }
 0x273   : > { %v1760_v63 = vadd.f32 %v1711_v42, %v1604_v22  ;;  %v1856_v42 = vadd.s32 184, %v4023_v35 }
 0x274   : > { %v1714_v50 = vpop.f32.mrf.mxu0 }
 0x275   : > { %v1793_v26 = vadd.f32 %v4031_v16, %v1760_v63  ;;  %v2027_v43 = vand.u32 15, %v1856_v42 }
 0x276   : > { %v1400_v31 = vpop.f32.mrf.mxu2 }
 0x277   : > { %1822 = vst [vmem:[%s4039_s11 + $0x98] sm:$0xff] %v1793_v26  ;;  %v2374_v15 = vmul.f32 %v2717_v49, %v1793_v26  ;;  %v1447_v7 = vadd.f32 %v1400_v31, %v1297_v1  ;;  %vm2262_vm13 = vcmp.lt.s32.totalorder %v2027_v43, 14 }
 0x278   : > { %v1253_v57 = vpop.f32.mrf.mxu1  ;;  %v1564_v27 = vpop.f32.mrf.mxu3  ;;  %v2719_v1 = vsel %vm2262_vm13, 1.0, %v2817_v61 }
 0x279   : > { %v2437_v44 = vmul.f32 %v2374_v15, %v1793_v26  ;;  %v1605_v30 = vadd.f32 %v1558_v48, %v1447_v7  ;;  %v2402_v19 = vadd.f32 %v2401_v28, %v2374_v15  ;;  %v1298_v60 = vadd.f32 %v1253_v57, %v4356_v45 }
 0x27b   : > { %v2465_v38 = vadd.f32 %v2464_v33, %v2437_v44  ;;  %v1761_v13 = vadd.f32 %v1714_v50, %v1605_v30 }
 0x27c   : > { %v1717_v21 = vpop.f32.mrf.mxu0 }
 0x27d   : > { %v1794_v32 = vadd.f32 %v4031_v16, %v1761_v13 }
 0x27e   : > { %v1403_v12 = vpop.f32.mrf.mxu2 }
 0x27f   : > { %1823 = vst [vmem:[%s4039_s11 + $0xa0] sm:$0xff] %v1794_v32  ;;  %v2403_v17 = vadd.f32 %v2402_v19, %v1794_v32  ;;  %v2438_v51 = vmul.f32 %v1794_v32, %v1794_v32  ;;  %v1448_v14 = vadd.f32 %v1403_v12, %v1298_v60 }
 0x280   : > { %v1256_v18 = vpop.f32.mrf.mxu1  ;;  %v1567_v56 = vpop.f32.mrf.mxu3 }
 0x281   : > { %v2466_v8 = vadd.f32 %v2465_v38, %v2438_v51  ;;  %v1606_v62 = vadd.f32 %v1561_v0, %v1448_v14  ;;  %v1299_v53 = vadd.f32 %v1256_v18, %v4357_v36  ;;  %v1858_v38 = vadd.s32 200, %v4023_v35 }
 0x283   : > { %v1762_v55 = vadd.f32 %v1717_v21, %v1606_v62  ;;  %v2041_v32 = vand.u32 15, %v1858_v38 }
 0x284   : > { %v1720_v52 = vpop.f32.mrf.mxu0 }
 0x285   : > { %v1795_v6 = vadd.f32 %v4031_v16, %v1762_v55  ;;  %vm2264_vm14 = vcmp.lt.s32.totalorder %v2041_v32, 14 }
 0x286   : > { %v1406_v48 = vpop.f32.mrf.mxu2 }
 0x287   : > { %1824 = vst [vmem:[%s4039_s11 + $0xa8] sm:$0xff] %v1795_v6  ;;  %v2376_v46 = vmul.f32 %v2718_v34, %v1795_v6  ;;  %v1449_v9 = vadd.f32 %v1406_v48, %v1299_v53  ;;  %v2720_v34 = vsel %vm2264_vm14, 1.0, %v2817_v61 }
 0x288   : > { %v1259_v4 = vpop.f32.mrf.mxu1  ;;  %v1570_v58 = vpop.f32.mrf.mxu3 }
 0x289   : > { %v2439_v47 = vmul.f32 %v2376_v46, %v1795_v6  ;;  %v1607_v41 = vadd.f32 %v1564_v27, %v1449_v9  ;;  %v2404_v11 = vadd.f32 %v2403_v17, %v2376_v46  ;;  %v1300_v10 = vadd.f32 %v1259_v4, %v3983_v3 }
 0x28b   : > { %v2467_v59 = vadd.f32 %v2466_v8, %v2439_v47  ;;  %v1763_v25 = vadd.f32 %v1720_v52, %v1607_v41  ;;  %v1860_v47 = vadd.s32 216, %v4023_v35 }
 0x28c   : > { %v1723_v40 = vpop.f32.mrf.mxu0 }
 0x28d   : > { %v1796_v28 = vadd.f32 %v4031_v16, %v1763_v25  ;;  %v2055_v25 = vand.u32 15, %v1860_v47 }
 0x28e   : > { %v1409_v20 = vpop.f32.mrf.mxu2 }
 0x28f   : > { %1825 = vst [vmem:[%s4039_s11 + $0xb0] sm:$0xff] %v1796_v28  ;;  %v2405_v0 = vadd.f32 %v2404_v11, %v1796_v28  ;;  %v2440_v33 = vmul.f32 %v1796_v28, %v1796_v28  ;;  %v1450_v22 = vadd.f32 %v1409_v20, %v1300_v10  ;;  %vm2266_vm15 = vcmp.lt.s32.totalorder %v2055_v25, 14 }
 0x290   : > { %v1262_v63 = vpop.f32.mrf.mxu1  ;;  %v1573_v30 = vpop.f32.mrf.mxu3 }
 0x291   : > { %v2468_v49 = vadd.f32 %v2467_v59, %v2440_v33  ;;  %v1608_v50 = vadd.f32 %v1567_v56, %v1450_v22  ;;  %v1301_v3 = vadd.f32 %v1262_v63, %v3990_v39  ;;  %v2721_v63 = vsel %vm2266_vm15, 1.0, %v2817_v61 }
 0x293   : > { %v1764_v24 = vadd.f32 %v1723_v40, %v1608_v50 }
 0x294   : > { %v1726_v26 = vpop.f32.mrf.mxu0 }
 0x295   : > { %v1797_v31 = vadd.f32 %v4031_v16, %v1764_v24 }
 0x296   : > { %v1412_v15 = vpop.f32.mrf.mxu2 }
 0x297   : > { %1826 = vst [vmem:[%s4039_s11 + $0xb8] sm:$0xff] %v1797_v31  ;;  %v2378_v7 = vmul.f32 %v2719_v1, %v1797_v31  ;;  %v1451_v57 = vadd.f32 %v1412_v15, %v1301_v3 }
 0x298   : > { %v1265_v44 = vpop.f32.mrf.mxu1  ;;  %v1576_v62 = vpop.f32.mrf.mxu3 }
 0x299   : > { %v2441_v19 = vmul.f32 %v2378_v7, %v1797_v31  ;;  %v1609_v5 = vadd.f32 %v1570_v58, %v1451_v57  ;;  %v2406_v27 = vadd.f32 %v2405_v0, %v2378_v7  ;;  %v1302_v60 = vadd.f32 %v1265_v44, %v3997_v37 }
 0x29b   : > { %v2469_v13 = vadd.f32 %v2468_v49, %v2441_v19  ;;  %v1765_v21 = vadd.f32 %v1726_v26, %v1609_v5 }
 0x29c   : > { %v1729_v45 = vpop.f32.mrf.mxu0 }
 0x29d   : > { %v1798_v39 = vadd.f32 %v4031_v16, %v1765_v21 }
 0x29e   : > { %v1415_v23 = vpop.f32.mrf.mxu2 }
 0x29f   : > { %1827 = vst [vmem:[%s4039_s11 + $0xc0] sm:$0xff] %v1798_v39  ;;  %v2407_v12 = vadd.f32 %v2406_v27, %v1798_v39  ;;  %v2442_v17 = vmul.f32 %v1798_v39, %v1798_v39  ;;  %v1452_v51 = vadd.f32 %v1415_v23, %v1302_v60 }
 0x2a0   : > { %v1268_v14 = vpop.f32.mrf.mxu1  ;;  %v1579_v42 = vpop.f32.mrf.mxu3 }
 0x2a1   : > { %v2470_v18 = vadd.f32 %v2469_v13, %v2442_v17  ;;  %v1610_v8 = vadd.f32 %v1573_v30, %v1452_v51  ;;  %v1303_v37 = vadd.f32 %v1268_v14, %v4004_v2 }
 0x2a3   : > { %v1766_v55 = vadd.f32 %v1729_v45, %v1610_v8 }
 0x2a4   : > { %v1732_v52 = vpop.f32.mrf.mxu0 }
 0x2a5   : > { %v1799_v56 = vadd.f32 %v4031_v16, %v1766_v55 }
 0x2a6   : > { %v1418_v36 = vpop.f32.mrf.mxu2 }
 0x2a7   : > { %1828 = vst [vmem:[%s4039_s11 + $0xc8] sm:$0xff] %v1799_v56  ;;  %v2380_v53 = vmul.f32 %v2720_v34, %v1799_v56  ;;  %v1453_v6 = vadd.f32 %v1418_v36, %v1303_v37 }
 0x2a8   : > { %v1271_v48 = vpop.f32.mrf.mxu1  ;;  %v1582_v24 = vpop.f32.mrf.mxu3 }
 0x2a9   : > { %v2443_v46 = vmul.f32 %v2380_v53, %v1799_v56  ;;  %v1611_v9 = vadd.f32 %v1576_v62, %v1453_v6  ;;  %v2408_v4 = vadd.f32 %v2407_v12, %v2380_v53  ;;  %v1304_v59 = vadd.f32 %v1271_v48, %v4011_v29 }
 0x2ab   : > { %v2471_v41 = vadd.f32 %v2470_v18, %v2443_v46  ;;  %v1767_v11 = vadd.f32 %v1732_v52, %v1611_v9 }
 0x2ac   : > { %v1735_v10 = vpop.f32.mrf.mxu0 }
 0x2ad   : > { %v1800_v2 = vadd.f32 %v4031_v16, %v1767_v11 }
 0x2ae   : > { %v1421_v40 = vpop.f32.mrf.mxu2 }
 0x2af   : > { %1829 = vst [vmem:[%s4039_s11 + $0xd0] sm:$0xff] %v1800_v2  ;;  %v2409_v28 = vadd.f32 %v2408_v4, %v1800_v2  ;;  %v2444_v43 = vmul.f32 %v1800_v2, %v1800_v2  ;;  %v1454_v20 = vadd.f32 %v1421_v40, %v1304_v59 }
 0x2b0   : > { %v1274_v33 = vpop.f32.mrf.mxu1 }
 0x2b1   : > { %v2472_v58 = vadd.f32 %v2471_v41, %v2444_v43  ;;  %v1612_v0 = vadd.f32 %v1579_v42, %v1454_v20  ;;  %v1305_v29 = vadd.f32 %v1274_v33, %v4018_v54 }
 0x2b3   : > { %v1768_v22 = vadd.f32 %v1735_v10, %v1612_v0 }
 0x2b4   : > { %v1738_v3 = vpop.f32.mrf.mxu0 }
 0x2b5   : > { %v1801_v49 = vadd.f32 %v4031_v16, %v1768_v22 }
 0x2b6   : > { %v1424_v50 = vpop.f32.mrf.mxu2 }
 0x2b7   : > { %1830 = vst [vmem:[%s4039_s11 + $0xd8] sm:$0xff] %v1801_v49  ;;  %v2382_v1 = vmul.f32 %v2721_v63, %v1801_v49  ;;  %v1455_v26 = vadd.f32 %v1424_v50, %v1305_v29 }
 0x2b9   : > { %v2410_v31 = vadd.f32 %v2409_v28, %v2382_v1  ;;  %v2445_v15 = vmul.f32 %v2382_v1, %v1801_v49  ;;  %v1613_v7 = vadd.f32 %v1582_v24, %v1455_v26 }
 0x2bb   : > { %v2473_v57 = vadd.f32 %v2472_v58, %v2445_v15  ;;  %v1769_v44 = vadd.f32 %v1738_v3, %v1613_v7 }
 0x2bd   : > { %v1802_v30 = vadd.f32 %v4031_v16, %v1769_v44 }
 0x2bf   : > { %1831 = vst [vmem:[%s4039_s11 + $0xe0] sm:$0xff] %v1802_v30  ;;  %v2383_v61 = vmul.f32 0.0, %v1802_v30 }
 0x2c1   : > { %v2411_v19 = vadd.f32 %v2410_v31, %v2383_v61  ;;  %v2446_v54 = vmul.f32 %v2383_v61, %v1802_v30 }
 0x2c3   : > { %v2412_v5 = vrot.slane %v2411_v19, 4  ;;  %v2474_v27 = vadd.f32 %v2473_v57, %v2446_v54 }
 0x2c5   : > { %v2413_v38 = vadd.f32 %v2412_v5, %v2411_v19  ;;  %v2475_v13 = vrot.slane %v2474_v27, 4 }
 0x2c7   : > { %v2414_v21 = vrot.slane %v2413_v38, 2  ;;  %v2476_v45 = vadd.f32 %v2475_v13, %v2474_v27 }
 0x2c9   : > { %v2415_v60 = vadd.f32 %v2414_v21, %v2413_v38  ;;  %v2477_v39 = vrot.slane %v2476_v45, 2 }
 0x2cb   : > { %v2478_v32 = vadd.f32 %v2477_v39, %v2476_v45  ;;  %v2416_v23 = vrot.slane %v2415_v60, 1 }
 0x2cd   : > { %v2479_v12 = vrot.slane %v2478_v32, 1  ;;  %v2417_v16 = vadd.f32 %v2416_v23, %v2415_v60 }
 0x2cf   : > { %v2480_v17 = vadd.f32 %v2479_v12, %v2478_v32 }
 0x2d1   : > { %v2483_v51 = vsel %vm2482_vm0, %v2480_v17, 0.0 }
 0x2d2   : > { %v2484_v14 = vsel %vm2481_vm1, %v2417_v16, %v2483_v51 }
 0x2d3   : > { %2485 = vst [vmem:[%s208_s14] sm:$0xff] %v2484_v14 }
 0x2d4 PF: > { %s15_s15 = sadd.s32 1, %s2815_s15  }
 0x2d5   : > { %p12_p4 = scmp.ge.s32.totalorder %s15_s15, 4  }
 0x2d7   :  { %14 = sbr.rel (!%p12_p4) target bundleno = 1 (0x1), region = 82 }

// kernel: decoder_block.4
= control target key start
LH: loop header
LB: loop body
LE: loop exit
PB: predicated region body
PF: predicated region fallthrough
CT: control target
= control target key end

     0   :  { %s2649_s21 = smov 0   ;;  %s3990_s0 = inlined_call_operand.vmem [shape: f32[2,232,128], index: 0, kind: input, shape index: {}]   ;;  %s3991_s1 = inlined_call_operand.vmem [shape: f32[1,128], index: 1, kind: input, shape index: {}]   ;;  %s3992_s2 = inlined_call_operand.vmem [shape: f32[1,128], index: 2, kind: input, shape index: {}]   ;;  %s3993_s3 = inlined_call_operand.vmem [shape: f32[9,128,128], index: 3, kind: input, shape index: {}]   ;;  %s3994_s4 = inlined_call_operand.vmem [shape: f32[1,128], index: 4, kind: input, shape index: {}]   ;;  %s3995_s5 = inlined_call_operand.vmem [shape: f32[2,192,128], index: 5, kind: output, shape index: {0}]   ;;  %s3996_s6 = inlined_call_operand.vmem [shape: f32[2,8,128], index: 6, kind: output, shape index: {1}]  }
   0x1 LB: > { %s2391_s22 = sadd.s32 4294967295, %s2611_s21   ;;  %p2395_p0 = scmp.ge.s32.totalorder %s2611_s21, 1  ;;  %s2611_s21 = sphi %s2649_s21, %s17_s21  }
   0x2   : > { %p215_p1 = scmp.lt.s32.totalorder %s2611_s21, 3 }
   0x4   : > { %p216_p2 = pnand %p2395_p0, %p215_p1 }
   0x6   : > { %219 = sbr.rel (%p216_p2) target bundleno = 628 (0x274), region = 40 }
   0xb   : > { %v2414_v0 = vld [vmem:[%s3993_s3 + $0xf8] sm:$0xff]  ;;  %v2413_v1 = vld [vmem:[%s3993_s3 + $0xf0] sm:$0xff]  ;;  %p249_p3 = scmp.lt.s32.totalorder %s2391_s22, 1  ;;  %v2412_v2 = vld [vmem:[%s3993_s3 + $0xe8] sm:$0xff]  ;;  %vm445_vm0 = vcmask 1046528   ;;  %vm714_vm1 = vcmask 1045504  }
   0xc   : > { %2541 = vmatpush.msra.mxu1 %v2414_v0  ;;  %2542 = vmatpush.msra.mxu2 %v2414_v0  ;;  %v2411_v3 = vld [vmem:[%s3993_s3 + $0xe0] sm:$0xff]  ;;  %v2410_v4 = vld [vmem:[%s3993_s3 + $0xd8] sm:$0xff]  ;;  %v2409_v5 = vld [vmem:[%s3993_s3 + $0xd0] sm:$0xff] }
   0xd   : > { %2543 = vmatpush.msra.mxu3 %v2414_v0  ;;  %519 = vmatpush.msra.mxu0 %v2414_v0  ;;  %s4123_s22 = smov (!%p249_p3, %s2391_s22), 1  ;;  %v2686_v6 = vld [vmem:[%s3991_s1] ss:$0 sm:$0xff]  ;;  %v2408_v7 = vld [vmem:[%s3993_s3 + $0xc8] sm:$0xff]  ;;  %v2406_v20 = vld [vmem:[%s3993_s3 + $0xb8] sm:$0xff] }
   0xe   : > { %2544 = vmatpush.msra.mxu1 %v2413_v1  ;;  %2545 = vmatpush.msra.mxu2 %v2413_v1  ;;  %s2589_s7 = smul.u32 232, %s4123_s22  ;;  %v2407_v14 = vld [vmem:[%s3993_s3 + $0xc0] sm:$0xff]  ;;  %v2405_v23 = vld [vmem:[%s3993_s3 + $0xb0] sm:$0xff]  ;;  %v2404_v31 = vld [vmem:[%s3993_s3 + $0xa8] sm:$0xff] }
   0xf   : > { %2546 = vmatpush.msra.mxu3 %v2413_v1  ;;  %520 = vmatpush.msra.mxu0 %v2413_v1  ;;  %v2704_v16 = vld [vmem:[%s3992_s2] ss:$0 sm:$0xff]  ;;  %v2402_v45 = vld [vmem:[%s3993_s3 + $0x98] sm:$0xff]  ;;  %v2401_v51 = vld [vmem:[%s3993_s3 + $0x90] sm:$0xff]  ;;  %s2590_s28 = smul.u32 192, %s4123_s22 }
  0x10   : > { %2547 = vmatpush.msra.mxu1 %v2412_v2  ;;  %2548 = vmatpush.msra.mxu2 %v2412_v2  ;;  %s2678_s12 = scalar_lea.vmem %s3990_s0, %s2589_s7  ;;  %v2403_v38 = vld [vmem:[%s3993_s3 + $0xa0] sm:$0xff]  ;;  %v2400_v61 = vld [vmem:[%s3993_s3 + $0x88] sm:$0xff] }
  0x11   : > { %2549 = vmatpush.msra.mxu3 %v2412_v2  ;;  %521 = vmatpush.msra.mxu0 %v2412_v2  ;;  %v269_v8 = vld [vmem:[%s2678_s12 + $0x30] sm:$0xff]  ;;  %v270_v9 = vld [vmem:[%s2678_s12 + $0x38] sm:$0xff]  ;;  %v275_v10 = vld [vmem:[%s2678_s12 + $0x60] sm:$0xff]  ;;  %s3845_s9 = scalar_lea.vmem %s3995_s5, %s2590_s28 }
  0x12   : > { %2550 = vmatpush.msra.mxu1 %v2411_v3  ;;  %2551 = vmatpush.msra.mxu2 %v2411_v3  ;;  %v276_v11 = vld [vmem:[%s2678_s12 + $0x68] sm:$0xff]  ;;  %v281_v12 = vld [vmem:[%s2678_s12 + $0x90] sm:$0xff]  ;;  %v282_v13 = vld [vmem:[%s2678_s12 + $0x98] sm:$0xff]  ;;  %v302_v15 = vmul.f32 %v2686_v6, %v269_v8  ;;  %v303_v17 = vmul.f32 %v2686_v6, %v270_v9  ;;  %v308_v18 = vmul.f32 %v2686_v6, %v275_v10 }
  0x13   : > { %2552 = vmatpush.msra.mxu3 %v2411_v3  ;;  %522 = vmatpush.msra.mxu0 %v2411_v3  ;;  %v309_v19 = vmul.f32 %v2686_v6, %v276_v11  ;;  %v314_v21 = vmul.f32 %v2686_v6, %v281_v12  ;;  %v315_v22 = vmul.f32 %v2686_v6, %v282_v13  ;;  %v263_v25 = vld [vmem:[%s2678_s12] sm:$0xff]  ;;  %v264_v26 = vld [vmem:[%s2678_s12 + $0x8] sm:$0xff]  ;;  %v277_v34 = vld [vmem:[%s2678_s12 + $0x70] sm:$0xff] }
  0x14   : > { %2553 = vmatpush.msra.mxu1 %v2410_v4  ;;  %2554 = vmatpush.msra.mxu2 %v2410_v4  ;;  %v335_v24 = vadd.f32 %v2704_v16, %v302_v15  ;;  %v336_v27 = vadd.f32 %v2704_v16, %v303_v17  ;;  %v341_v28 = vadd.f32 %v2704_v16, %v308_v18  ;;  %v271_v30 = vld [vmem:[%s2678_s12 + $0x40] sm:$0xff]  ;;  %v265_v54 = vld [vmem:[%s2678_s12 + $0x10] sm:$0xff]  ;;  %v272_v59 = vld [vmem:[%s2678_s12 + $0x48] sm:$0xff] }
  0x15   : > { %2555 = vmatpush.msra.mxu3 %v2410_v4  ;;  %523 = vmatpush.msra.mxu0 %v2410_v4  ;;  %v342_v29 = vadd.f32 %v2704_v16, %v309_v19  ;;  %v347_v32 = vadd.f32 %v2704_v16, %v314_v21  ;;  %v348_v33 = vadd.f32 %v2704_v16, %v315_v22  ;;  %v283_v37 = vld [vmem:[%s2678_s12 + $0xa0] sm:$0xff]  ;;  %v278_v60 = vld [vmem:[%s2678_s12 + $0x78] sm:$0xff]  ;;  %v284_v9 = vld [vmem:[%s2678_s12 + $0xa8] sm:$0xff] }
  0x16   : > { %2556 = vmatpush.msra.mxu1 %v2409_v5  ;;  %2557 = vmatpush.msra.mxu2 %v2409_v5  ;;  %v296_v35 = vmul.f32 %v2686_v6, %v263_v25  ;;  %v297_v36 = vmul.f32 %v2686_v6, %v264_v26  ;;  %v2736_v39 = vmax.f32 %v335_v24, 0.0  ;;  %v304_v40 = vmul.f32 %v2686_v6, %v271_v30  ;;  %v2399_v4 = vld [vmem:[%s3993_s3 + $0x80] sm:$0xff]  ;;  %v2430_v13 = vld [vmem:[%s3993_s3 + $0x178] sm:$0xff] }
  0x17   : > { %2558 = vmatpush.msra.mxu3 %v2409_v5  ;;  %524 = vmatpush.msra.mxu0 %v2409_v5  ;;  %v2739_v41 = vmax.f32 %v336_v27, 0.0  ;;  %v2741_v42 = vmax.f32 %v341_v28, 0.0  ;;  %v2743_v43 = vmax.f32 %v342_v29, 0.0  ;;  %v310_v44 = vmul.f32 %v2686_v6, %v277_v34  ;;  %v402_v17 = vld [vmem:[%s3993_s3 + $0x78] sm:$0xff]  ;;  %v2445_v28 = vld [vmem:[%s3993_s3 + $0x1f0] sm:$0xff]  ;;  %v279_v34 = vld [vmem:[%s2678_s12 + $0x80] sm:$0xff] }
  0x18   : > { %2559 = vmatpush.msra.mxu1 %v2408_v7  ;;  %2560 = vmatpush.msra.mxu2 %v2408_v7  ;;  %v2749_v46 = vmax.f32 %v347_v32, 0.0  ;;  %v2751_v47 = vmax.f32 %v348_v33, 0.0  ;;  %v316_v48 = vmul.f32 %v2686_v6, %v283_v37  ;;  %v329_v49 = vadd.f32 %v2704_v16, %v296_v35  ;;  %v2446_v22 = vld [vmem:[%s3993_s3 + $0x1f8] sm:$0xff]  ;;  %v401_v29 = vld [vmem:[%s3993_s3 + $0x70] sm:$0xff] }
  0x19   : > { %2561 = vmatpush.msra.mxu3 %v2408_v7  ;;  %525 = vmatpush.msra.mxu0 %v2408_v7  ;;  %4037 = vst [vmem:[#allocation2_spill] sm:$0xff] %v2741_v42  ;;  %v330_v50 = vadd.f32 %v2704_v16, %v297_v36  ;;  %v457_v52 = vrot.slane %v2736_v39, 1  ;;  %v337_v53 = vadd.f32 %v2704_v16, %v304_v40  ;;  %v459_v55 = vrot.slane %v2739_v41, 1  ;;  %v266_v27 = vld [vmem:[%s2678_s12 + $0x18] sm:$0xff]  ;;  %v273_v33 = vld [vmem:[%s2678_s12 + $0x50] sm:$0xff]  ;;  %v400_v36 = vld [vmem:[%s3993_s3 + $0x68] sm:$0xff] }
  0x1a   : > { %2562 = vmatpush.msra.mxu1 %v2407_v14  ;;  %2563 = vmatpush.msra.mxu2 %v2407_v14  ;;  %4038 = vst [vmem:[#allocation3_spill] sm:$0xff] %v2743_v43  ;;  %v469_v56 = vrot.slane %v2741_v42, 1  ;;  %v471_v57 = vrot.slane %v2743_v43, 1  ;;  %v343_v58 = vadd.f32 %v2704_v16, %v310_v44  ;;  %v481_v62 = vrot.slane %v2749_v46, 1  ;;  %v285_v44 = vld [vmem:[%s2678_s12 + $0xb0] sm:$0xff] }
  0x1b   : > { %2564 = vmatpush.msra.mxu3 %v2407_v14  ;;  %526 = vmatpush.msra.mxu0 %v2407_v14  ;;  %v483_v63 = vrot.slane %v2751_v47, 1  ;;  %v349_v0 = vadd.f32 %v2704_v16, %v316_v48  ;;  %v2774_v1 = vmax.f32 %v329_v49, 0.0  ;;  %v2776_v2 = vmax.f32 %v330_v50, 0.0  ;;  %v2444_v48 = vld [vmem:[%s3993_s3 + $0x1e8] sm:$0xff]  ;;  %v2427_v49 = vld [vmem:[%s3993_s3 + $0x160] sm:$0xff] }
  0x1c   : > { %2565 = vmatpush.msra.mxu1 %v2406_v20  ;;  %2566 = vmatpush.msra.mxu2 %v2406_v20  ;;  %v298_v3 = vmul.f32 %v2686_v6, %v265_v54  ;;  %v2782_v5 = vmax.f32 %v337_v53, 0.0  ;;  %v305_v7 = vmul.f32 %v2686_v6, %v272_v59  ;;  %v311_v8 = vmul.f32 %v2686_v6, %v278_v60  ;;  %v2443_v59 = vld [vmem:[%s3993_s3 + $0x1e0] sm:$0xff] }
  0x1d   : > { %2567 = vmatpush.msra.mxu3 %v2406_v20  ;;  %527 = vmatpush.msra.mxu0 %v2406_v20  ;;  %v2792_v10 = vsel %vm445_vm0, %v457_v52, %v459_v55  ;;  %v2799_v11 = vsel %vm445_vm0, %v469_v56, %v471_v57  ;;  %v2801_v12 = vmax.f32 %v343_v58, 0.0  ;;  %v2811_v14 = vsel %vm445_vm0, %v481_v62, %v483_v63  ;;  %v2462_v58 = vld [vmem:[%s3993_s3 + $0x278] sm:$0xff] }
  0x1e   : > { %2568 = vmatpush.msra.mxu1 %v2405_v23  ;;  %2569 = vmatpush.msra.mxu2 %v2405_v23  ;;  %4039 = vst [vmem:[#allocation4_spill] sm:$0xff] %v2799_v11  ;;  %v2813_v15 = vmax.f32 %v349_v0, 0.0  ;;  %v446_v18 = vrot.slane %v2774_v1, 1  ;;  %v447_v19 = vrot.slane %v2776_v2, 1  ;;  %v331_v20 = vadd.f32 %v2704_v16, %v298_v3 }
  0x1f   : > { %2570 = vmatpush.msra.mxu3 %v2405_v23  ;;  %528 = vmatpush.msra.mxu0 %v2405_v23  ;;  %4040 = vst [vmem:[#allocation5_spill] sm:$0xff] %v2801_v12  ;;  %v317_v21 = vmul.f32 %v2686_v6, %v284_v9  ;;  %v2429_v23 = vld [vmem:[%s3993_s3 + $0x170] sm:$0xff]  ;;  %v461_v24 = vrot.slane %v2782_v5, 1  ;;  %v338_v25 = vadd.f32 %v2704_v16, %v305_v7  ;;  %v473_v30 = vrot.slane %v2801_v12, 1  ;;  %v399_v7 = vld [vmem:[%s3993_s3 + $0x60] sm:$0xff] }
  0x20   : > { %2571 = vmatpush.msra.mxu1 %v2404_v31  ;;  %2572 = vmatpush.msra.mxu2 %v2404_v31  ;;  %v344_v26 = vadd.f32 %v2704_v16, %v311_v8  ;;  %v485_v32 = vrot.slane %v2813_v15, 1  ;;  %v448_v35 = vsel %vm445_vm0, %v446_v18, %v447_v19  ;;  %v2854_v37 = vmax.f32 %v331_v20, 0.0  ;;  %v2425_v18 = vld [vmem:[%s3993_s3 + $0x150] sm:$0xff]  ;;  %v398_v20 = vld [vmem:[%s3993_s3 + $0x58] sm:$0xff] }
  0x21   : > { %2573 = vmatpush.msra.mxu3 %v2404_v31  ;;  %529 = vmatpush.msra.mxu0 %v2404_v31  ;;  %v2428_v31 = vld [vmem:[%s3993_s3 + $0x168] sm:$0xff]  ;;  %v299_v40 = vmul.f32 %v2686_v6, %v266_v27  ;;  %v2872_v50 = vmax.f32 %v338_v25, 0.0  ;;  %v2881_v53 = vsel %vm445_vm0, %v471_v57, %v473_v30  ;;  %v306_v54 = vmul.f32 %v2686_v6, %v273_v33 }
  0x22   : > { %2574 = vmatpush.msra.mxu1 %v2403_v38  ;;  %2575 = vmatpush.msra.mxu2 %v2403_v38  ;;  %4042 = vst [vmem:[#allocation7_spill] sm:$0xff] %v2881_v53  ;;  %v318_v60 = vmul.f32 %v2686_v6, %v285_v44  ;;  %v2897_v57 = vsel %vm445_vm0, %v483_v63, %v485_v32  ;;  %v449_v0 = vrot.slane %v2854_v37, 1  ;;  %v2461_v63 = vld [vmem:[%s3993_s3 + $0x270] sm:$0xff]  ;;  %v280_v27 = vld [vmem:[%s2678_s12 + $0x88] sm:$0xff] }
  0x23   : > { %2576 = vmatpush.msra.mxu3 %v2403_v38  ;;  %530 = vmatpush.msra.mxu0 %v2403_v38  ;;  %v350_v38 = vadd.f32 %v2704_v16, %v317_v21  ;;  %v463_v8 = vrot.slane %v2872_v50, 1  ;;  %v339_v21 = vadd.f32 %v2704_v16, %v306_v54  ;;  %v2440_v54 = vld [vmem:[%s3993_s3 + $0x1c8] sm:$0xff] }
  0x24   : > { %2577 = vmatpush.msra.mxu1 %v2402_v45  ;;  %2578 = vmatpush.msra.mxu2 %v2402_v45  ;;  %v351_v25 = vadd.f32 %v2704_v16, %v318_v60 }
  0x25   : > { %2579 = vmatpush.msra.mxu3 %v2402_v45  ;;  %531 = vmatpush.msra.mxu0 %v2402_v45  ;;  %v2864_v45 = vsel %vm445_vm0, %v459_v55, %v461_v24  ;;  %v312_v55 = vmul.f32 %v2686_v6, %v279_v34  ;;  %v2903_v3 = vmax.f32 %v350_v38, 0.0  ;;  %v397_v38 = vld [vmem:[%s3993_s3 + $0x50] sm:$0xff] }
  0x26   : > { %2580 = vmatpush.msra.mxu1 %v2401_v51  ;;  %2581 = vmatpush.msra.mxu2 %v2401_v51 }
  0x27   : > { %2582 = vmatpush.msra.mxu3 %v2401_v51  ;;  %532 = vmatpush.msra.mxu0 %v2401_v51  ;;  %v2874_v51 = vmax.f32 %v344_v26, 0.0  ;;  %4043 = vst [vmem:[#allocation8_spill] sm:$0xff] %v2903_v3  ;;  %v274_v26 = vld [vmem:[%s2678_s12 + $0x58] sm:$0xff] }
  0x28   : > { %2583 = vmatpush.msra.mxu1 %v2400_v61  ;;  %2584 = vmatpush.msra.mxu2 %v2400_v61 }
  0x29   : > { %2585 = vmatpush.msra.mxu3 %v2400_v61  ;;  %533 = vmatpush.msra.mxu0 %v2400_v61  ;;  %4041 = vst [vmem:[#allocation6_spill] sm:$0xff] %v2874_v51  ;;  %v2426_v61 = vld [vmem:[%s3993_s3 + $0x158] sm:$0xff]  ;;  %v475_v9 = vrot.slane %v2874_v51, 1 }
  0x2a   : > { %2586 = vmatpush.msra.mxu1 %v2399_v4  ;;  %2587 = vmatpush.msra.mxu2 %v2399_v4 }
  0x2b   : > { %553 = vmatmul.f32.vlgmr.msra.gmra.mxu1 %v2792_v10  ;;  %571 = vmatmul.f32.vlgmr.msra.gmra.mxu2 %v2799_v11 }
  0x2c   : > { %788 = vmatpush.msrb.mxu2 %v2430_v13  ;;  %2588 = vmatpush.msra.mxu3 %v2399_v4  ;;  %v267_v13 = vld [vmem:[%s2678_s12 + $0x20] sm:$0xff] }
  0x2d   : > { %589 = vmatmul.f32.vlgmr.msra.gmra.mxu3 %v2811_v14  ;;  %608 = vmatpush.msrb.mxu1 %v402_v17  ;;  %v2442_v17 = vld [vmem:[%s3993_s3 + $0x1d8] sm:$0xff]  ;;  %v300_v34 = vmul.f32 %v2686_v6, %v267_v13  ;;  %v2439_v13 = vld [vmem:[%s3993_s3 + $0x1c0] sm:$0xff] }
  0x2e   : > { %918 = vmatpush.msrb.mxu3 %v2446_v22  ;;  %789 = vmatpush.msrb.mxu2 %v2429_v23  ;;  %v345_v22 = vadd.f32 %v2704_v16, %v312_v55  ;;  %v2460_v23 = vld [vmem:[%s3993_s3 + $0x268] sm:$0xff]  ;;  %v2980_v55 = vmax.f32 %v351_v25, 0.0  ;;  %v2457_v25 = vld [vmem:[%s3993_s3 + $0x250] sm:$0xff] }
  0x2f   : > { %609 = vmatpush.msrb.mxu1 %v401_v29  ;;  %534 = vmatpush.msra.mxu0 %v2399_v4  ;;  %v332_v4 = vadd.f32 %v2704_v16, %v299_v40  ;;  %v450_v29 = vsel %vm445_vm0, %v447_v19, %v449_v0  ;;  %v2959_v19 = vsel %vm445_vm0, %v473_v30, %v475_v9  ;;  %v286_v40 = vld [vmem:[%s2678_s12 + $0xb8] sm:$0xff] }
  0x30   : > { %919 = vmatpush.msrb.mxu3 %v2445_v28  ;;  %790 = vmatpush.msrb.mxu2 %v2428_v31  ;;  %v2441_v28 = vld [vmem:[%s3993_s3 + $0x1d0] sm:$0xff]  ;;  %v487_v31 = vrot.slane %v2903_v3, 1  ;;  %4044 = vst [vmem:[#allocation9_spill] sm:$0xff] %v2959_v19  ;;  %v2970_v44 = vmax.f32 %v345_v22, 0.0  ;;  %v313_v30 = vmul.f32 %v2686_v6, %v280_v27 }
  0x31   : > { %535 = vmatmul.f32.vlgmr.msra.gmra.mxu0 %v448_v35  ;;  %610 = vmatpush.msrb.mxu1 %v400_v36  ;;  %v2944_v33 = vmax.f32 %v332_v4, 0.0  ;;  %v2952_v35 = vsel %vm445_vm0, %v461_v24, %v463_v8  ;;  %v2424_v36 = vld [vmem:[%s3993_s3 + $0x148] sm:$0xff]  ;;  %v2968_v24 = vmax.f32 %v339_v21, 0.0  ;;  %v319_v4 = vmul.f32 %v2686_v6, %v286_v40  ;;  %v2421_v40 = vld [vmem:[%s3993_s3 + $0x130] sm:$0xff] }
  0x32   : > { %920 = vmatpush.msrb.mxu3 %v2444_v48  ;;  %791 = vmatpush.msrb.mxu2 %v2427_v49  ;;  %4045 = vst [vmem:[#allocation10_spill] sm:$0xff] %v2970_v44  ;;  %v307_v48 = vmul.f32 %v2686_v6, %v274_v26  ;;  %v2459_v49 = vld [vmem:[%s3993_s3 + $0x260] sm:$0xff]  ;;  %v346_v22 = vadd.f32 %v2704_v16, %v313_v30  ;;  %v489_v26 = vrot.slane %v2980_v55, 1 }
  0x33   : > { %556 = vmatmul.f32.gmra.mxu1 %v2864_v45  ;;  %574 = vmatmul.f32.gmra.mxu2 %v2881_v53  ;;  %v451_v60 = vrot.slane %v2944_v33, 1 }
  0x34   : > { %1056 = vmatpush.msrb.mxu0 %v2462_v58  ;;  %921 = vmatpush.msrb.mxu3 %v2443_v59  ;;  %v2987_v58 = vsel %vm445_vm0, %v485_v32, %v487_v31  ;;  %v2423_v59 = vld [vmem:[%s3993_s3 + $0x140] sm:$0xff]  ;;  %v396_v32 = vld [vmem:[%s3993_s3 + $0x48] sm:$0xff]  ;;  %v340_v21 = vadd.f32 %v2704_v16, %v307_v48 }
  0x35   : > { %592 = vmatmul.f32.gmra.mxu3 %v2897_v57  ;;  %792 = vmatpush.msrb.mxu2 %v2426_v61  ;;  %4046 = vst [vmem:[#allocation11_spill] sm:$0xff] %v2987_v58  ;;  %v333_v61 = vadd.f32 %v2704_v16, %v300_v34  ;;  %v3027_v27 = vsel %vm445_vm0, %v449_v0, %v451_v60  ;;  %v394_v0 = vld [vmem:[%s3993_s3 + $0x38] sm:$0xff] }
  0x36   : > { %611 = vmatpush.msrb.mxu1 %v399_v7  ;;  %1057 = vmatpush.msrb.mxu0 %v2461_v63  ;;  %v2458_v7 = vld [vmem:[%s3993_s3 + $0x258] sm:$0xff]  ;;  %v268_v63 = vld [vmem:[%s2678_s12 + $0x28] sm:$0xff]  ;;  %v352_v34 = vadd.f32 %v2704_v16, %v319_v4 }
  0x37   : > { %922 = vmatpush.msrb.mxu3 %v2442_v17  ;;  %793 = vmatpush.msrb.mxu2 %v2425_v18  ;;  %v465_v17 = vrot.slane %v2968_v24, 1  ;;  %v477_v18 = vrot.slane %v2970_v44, 1  ;;  %v2420_v4 = vld [vmem:[%s3993_s3 + $0x128] sm:$0xff] }
  0x38   : > { %612 = vmatpush.msrb.mxu1 %v398_v20  ;;  %1058 = vmatpush.msrb.mxu0 %v2460_v23  ;;  %v2422_v20 = vld [vmem:[%s3993_s3 + $0x138] sm:$0xff]  ;;  %v395_v23 = vld [vmem:[%s3993_s3 + $0x40] sm:$0xff] }
  0x39   : > { %923 = vmatpush.msrb.mxu3 %v2441_v28  ;;  %538 = vmatmul.f32.gmra.mxu0 %v450_v29  ;;  %v2438_v28 = vld [vmem:[%s3993_s3 + $0x1b8] sm:$0xff]  ;;  %v3032_v29 = vmax.f32 %v333_v61, 0.0  ;;  %v3048_v48 = vsel %vm445_vm0, %v463_v8, %v465_v17  ;;  %v3055_v30 = vsel %vm445_vm0, %v475_v9, %v477_v18  ;;  %v2456_v8 = vld [vmem:[%s3993_s3 + $0x248] sm:$0xff]  ;;  %v3074_v61 = vsel %vm445_vm0, %v487_v31, %v489_v26  ;;  %v2455_v31 = vld [vmem:[%s3993_s3 + $0x240] sm:$0xff] }
  0x3a   : > { %794 = vmatpush.msrb.mxu2 %v2424_v36  ;;  %613 = vmatpush.msrb.mxu1 %v397_v38  ;;  %v301_v36 = vmul.f32 %v2686_v6, %v268_v63  ;;  %v287_v38 = vld [vmem:[%s2678_s12 + $0xc0] sm:$0xff]  ;;  %4047 = vst [vmem:[#allocation12_spill] sm:$0xff] %v3055_v30 }
  0x3b   : > { %559 = vmatmul.f32.gmra.mxu1 %v2952_v35  ;;  %577 = vmatmul.f32.gmra.mxu2 %v2959_v19  ;;  %v320_v9 = vmul.f32 %v2686_v6, %v287_v38  ;;  %4049 = vst [vmem:[#allocation14_spill] sm:$0xff] %v3074_v61  ;;  %v393_v6 = vld [vmem:[%s3993_s3 + $0x30] sm:$0xff] }
  0x3c   : > { %1059 = vmatpush.msrb.mxu0 %v2459_v49  ;;  %924 = vmatpush.msrb.mxu3 %v2440_v54  ;;  %v3057_v49 = vmax.f32 %v340_v21, 0.0  ;;  %v3059_v54 = vmax.f32 %v346_v22, 0.0  ;;  %v334_v63 = vadd.f32 %v2704_v16, %v301_v36  ;;  %v2436_v21 = vld [vmem:[%s3993_s3 + $0x1a8] sm:$0xff]  ;;  %v2419_v22 = vld [vmem:[%s3993_s3 + $0x120] sm:$0xff] }
  0x3d   : > { %595 = vmatmul.f32.gmra.mxu3 %v2987_v58  ;;  %795 = vmatpush.msrb.mxu2 %v2423_v59  ;;  %v2437_v59 = vld [vmem:[%s3993_s3 + $0x1b0] sm:$0xff]  ;;  %v2435_v36 = vld [vmem:[%s3993_s3 + $0x1a0] sm:$0xff] }
  0x3e   : > { %614 = vmatpush.msrb.mxu1 %v396_v32  ;;  %1060 = vmatpush.msrb.mxu0 %v2458_v7  ;;  %4048 = vst [vmem:[#allocation13_spill] sm:$0xff] %v3057_v49  ;;  %v453_v32 = vrot.slane %v3032_v29, 1  ;;  %v3080_v7 = vmax.f32 %v352_v34, 0.0  ;;  %v3115_v38 = vmax.f32 %v334_v63, 0.0 }
  0x3f   : > { %925 = vmatpush.msrb.mxu3 %v2439_v13  ;;  %796 = vmatpush.msrb.mxu2 %v2422_v20  ;;  %v467_v13 = vrot.slane %v3057_v49, 1  ;;  %v479_v20 = vrot.slane %v3059_v54, 1 }
  0x40   : > { %615 = vmatpush.msrb.mxu1 %v395_v23  ;;  %1061 = vmatpush.msrb.mxu0 %v2457_v25  ;;  %v392_v23 = vld [vmem:[%s3993_s3 + $0x28] sm:$0xff]  ;;  %v2454_v25 = vld [vmem:[%s3993_s3 + $0x238] sm:$0xff]  ;;  %v491_v34 = vrot.slane %v3080_v7, 1 }
  0x41   : > { %541 = vmatmul.f32.gmra.mxu0 %v3027_v27  ;;  %926 = vmatpush.msrb.mxu3 %v2438_v28  ;;  %v3109_v28 = vsel %vm445_vm0, %v451_v60, %v453_v32  ;;  %v391_v60 = vld [vmem:[%s3993_s3 + $0x20] sm:$0xff] }
  0x42   : > { %797 = vmatpush.msrb.mxu2 %v2421_v40  ;;  %616 = vmatpush.msrb.mxu1 %v394_v0  ;;  %v353_v40 = vadd.f32 %v2704_v16, %v320_v9  ;;  %v2418_v0 = vld [vmem:[%s3993_s3 + $0x118] sm:$0xff]  ;;  %v2453_v16 = vld [vmem:[%s3993_s3 + $0x230] sm:$0xff] }
  0x43   : > { %562 = vmatmul.f32.gmra.mxu1 %v3048_v48  ;;  %580 = vmatmul.f32.gmra.mxu2 %v3055_v30  ;;  %v2434_v9 = vld [vmem:[%s3993_s3 + $0x198] sm:$0xff] }
  0x44   : > { %1062 = vmatpush.msrb.mxu0 %v2456_v8  ;;  %927 = vmatpush.msrb.mxu3 %v2437_v59  ;;  %v3127_v8 = vsel %vm445_vm0, %v465_v17, %v467_v13  ;;  %v3132_v59 = vsel %vm445_vm0, %v477_v18, %v479_v20  ;;  %v3144_v17 = vsel %vm445_vm0, %v489_v26, %v491_v34  ;;  %v2417_v18 = vld [vmem:[%s3993_s3 + $0x110] sm:$0xff]  ;;  %v3150_v63 = vmax.f32 %v353_v40, 0.0  ;;  %v2452_v26 = vld [vmem:[%s3993_s3 + $0x228] sm:$0xff] }
  0x45   : > { %598 = vmatmul.f32.gmra.mxu3 %v3074_v61  ;;  %798 = vmatpush.msrb.mxu2 %v2420_v4  ;;  %4050 = vst [vmem:[#allocation15_spill] sm:$0xff] %v3132_v59  ;;  %v455_v4 = vrot.slane %v3115_v38, 1  ;;  %v2432_v40 = vld [vmem:[%s3993_s3 + $0x188] sm:$0xff] }
  0x46   : > { %617 = vmatpush.msrb.mxu1 %v393_v6  ;;  %1063 = vmatpush.msrb.mxu0 %v2455_v31  ;;  %4051 = vst [vmem:[#allocation16_spill] sm:$0xff] %v3144_v17  ;;  %v390_v6 = vld [vmem:[%s3993_s3 + $0x18] sm:$0xff]  ;;  %v2433_v31 = vld [vmem:[%s3993_s3 + $0x190] sm:$0xff] }
  0x47   : > { %928 = vmatpush.msrb.mxu3 %v2436_v21  ;;  %799 = vmatpush.msrb.mxu2 %v2419_v22  ;;  %v2416_v21 = vld [vmem:[%s3993_s3 + $0x108] sm:$0xff]  ;;  %v389_v22 = vld [vmem:[%s3993_s3 + $0x10] sm:$0xff] }
  0x48   : > { %618 = vmatpush.msrb.mxu1 %v392_v23  ;;  %1064 = vmatpush.msrb.mxu0 %v2454_v25  ;;  %v2451_v23 = vld [vmem:[%s3993_s3 + $0x220] sm:$0xff]  ;;  %v3174_v25 = vsel %vm445_vm0, %v453_v32, %v455_v4  ;;  %v3189_v32 = vsel %vm445_vm0, %v467_v13, %v469_v56 }
  0x49   : > { %544 = vmatmul.f32.gmra.mxu0 %v3109_v28  ;;  %929 = vmatpush.msrb.mxu3 %v2435_v36  ;;  %v3997_v36 = vrot.slane %v3150_v63, 1  ;;  %4052 = vst [vmem:[#allocation17_spill] sm:$0xff] %v3189_v32  ;;  %v2431_v13 = vld [vmem:[%s3993_s3 + $0x180] sm:$0xff] }
  0x4a   : > { %800 = vmatpush.msrb.mxu2 %v2418_v0  ;;  %619 = vmatpush.msrb.mxu1 %v391_v60  ;;  %v388_v0 = vld [vmem:[%s3993_s3 + $0x8] sm:$0xff]  ;;  %v2415_v60 = vld [vmem:[%s3993_s3 + $0x100] sm:$0xff] }
  0x4b   : > { %565 = vmatmul.f32.gmra.mxu1 %v3127_v8  ;;  %583 = vmatmul.f32.gmra.mxu2 %v3132_v59  ;;  %v3206_v56 = vsel %vm445_vm0, %v491_v34, %v3997_v36  ;;  %v715_v34 = vrot.slane %v2774_v1, 2 }
  0x4c   : > { %1065 = vmatpush.msrb.mxu0 %v2453_v16  ;;  %930 = vmatpush.msrb.mxu3 %v2434_v9  ;;  %v3194_v16 = vsel %vm445_vm0, %v479_v20, %v481_v62  ;;  %v2450_v9 = vld [vmem:[%s3993_s3 + $0x218] sm:$0xff]  ;;  %v2449_v20 = vld [vmem:[%s3993_s3 + $0x210] sm:$0xff] }
  0x4d   : > { %601 = vmatmul.f32.gmra.mxu3 %v3144_v17  ;;  %801 = vmatpush.msrb.mxu2 %v2417_v18  ;;  %4053 = vst [vmem:[#allocation18_spill] sm:$0xff] %v3194_v16  ;;  %v387_v18 = vld [vmem:[%s3993_s3] sm:$0xff]  ;;  %v2494_v62 = vld [vmem:[%s3993_s3 + $0x378] sm:$0xff] }
  0x4e   : > { %620 = vmatpush.msrb.mxu1 %v390_v6  ;;  %1066 = vmatpush.msrb.mxu0 %v2452_v26  ;;  %v716_v6 = vrot.slane %v2776_v2, 2  ;;  %v2510_v26 = vld [vmem:[%s3993_s3 + $0x3f8] sm:$0xff] }
  0x4f   : > { %931 = vmatpush.msrb.mxu3 %v2433_v31  ;;  %802 = vmatpush.msrb.mxu2 %v2416_v21  ;;  %v2478_v31 = vld [vmem:[%s3993_s3 + $0x2f8] sm:$0xff]  ;;  %v2448_v21 = vld [vmem:[%s3993_s3 + $0x208] sm:$0xff] }
  0x50   : > { %621 = vmatpush.msrb.mxu1 %v389_v22  ;;  %1067 = vmatpush.msrb.mxu0 %v2451_v23  ;;  %v2493_v22 = vld [vmem:[%s3993_s3 + $0x370] sm:$0xff]  ;;  %v3237_v23 = vsel %vm445_vm0, %v455_v4, %v457_v52  ;;  %v2526_v52 = vld [vmem:[%s3993_s3 + $0x478] sm:$0xff]  ;;  %v2492_v4 = vld [vmem:[%s3993_s3 + $0x368] sm:$0xff] }
  0x51   : > { %547 = vmatmul.f32.gmra.mxu0 %v3174_v25  ;;  %932 = vmatpush.msrb.mxu3 %v2432_v40  ;;  %v2509_v40 = vld [vmem:[%s3993_s3 + $0x3f0] sm:$0xff] }
  0x52   : > { %622 = vmatpush.msrb.mxu1 %v388_v0  ;;  %803 = vmatpush.msrb.mxu2 %v2415_v60  ;;  %v2447_v0 = vld [vmem:[%s3993_s3 + $0x200] sm:$0xff]  ;;  %v2477_v60 = vld [vmem:[%s3993_s3 + $0x2f0] sm:$0xff] }
  0x53   : > { %568 = vmatmul.f32.gmra.mxu1 %v3189_v32  ;;  %586 = vmatmul.f32.gmra.mxu2 %v3194_v16 }
  0x54   : > { %1068 = vmatpush.msrb.mxu0 %v2450_v9  ;;  %623 = vmatpush.msrb.mxu1 %v387_v18  ;;  %v717_v9 = vsel %vm714_vm1, %v715_v34, %v716_v6  ;;  %v2476_v18 = vld [vmem:[%s3993_s3 + $0x2e8] sm:$0xff]  ;;  %v2491_v34 = vld [vmem:[%s3993_s3 + $0x360] sm:$0xff] }
  0x55   : > { %604 = vmatmul.f32.gmra.mxu3 %v3206_v56  ;;  %1322 = vmatpush.msra.mxu2 %v2494_v62  ;;  %v2525_v62 = vld [vmem:[%s3993_s3 + $0x470] sm:$0xff] }
  0x56   : > { %933 = vmatpush.msrb.mxu3 %v2431_v13  ;;  %1069 = vmatpush.msrb.mxu0 %v2449_v20  ;;  %v2508_v13 = vld [vmem:[%s3993_s3 + $0x3e8] sm:$0xff]  ;;  %v718_v20 = vrot.slane %v2854_v37, 2 }
  0x57   : > { %1192 = vmatpush.msra.mxu1 %v2478_v31  ;;  %1323 = vmatpush.msra.mxu2 %v2493_v22  ;;  %v720_v22 = vrot.slane %v2944_v33, 2 }
  0x58   : > { %1460 = vmatpush.msra.mxu3 %v2510_v26  ;;  %1070 = vmatpush.msrb.mxu0 %v2448_v21  ;;  %v2507_v26 = vld [vmem:[%s3993_s3 + $0x3e0] sm:$0xff]  ;;  %v719_v31 = vsel %vm714_vm1, %v716_v6, %v718_v20 }
  0x59   : > { %550 = vmatmul.f32.gmra.mxu0 %v3237_v23  ;;  %1193 = vmatpush.msra.mxu1 %v2477_v60  ;;  %v2475_v21 = vld [vmem:[%s3993_s3 + $0x2e0] sm:$0xff]  ;;  %v724_v60 = vrot.slane %v3115_v38, 2 }
  0x5a   : > { %1461 = vmatpush.msra.mxu3 %v2509_v40  ;;  %1071 = vmatpush.msrb.mxu0 %v2447_v0  ;;  %v2523_v6 = vld [vmem:[%s3993_s3 + $0x460] sm:$0xff]  ;;  %v3289_v40 = vsel %vm714_vm1, %v718_v20, %v720_v22  ;;  %v2506_v0 = vld [vmem:[%s3993_s3 + $0x3d8] sm:$0xff] }
  0x5b   : > { %624 = vmatmul.f32.vlgmr.msrb.gmra.mxu1 %v2774_v1  ;;  %804 = vmatmul.f32.vlgmr.msrb.gmra.mxu2 %v717_v9  ;;  %v2524_v1 = vld [vmem:[%s3993_s3 + $0x468] sm:$0xff]  ;;  %v2522_v9 = vld [vmem:[%s3993_s3 + $0x458] sm:$0xff] }
  0x5c   : > { %1596 = vmatpush.msra.mxu0 %v2526_v52  ;;  %1324 = vmatpush.msra.mxu2 %v2492_v4  ;;  %v2489_v52 = vld [vmem:[%s3993_s3 + $0x350] sm:$0xff] }
  0x5d   : > { %934 = vmatmul.f32.vlgmr.msrb.gmra.mxu3 %v2854_v37  ;;  %1194 = vmatpush.msra.mxu1 %v2476_v18  ;;  %v2505_v4 = vld [vmem:[%s3993_s3 + $0x3d0] sm:$0xff] }
  0x5e   : > { %1597 = vmatpush.msra.mxu0 %v2525_v62  ;;  %1462 = vmatpush.msra.mxu3 %v2508_v13  ;;  %v2473_v18 = vld [vmem:[%s3993_s3 + $0x2d0] sm:$0xff]  ;;  %v726_v62 = vrot.slane %v2736_v39, 2 }
  0x5f   : > { %1325 = vmatpush.msra.mxu2 %v2491_v34  ;;  %1195 = vmatpush.msra.mxu1 %v2475_v21  ;;  %v2521_v13 = vld [vmem:[%s3993_s3 + $0x450] sm:$0xff]  ;;  %v728_v34 = vrot.slane %v2739_v41, 2 }
  0x60   : > { %1598 = vmatpush.msra.mxu0 %v2524_v1  ;;  %1463 = vmatpush.msra.mxu3 %v2507_v26  ;;  %v3337_v20 = vsel %vm714_vm1, %v724_v60, %v726_v62  ;;  %v2488_v1 = vld [vmem:[%s3993_s3 + $0x348] sm:$0xff] }
  0x61   : > { %1072 = vmatmul.f32.vlgmr.msrb.gmra.mxu0 %v3027_v27  ;;  %v722_v27 = vrot.slane %v3032_v29, 2  ;;  %v2504_v26 = vld [vmem:[%s3993_s3 + $0x3c8] sm:$0xff]  ;;  %v3354_v21 = vsel %vm714_vm1, %v726_v62, %v728_v34  ;;  %v2502_v62 = vld [vmem:[%s3993_s3 + $0x3b8] sm:$0xff] }
  0x62   : > { %1599 = vmatpush.msra.mxu0 %v2523_v6  ;;  %1464 = vmatpush.msra.mxu3 %v2506_v0  ;;  %v2520_v6 = vld [vmem:[%s3993_s3 + $0x448] sm:$0xff]  ;;  %v2503_v0 = vld [vmem:[%s3993_s3 + $0x3c0] sm:$0xff] }
  0x63   : > { %627 = vmatmul.f32.gmra.mxu1 %v2776_v2  ;;  %807 = vmatmul.f32.gmra.mxu2 %v719_v31  ;;  %v2490_v2 = vld [vmem:[%s3993_s3 + $0x358] sm:$0xff]  ;;  %v2472_v31 = vld [vmem:[%s3993_s3 + $0x2c8] sm:$0xff] }
  0x64   : > { %1326 = vmatpush.msra.mxu2 %v2490_v2  ;;  %1600 = vmatpush.msra.mxu0 %v2522_v9  ;;  %v2487_v2 = vld [vmem:[%s3993_s3 + $0x340] sm:$0xff] }
  0x65   : > { %937 = vmatmul.f32.gmra.mxu3 %v2944_v33 }
  0x66   : > { %1327 = vmatpush.msra.mxu2 %v2489_v52  ;;  %1465 = vmatpush.msra.mxu3 %v2505_v4  ;;  %v2519_v52 = vld [vmem:[%s3993_s3 + $0x440] sm:$0xff]  ;;  %v2486_v4 = vld [vmem:[%s3993_s3 + $0x338] sm:$0xff] }
  0x67   : > { %1601 = vmatpush.msra.mxu0 %v2521_v13  ;;  %v2470_v13 = vld [vmem:[%s3993_s3 + $0x2b8] sm:$0xff] }
  0x68   : > { %1328 = vmatpush.msra.mxu2 %v2488_v1  ;;  %1466 = vmatpush.msra.mxu3 %v2504_v26  ;;  %v2518_v26 = vld [vmem:[%s3993_s3 + $0x438] sm:$0xff] }
  0x69   : > { %1075 = vmatmul.f32.gmra.mxu0 %v3109_v28  ;;  %v2474_v28 = vld [vmem:[%s3993_s3 + $0x2d8] sm:$0xff] }
  0x6a   : > { %1196 = vmatpush.msra.mxu1 %v2474_v28  ;;  %1602 = vmatpush.msra.mxu0 %v2520_v6  ;;  %v2471_v28 = vld [vmem:[%s3993_s3 + $0x2c0] sm:$0xff] }
  0x6b   : > { %630 = vmatmul.f32.gmra.mxu1 %v2854_v37  ;;  %810 = vmatmul.f32.gmra.mxu2 %v3289_v40  ;;  %v3306_v37 = vsel %vm714_vm1, %v720_v22, %v722_v27  ;;  %v730_v22 = vrot.slane %v2782_v5, 2 }
  0x6c   : > { %1197 = vmatpush.msra.mxu1 %v2473_v18  ;;  %1329 = vmatpush.msra.mxu2 %v2487_v2  ;;  %v734_v18 = vrot.slane %v2968_v24, 2  ;;  %v2501_v2 = vld [vmem:[%s3993_s3 + $0x3b0] sm:$0xff] }
  0x6d   : > { %940 = vmatmul.f32.gmra.mxu3 %v3032_v29  ;;  %1603 = vmatpush.msra.mxu0 %v2519_v52 }
  0x6e   : > { %1198 = vmatpush.msra.mxu1 %v2472_v31  ;;  %1467 = vmatpush.msra.mxu3 %v2503_v0  ;;  %v2485_v31 = vld [vmem:[%s3993_s3 + $0x330] sm:$0xff] }
  0x6f   : > { %1330 = vmatpush.msra.mxu2 %v2486_v4  ;;  %1604 = vmatpush.msra.mxu0 %v2518_v26  ;;  %v2469_v0 = vld [vmem:[%s3993_s3 + $0x2b0] sm:$0xff]  ;;  %v2484_v26 = vld [vmem:[%s3993_s3 + $0x328] sm:$0xff] }
  0x70   : > { %1199 = vmatpush.msra.mxu1 %v2471_v28  ;;  %1468 = vmatpush.msra.mxu3 %v2502_v62  ;;  %v738_v28 = vrot.slane %v2741_v42, 2 }
  0x71   : > { %1078 = vmatmul.f32.gmra.mxu0 %v3174_v25  ;;  %1331 = vmatpush.msra.mxu2 %v2485_v31  ;;  %v740_v31 = vrot.slane %v2743_v43, 2 }
  0x72   : > { %1200 = vmatpush.msra.mxu1 %v2470_v13  ;;  %1469 = vmatpush.msra.mxu3 %v2501_v2  ;;  %v2517_v13 = vld [vmem:[%s3993_s3 + $0x430] sm:$0xff] }
  0x73   : > { %633 = vmatmul.f32.gmra.mxu1 %v2944_v33  ;;  %813 = vmatmul.f32.gmra.mxu2 %v3306_v37  ;;  %v3323_v33 = vsel %vm714_vm1, %v722_v27, %v724_v60  ;;  %v3368_v27 = vsel %vm714_vm1, %v728_v34, %v730_v22  ;;  %v732_v60 = vrot.slane %v2872_v50, 2  ;;  %v736_v34 = vrot.slane %v3057_v49, 2 }
  0x74   : > { %1201 = vmatpush.msra.mxu1 %v2469_v0  ;;  %1605 = vmatpush.msra.mxu0 %v2517_v13  ;;  %v2468_v13 = vld [vmem:[%s3993_s3 + $0x2a8] sm:$0xff] }
  0x75   : > { %943 = vmatmul.f32.gmra.mxu3 %v3115_v38  ;;  %v3382_v9 = vsel %vm714_vm1, %v730_v22, %v732_v60  ;;  %v3402_v1 = vsel %vm714_vm1, %v732_v60, %v734_v18  ;;  %v3418_v6 = vsel %vm714_vm1, %v734_v18, %v736_v34  ;;  %v3440_v62 = vsel %vm714_vm1, %v736_v34, %v738_v28  ;;  %v2500_v34 = vld [vmem:[%s3993_s3 + $0x3a8] sm:$0xff] }
  0x76   : > { %4054 = vst [vmem:[#allocation19_spill] sm:$0xff] %v3418_v6  ;;  %1332 = vmatpush.msra.mxu2 %v2484_v26  ;;  %1470 = vmatpush.msra.mxu3 %v2500_v34  ;;  %v3468_v26 = vsel %vm714_vm1, %v738_v28, %v740_v31  ;;  %v742_v34 = vrot.slane %v2801_v12, 2  ;;  %v2483_v28 = vld [vmem:[%s3993_s3 + $0x320] sm:$0xff] }
  0x77   : > { %4056 = vst [vmem:[#allocation21_spill] sm:$0xff] %v3440_v62  ;;  %1202 = vmatpush.msra.mxu1 %v2468_v13  ;;  %v2516_v13 = vld [vmem:[%s3993_s3 + $0x428] sm:$0xff] }
  0x78   : > { %4058 = vst [vmem:[#allocation23_spill] sm:$0xff] %v3468_v26  ;;  %1606 = vmatpush.msra.mxu0 %v2516_v13  ;;  %1333 = vmatpush.msra.mxu2 %v2483_v28  ;;  %v2467_v13 = vld [vmem:[%s3993_s3 + $0x2a0] sm:$0xff] }
  0x79   : > { %1081 = vmatmul.f32.gmra.mxu0 %v3237_v23  ;;  %1203 = vmatpush.msra.mxu1 %v2467_v13  ;;  %v2482_v13 = vld [vmem:[%s3993_s3 + $0x318] sm:$0xff] }
  0x7a   : > { %1334 = vmatpush.msra.mxu2 %v2482_v13 }
  0x7b   : > { %636 = vmatmul.f32.gmra.mxu1 %v3032_v29  ;;  %816 = vmatmul.f32.gmra.mxu2 %v3323_v33 }
  0x7d   : > { %946 = vmatmul.f32.gmra.mxu3 %v2736_v39 }
  0x81   : > { %1084 = vmatmul.f32.gmra.mxu0 %v2792_v10 }
  0x83   : > { %639 = vmatmul.f32.gmra.mxu1 %v3115_v38  ;;  %819 = vmatmul.f32.gmra.mxu2 %v3337_v20 }
  0x85   : > { %949 = vmatmul.f32.gmra.mxu3 %v2739_v41 }
  0x89   : > { %1087 = vmatmul.f32.gmra.mxu0 %v2864_v45 }
  0x8b   : > { %642 = vmatmul.f32.gmra.mxu1 %v2736_v39  ;;  %822 = vmatmul.f32.gmra.mxu2 %v3354_v21 }
  0x8d   : > { %952 = vmatmul.f32.gmra.mxu3 %v2782_v5 }
  0x91   : > { %1090 = vmatmul.f32.gmra.mxu0 %v2952_v35 }
  0x93   : > { %645 = vmatmul.f32.gmra.mxu1 %v2739_v41  ;;  %825 = vmatmul.f32.gmra.mxu2 %v3368_v27 }
  0x95   : > { %955 = vmatmul.f32.gmra.mxu3 %v2872_v50 }
  0x99   : > { %1093 = vmatmul.f32.gmra.mxu0 %v3048_v48 }
  0x9b   : > { %648 = vmatmul.f32.gmra.mxu1 %v2782_v5  ;;  %828 = vmatmul.f32.gmra.mxu2 %v3382_v9 }
  0x9d   : > { %958 = vmatmul.f32.gmra.mxu3 %v2968_v24 }
  0xa1   : > { %1096 = vmatmul.f32.gmra.mxu0 %v3127_v8 }
  0xa3   : > { %651 = vmatmul.f32.gmra.mxu1 %v2872_v50  ;;  %831 = vmatmul.f32.gmra.mxu2 %v3402_v1 }
  0xa5   : > { %961 = vmatmul.f32.gmra.mxu3 %v3057_v49 }
  0xa8   : > { %v3415_v22 = vpop.f32.mrf.mxu1 }
  0xa9   : > { %1099 = vmatmul.f32.gmra.mxu0 %v3189_v32 }
  0xab   : > { %654 = vmatmul.f32.gmra.mxu1 %v2968_v24  ;;  %834 = vmatmul.f32.gmra.mxu2 %v3418_v6  ;;  %v2513_v6 = vld [vmem:[%s3993_s3 + $0x410] sm:$0xff] }
  0xad   : > { %964 = vmatmul.f32.gmra.mxu3 %v2741_v42 }
  0xae   : > { %v3431_v60 = vpop.f32.mrf.mxu2  ;;  %v3433_v52 = vpop.f32.mrf.mxu0 }
  0xb0   : > { %v3435_v4 = vpop.f32.mrf.mxu1  ;;  %v3437_v18 = vpop.f32.mrf.mxu3 }
  0xb1   : > { %4055 = vst [vmem:[#allocation20_spill] sm:$0xff] %v3437_v18  ;;  %1102 = vmatmul.f32.gmra.mxu0 %v2799_v11 }
  0xb3   : > { %657 = vmatmul.f32.gmra.mxu1 %v3057_v49  ;;  %837 = vmatmul.f32.gmra.mxu2 %v3440_v62  ;;  %v2499_v62 = vld [vmem:[%s3993_s3 + $0x3a0] sm:$0xff] }
  0xb4   : > { %1471 = vmatpush.msra.mxu3 %v2499_v62 }
  0xb5   : > { %967 = vmatmul.f32.gmra.mxu3 %v2743_v43 }
  0xb6   : > { %v3456_v2 = vpop.f32.mrf.mxu2  ;;  %v3458_v0 = vpop.f32.mrf.mxu0 }
  0xb8   : > { %v3463_v36 = vpop.f32.mrf.mxu1  ;;  %v3465_v18 = vpop.f32.mrf.mxu3 }
  0xb9   : > { %4057 = vst [vmem:[#allocation22_spill] sm:$0xff] %v3465_v18  ;;  %1105 = vmatmul.f32.gmra.mxu0 %v2881_v53 }
  0xbb   : > { %660 = vmatmul.f32.gmra.mxu1 %v2741_v42  ;;  %840 = vmatmul.f32.gmra.mxu2 %v3468_v26  ;;  %v3490_v42 = vsel %vm714_vm1, %v740_v31, %v742_v34 }
  0xbc   : > { %4060 = vst [vmem:[#allocation25_spill] sm:$0xff] %v3490_v42 }
  0xbd   : > { %970 = vmatmul.f32.gmra.mxu3 %v2801_v12 }
  0xbe   : > { %v3478_v11 = vpop.f32.mrf.mxu2  ;;  %v3480_v18 = vpop.f32.mrf.mxu0 }
  0xc0   : > { %v3485_v53 = vpop.f32.mrf.mxu1  ;;  %v3487_v26 = vpop.f32.mrf.mxu3 }
  0xc1   : > { %4059 = vst [vmem:[#allocation24_spill] sm:$0xff] %v3487_v26  ;;  %1108 = vmatmul.f32.gmra.mxu0 %v2959_v19  ;;  %v744_v26 = vrot.slane %v2874_v51, 2 }
  0xc3   : > { %663 = vmatmul.f32.gmra.mxu1 %v2743_v43  ;;  %843 = vmatmul.f32.gmra.mxu2 %v3490_v42  ;;  %v3512_v43 = vsel %vm714_vm1, %v742_v34, %v744_v26  ;;  %v2515_v42 = vld [vmem:[%s3993_s3 + $0x420] sm:$0xff]  ;;  %v2498_v34 = vld [vmem:[%s3993_s3 + $0x398] sm:$0xff] }
  0xc4   : > { %4063 = vst [vmem:[#allocation28_spill] sm:$0xff] %v3512_v43  ;;  %1607 = vmatpush.msra.mxu0 %v2515_v42  ;;  %1472 = vmatpush.msra.mxu3 %v2498_v34  ;;  %v748_v34 = vrot.slane %v3059_v54, 2 }
  0xc5   : > { %973 = vmatmul.f32.gmra.mxu3 %v2874_v51 }
  0xc6   : > { %v3503_v31 = vpop.f32.mrf.mxu2  ;;  %v3505_v28 = vpop.f32.mrf.mxu0 }
  0xc7   : > { %4061 = vst [vmem:[#allocation26_spill] sm:$0xff] %v3503_v31 }
  0xc8   : > { %v3507_v19 = vpop.f32.mrf.mxu1  ;;  %v3509_v62 = vpop.f32.mrf.mxu3 }
  0xc9   : > { %4062 = vst [vmem:[#allocation27_spill] sm:$0xff] %v3509_v62  ;;  %1111 = vmatmul.f32.gmra.mxu0 %v3055_v30  ;;  %v746_v62 = vrot.slane %v2970_v44, 2 }
  0xcb   : > { %666 = vmatmul.f32.gmra.mxu1 %v2801_v12  ;;  %846 = vmatmul.f32.gmra.mxu2 %v3512_v43  ;;  %v2466_v43 = vld [vmem:[%s3993_s3 + $0x298] sm:$0xff]  ;;  %v3540_v13 = vsel %vm714_vm1, %v744_v26, %v746_v62 }
  0xcc   : > { %4066 = vst [vmem:[#allocation31_spill] sm:$0xff] %v3540_v13  ;;  %1204 = vmatpush.msra.mxu1 %v2466_v43  ;;  %v2481_v43 = vld [vmem:[%s3993_s3 + $0x310] sm:$0xff] }
  0xcd   : > { %976 = vmatmul.f32.gmra.mxu3 %v2970_v44  ;;  %1335 = vmatpush.msra.mxu2 %v2481_v43 }
  0xce   : > { %v3528_v30 = vpop.f32.mrf.mxu2  ;;  %v3530_v42 = vpop.f32.mrf.mxu0 }
  0xcf   : > { %4064 = vst [vmem:[#allocation29_spill] sm:$0xff] %v3528_v30  ;;  %v2514_v30 = vld [vmem:[%s3993_s3 + $0x418] sm:$0xff] }
  0xd0   : > { %v3535_v12 = vpop.f32.mrf.mxu1  ;;  %v3537_v32 = vpop.f32.mrf.mxu3  ;;  %1608 = vmatpush.msra.mxu0 %v2514_v30  ;;  %v2465_v30 = vld [vmem:[%s3993_s3 + $0x290] sm:$0xff] }
  0xd1   : > { %4065 = vst [vmem:[#allocation30_spill] sm:$0xff] %v3537_v32  ;;  %1114 = vmatmul.f32.gmra.mxu0 %v3132_v59  ;;  %1205 = vmatpush.msra.mxu1 %v2465_v30 }
  0xd2   : > { %1609 = vmatpush.msra.mxu0 %v2513_v6 }
  0xd3   : > { %669 = vmatmul.f32.gmra.mxu1 %v2874_v51  ;;  %849 = vmatmul.f32.gmra.mxu2 %v3540_v13  ;;  %v3560_v13 = vsel %vm714_vm1, %v746_v62, %v748_v34  ;;  %v2497_v51 = vld [vmem:[%s3993_s3 + $0x390] sm:$0xff] }
  0xd4   : > { %4069 = vst [vmem:[#allocation34_spill] sm:$0xff] %v3560_v13  ;;  %1473 = vmatpush.msra.mxu3 %v2497_v51 }
  0xd5   : > { %979 = vmatmul.f32.gmra.mxu3 %v3059_v54 }
  0xd6   : > { %v3550_v31 = vpop.f32.mrf.mxu2  ;;  %v3552_v32 = vpop.f32.mrf.mxu0 }
  0xd7   : > { %4067 = vst [vmem:[#allocation32_spill] sm:$0xff] %v3550_v31 }
  0xd8   : > { %v3557_v26 = vpop.f32.mrf.mxu3  ;;  %v625_v59 = vpop.f32.mrf.mxu1 }
  0xd9   : > { %4068 = vst [vmem:[#allocation33_spill] sm:$0xff] %v3557_v26  ;;  %1117 = vmatmul.f32.gmra.mxu0 %v3194_v16  ;;  %v750_v26 = vrot.slane %v2749_v46, 2  ;;  %v626_v62 = vadd.f32 %v625_v59, %v3433_v52  ;;  %v2480_v59 = vld [vmem:[%s3993_s3 + $0x308] sm:$0xff]  ;;  %v752_v52 = vrot.slane %v2751_v47, 2 }
  0xda   : > { %1336 = vmatpush.msra.mxu2 %v2480_v59 }
  0xdb   : > { %672 = vmatmul.f32.gmra.mxu1 %v2970_v44  ;;  %852 = vmatmul.f32.gmra.mxu2 %v3560_v13  ;;  %v3575_v44 = vsel %vm714_vm1, %v748_v34, %v750_v26  ;;  %v3598_v59 = vsel %vm714_vm1, %v750_v26, %v752_v52  ;;  %v2512_v26 = vld [vmem:[%s3993_s3 + $0x408] sm:$0xff] }
  0xdc   : > { %1610 = vmatpush.msra.mxu0 %v2512_v26 }
  0xdd   : > { %982 = vmatmul.f32.gmra.mxu3 %v2749_v46 }
  0xde   : > { %v805_v43 = vpop.f32.mrf.mxu2  ;;  %v1073_v16 = vpop.f32.mrf.mxu0 }
  0xdf   : > { %v877_v31 = vadd.f32 %v805_v43, %v626_v62  ;;  %v2464_v62 = vld [vmem:[%s3993_s3 + $0x288] sm:$0xff] }
  0xe0   : > { %v628_v49 = vpop.f32.mrf.mxu1  ;;  %v935_v51 = vpop.f32.mrf.mxu3  ;;  %1206 = vmatpush.msra.mxu1 %v2464_v62 }
  0xe1   : > { %v1007_v13 = vadd.f32 %v935_v51, %v877_v31  ;;  %1120 = vmatmul.f32.gmra.mxu0 %v2811_v14  ;;  %v629_v31 = vadd.f32 %v628_v49, %v3458_v0 }
  0xe3   : > { %v3581_v30 = vadd.f32 %v1073_v16, %v1007_v13  ;;  %675 = vmatmul.f32.gmra.mxu1 %v3059_v54  ;;  %855 = vmatmul.f32.gmra.mxu2 %v3575_v44  ;;  %v2496_v16 = vld [vmem:[%s3993_s3 + $0x388] sm:$0xff] }
  0xe4   : > { %1474 = vmatpush.msra.mxu3 %v2496_v16 }
  0xe5   : > { %985 = vmatmul.f32.gmra.mxu3 %v2751_v47 }
  0xe6   : > { %v808_v6 = vpop.f32.mrf.mxu2  ;;  %v1076_v13 = vpop.f32.mrf.mxu0 }
  0xe7   : > { %v878_v34 = vadd.f32 %v808_v6, %v629_v31  ;;  %v754_v31 = vrot.slane %v2813_v15, 2 }
  0xe8   : > { %v631_v43 = vpop.f32.mrf.mxu1  ;;  %v938_v51 = vpop.f32.mrf.mxu3 }
  0xe9   : > { %v1008_v49 = vadd.f32 %v938_v51, %v878_v34  ;;  %1123 = vmatmul.f32.gmra.mxu0 %v2897_v57  ;;  %v632_v16 = vadd.f32 %v631_v43, %v3480_v18  ;;  %v2495_v43 = vld [vmem:[%s3993_s3 + $0x380] sm:$0xff] }
  0xea   : > { %1475 = vmatpush.msra.mxu3 %v2495_v43 }
  0xeb   : > { %v3601_v0 = vadd.f32 %v1076_v13, %v1008_v49  ;;  %678 = vmatmul.f32.gmra.mxu1 %v2749_v46  ;;  %858 = vmatmul.f32.gmra.mxu2 %v3598_v59  ;;  %v2479_v13 = vld [vmem:[%s3993_s3 + $0x300] sm:$0xff] }
  0xec   : > { %1337 = vmatpush.msra.mxu2 %v2479_v13 }
  0xed   : > { %4070 = vst [vmem:[#allocation35_spill] sm:$0xff] %v3601_v0  ;;  %988 = vmatmul.f32.gmra.mxu3 %v2813_v15  ;;  %v3615_v0 = vsel %vm714_vm1, %v752_v52, %v754_v31  ;;  %v2463_v52 = vld [vmem:[%s3993_s3 + $0x280] sm:$0xff] }
  0xee   : > { %v811_v6 = vpop.f32.mrf.mxu2  ;;  %v1079_v34 = vpop.f32.mrf.mxu0  ;;  %1207 = vmatpush.msra.mxu1 %v2463_v52  ;;  %v2511_v52 = vld [vmem:[%s3993_s3 + $0x400] sm:$0xff] }
  0xef   : > { %v879_v62 = vadd.f32 %v811_v6, %v632_v16  ;;  %v756_v16 = vrot.slane %v2903_v3, 2  ;;  %1611 = vmatpush.msra.mxu0 %v2511_v52 }
  0xf0   : > { %v634_v51 = vpop.f32.mrf.mxu1  ;;  %v941_v49 = vpop.f32.mrf.mxu3 }
  0xf1   : > { %v1009_v18 = vadd.f32 %v941_v49, %v879_v62  ;;  %1126 = vmatmul.f32.gmra.mxu0 %v2987_v58  ;;  %v635_v6 = vadd.f32 %v634_v51, %v3505_v28  ;;  %v3632_v43 = vsel %vm714_vm1, %v754_v31, %v756_v16  ;;  %v288_v28 = vld [vmem:[%s2678_s12 + $0xc8] sm:$0xff]  ;;  %v758_v51 = vrot.slane %v2980_v55, 2 }
  0xf2   : > { %4072 = vst [vmem:[#allocation37_spill] sm:$0xff] %v3632_v43 }
  0xf3   : > { %v3621_v26 = vadd.f32 %v1079_v34, %v1009_v18  ;;  %681 = vmatmul.f32.gmra.mxu1 %v2751_v47  ;;  %861 = vmatmul.f32.gmra.mxu2 %v3615_v0 }
  0xf5   : > { %4071 = vst [vmem:[#allocation36_spill] sm:$0xff] %v3621_v26  ;;  %991 = vmatmul.f32.gmra.mxu3 %v2903_v3 }
  0xf6   : > { %v814_v62 = vpop.f32.mrf.mxu2  ;;  %v1082_v13 = vpop.f32.mrf.mxu0 }
  0xf7   : > { %v880_v34 = vadd.f32 %v814_v62, %v635_v6 }
  0xf8   : > { %v637_v49 = vpop.f32.mrf.mxu1  ;;  %v944_v18 = vpop.f32.mrf.mxu3 }
  0xf9   : > { %v1010_v26 = vadd.f32 %v944_v18, %v880_v34  ;;  %1129 = vmatmul.f32.gmra.mxu0 %v3074_v61  ;;  %v638_v31 = vadd.f32 %v637_v49, %v3530_v42  ;;  %v3649_v34 = vld [vmem:[%s3991_s1] ss:$0 sm:$0xff] }
  0xfa   : > { %v3659_v42 = vld [vmem:[%s3992_s2] ss:$0 sm:$0xff] }
  0xfb   : > { %v3638_v58 = vadd.f32 %v1082_v13, %v1010_v26  ;;  %684 = vmatmul.f32.gmra.mxu1 %v2813_v15  ;;  %864 = vmatmul.f32.gmra.mxu2 %v3632_v43  ;;  %v321_v26 = vmul.f32 %v3649_v34, %v288_v28  ;;  %4075 = vst [vmem:[#allocation40_spill] sm:$0xff] %v3659_v42  ;;  %v289_v28 = vld [vmem:[%s2678_s12 + $0xd0] sm:$0xff] }
  0xfd   : > { %4073 = vst [vmem:[#allocation38_spill] sm:$0xff] %v3638_v58  ;;  %994 = vmatmul.f32.gmra.mxu3 %v2980_v55  ;;  %v3653_v58 = vsel %vm714_vm1, %v756_v16, %v758_v51  ;;  %v354_v49 = vadd.f32 %v3659_v42, %v321_v26  ;;  %v760_v16 = vrot.slane %v3080_v7, 2 }
  0xfe   : > { %v817_v6 = vpop.f32.mrf.mxu2  ;;  %v1085_v62 = vpop.f32.mrf.mxu0  ;;  %4074 = vst [vmem:[#allocation39_spill] sm:$0xff] %v3653_v58 }
  0xff   : > { %v881_v13 = vadd.f32 %v817_v6, %v638_v31 }
 0x100   : > { %v640_v18 = vpop.f32.mrf.mxu1  ;;  %v947_v52 = vpop.f32.mrf.mxu3 }
 0x101   : > { %v1011_v61 = vadd.f32 %v947_v52, %v881_v13  ;;  %1132 = vmatmul.f32.gmra.mxu0 %v3144_v17  ;;  %v641_v31 = vadd.f32 %v640_v18, %v3552_v32  ;;  %v3670_v52 = vmax.f32 %v354_v49, 0.0  ;;  %v322_v17 = vmul.f32 %v3649_v34, %v289_v28 }
 0x102   : > { %v4035_v49 = vrot.slane %v3150_v63, 2 }
 0x103   : > { %v3662_v43 = vadd.f32 %v1085_v62, %v1011_v61  ;;  %687 = vmatmul.f32.gmra.mxu1 %v2903_v3  ;;  %867 = vmatmul.f32.gmra.mxu2 %v3653_v58  ;;  %v1050_v3 = vrot.slane %v3670_v52, 1  ;;  %v355_v32 = vadd.f32 %v3659_v42, %v322_v17 }
 0x105   : > { %4076 = vst [vmem:[#allocation41_spill] sm:$0xff] %v3662_v43  ;;  %997 = vmatmul.f32.gmra.mxu3 %v3080_v7  ;;  %v3674_v43 = vsel %vm714_vm1, %v758_v51, %v760_v16  ;;  %v3691_v17 = vmax.f32 %v355_v32, 0.0 }
 0x106   : > { %v820_v6 = vpop.f32.mrf.mxu2  ;;  %v1088_v13 = vpop.f32.mrf.mxu0 }
 0x107   : > { %v882_v26 = vadd.f32 %v820_v6, %v641_v31  ;;  %v4078_v6 = vrot.slane %v3150_v63, 1 }
 0x108   : > { %v643_v61 = vpop.f32.mrf.mxu1  ;;  %v950_v62 = vpop.f32.mrf.mxu3 }
 0x109   : > { %v1012_v58 = vadd.f32 %v950_v62, %v882_v26  ;;  %1135 = vmatmul.f32.gmra.mxu0 %v3206_v56  ;;  %v644_v28 = vadd.f32 %v643_v61, %v3415_v22  ;;  %v3689_v26 = vsel %vm445_vm0, %v4078_v6, %v1050_v3  ;;  %v4036_v61 = vrot.slane %v3691_v17, 1 }
 0x10b   : > { %v3679_v18 = vadd.f32 %v1088_v13, %v1012_v58  ;;  %690 = vmatmul.f32.gmra.mxu1 %v2980_v55  ;;  %870 = vmatmul.f32.gmra.mxu2 %v3674_v43 }
 0x10d   : > { %4077 = vst [vmem:[#allocation42_spill] sm:$0xff] %v3679_v18  ;;  %1000 = vmatmul.f32.gmra.mxu3 %v3150_v63  ;;  %v3696_v18 = vsel %vm714_vm1, %v760_v16, %v4035_v49  ;;  %v3709_v16 = vsel %vm445_vm0, %v1050_v3, %v4036_v61 }
 0x10e   : > { %v823_v51 = vpop.f32.mrf.mxu2  ;;  %v1091_v31 = vpop.f32.mrf.mxu0 }
 0x10f   : > { %v883_v58 = vadd.f32 %v823_v51, %v644_v28 }
 0x110   : > { %v646_v13 = vpop.f32.mrf.mxu1  ;;  %v953_v62 = vpop.f32.mrf.mxu3 }
 0x111   : > { %v1013_v22 = vadd.f32 %v953_v62, %v883_v58  ;;  %1138 = vmatmul.f32.gmra.mxu0 %v3689_v26  ;;  %v647_v32 = vadd.f32 %v646_v13, %v3435_v4 }
 0x113   : > { %v3700_v42 = vadd.f32 %v1091_v31, %v1013_v22  ;;  %693 = vmatmul.f32.gmra.mxu1 %v3080_v7  ;;  %873 = vmatmul.f32.gmra.mxu2 %v3696_v18 }
 0x115   : > { %1003 = vmatmul.f32.gmra.mxu3 %v3670_v52 }
 0x116   : > { %v826_v28 = vpop.f32.mrf.mxu2  ;;  %v1094_v51 = vpop.f32.mrf.mxu0 }
 0x117   : > { %v884_v6 = vadd.f32 %v826_v28, %v647_v32 }
 0x118   : > { %v649_v58 = vpop.f32.mrf.mxu1  ;;  %v956_v62 = vpop.f32.mrf.mxu3 }
 0x119   : > { %v1014_v31 = vadd.f32 %v956_v62, %v884_v6  ;;  %1141 = vmatmul.f32.gmra.mxu0 %v3709_v16  ;;  %v650_v4 = vadd.f32 %v649_v58, %v3463_v36 }
 0x11b   : > { %v3712_v22 = vadd.f32 %v1094_v51, %v1014_v31  ;;  %1208 = vmatmul.f32.vlgmr.msra.gmra.mxu1 %v3289_v40  ;;  %1338 = vmatmul.f32.vlgmr.msra.gmra.mxu2 %v3032_v29 }
 0x11d   : > { %1476 = vmatmul.f32.vlgmr.msra.gmra.mxu3 %v3174_v25 }
 0x11e   : > { %v829_v13 = vpop.f32.mrf.mxu2  ;;  %v1097_v49 = vpop.f32.mrf.mxu0 }
 0x11f   : > { %v885_v3 = vadd.f32 %v829_v13, %v650_v4 }
 0x120   : > { %v652_v61 = vpop.f32.mrf.mxu1  ;;  %v959_v32 = vpop.f32.mrf.mxu3 }
 0x121   : > { %v1015_v28 = vadd.f32 %v959_v32, %v885_v3  ;;  %1612 = vmatmul.f32.vlgmr.msra.gmra.mxu0 %v3323_v33  ;;  %v653_v29 = vadd.f32 %v652_v61, %v3485_v53 }
 0x123   : > { %v3719_v6 = vadd.f32 %v1097_v49, %v1015_v28  ;;  %1211 = vmatmul.f32.gmra.mxu1 %v3306_v37  ;;  %1341 = vmatmul.f32.gmra.mxu2 %v3115_v38 }
 0x125   : > { %1479 = vmatmul.f32.gmra.mxu3 %v3237_v23 }
 0x126   : > { %v832_v36 = vpop.f32.mrf.mxu2  ;;  %v1100_v25 = vpop.f32.mrf.mxu0 }
 0x127   : > { %v886_v40 = vadd.f32 %v832_v36, %v653_v29 }
 0x128   : > { %v655_v51 = vpop.f32.mrf.mxu1  ;;  %v962_v58 = vpop.f32.mrf.mxu3 }
 0x129   : > { %v1016_v62 = vadd.f32 %v962_v58, %v886_v40  ;;  %1615 = vmatmul.f32.gmra.mxu0 %v3337_v20  ;;  %v656_v38 = vadd.f32 %v655_v51, %v3507_v19 }
 0x12b   : > { %v3726_v31 = vadd.f32 %v1100_v25, %v1016_v62  ;;  %1214 = vmatmul.f32.gmra.mxu1 %v3323_v33  ;;  %1344 = vmatmul.f32.gmra.mxu2 %v2736_v39 }
 0x12d   : > { %1482 = vmatmul.f32.gmra.mxu3 %v2792_v10 }
 0x12e   : > { %v835_v53 = vpop.f32.mrf.mxu2  ;;  %v1103_v23 = vpop.f32.mrf.mxu0 }
 0x12f   : > { %v887_v37 = vadd.f32 %v835_v53, %v656_v38 }
 0x130   : > { %v658_v49 = vpop.f32.mrf.mxu1  ;;  %v965_v61 = vpop.f32.mrf.mxu3 }
 0x131   : > { %v1017_v4 = vadd.f32 %v965_v61, %v887_v37  ;;  %1618 = vmatmul.f32.gmra.mxu0 %v3354_v21  ;;  %v659_v39 = vadd.f32 %v658_v49, %v3535_v12  ;;  %v4079_v61 = vld [vmem:[#allocation19_spill] sm:$0xff] }
 0x133   : > { %v3733_v13 = vadd.f32 %v1103_v23, %v1017_v4  ;;  %1217 = vmatmul.f32.gmra.mxu1 %v3337_v20  ;;  %1347 = vmatmul.f32.gmra.mxu2 %v2739_v41 }
 0x135   : > { %1485 = vmatmul.f32.gmra.mxu3 %v2864_v45 }
 0x136   : > { %v838_v19 = vpop.f32.mrf.mxu2  ;;  %v1106_v10 = vpop.f32.mrf.mxu0 }
 0x137   : > { %v888_v33 = vadd.f32 %v838_v19, %v659_v39  ;;  %v4080_v39 = vld [vmem:[#allocation13_spill] sm:$0xff] }
 0x138   : > { %v661_v3 = vpop.f32.mrf.mxu1  ;;  %v968_v32 = vpop.f32.mrf.mxu3  ;;  %v4082_v19 = vld [vmem:[#allocation17_spill] sm:$0xff] }
 0x139   : > { %v1018_v28 = vadd.f32 %v968_v32, %v888_v33  ;;  %1621 = vmatmul.f32.gmra.mxu0 %v3368_v27  ;;  %v662_v41 = vadd.f32 %v661_v3, %v3431_v60 }
 0x13b   : > { %v3740_v29 = vadd.f32 %v1106_v10, %v1018_v28  ;;  %1220 = vmatmul.f32.gmra.mxu1 %v3354_v21  ;;  %1350 = vmatmul.f32.gmra.mxu2 %v2782_v5  ;;  %v4083_v28 = vld [vmem:[#allocation21_spill] sm:$0xff] }
 0x13d   : > { %1488 = vmatmul.f32.gmra.mxu3 %v2952_v35 }
 0x13e   : > { %v841_v12 = vpop.f32.mrf.mxu2  ;;  %v1109_v45 = vpop.f32.mrf.mxu0 }
 0x13f   : > { %v889_v20 = vadd.f32 %v841_v12, %v662_v41  ;;  %v4084_v12 = vld [vmem:[#allocation2_spill] sm:$0xff] }
 0x140   : > { %v664_v36 = vpop.f32.mrf.mxu1  ;;  %v971_v25 = vpop.f32.mrf.mxu3 }
 0x141   : > { %v1019_v40 = vadd.f32 %v971_v25, %v889_v20  ;;  %1624 = vmatmul.f32.gmra.mxu0 %v3382_v9  ;;  %v665_v5 = vadd.f32 %v664_v36, %v3456_v2  ;;  %v4086_v20 = vld [vmem:[#allocation4_spill] sm:$0xff] }
 0x143   : > { %v3747_v51 = vadd.f32 %v1109_v45, %v1019_v40  ;;  %1223 = vmatmul.f32.gmra.mxu1 %v3368_v27  ;;  %1353 = vmatmul.f32.gmra.mxu2 %v2872_v50 }
 0x145   : > { %1491 = vmatmul.f32.gmra.mxu3 %v3048_v48 }
 0x146   : > { %v844_v21 = vpop.f32.mrf.mxu2  ;;  %v1112_v35 = vpop.f32.mrf.mxu0 }
 0x147   : > { %v890_v60 = vadd.f32 %v844_v21, %v665_v5 }
 0x148   : > { %v667_v58 = vpop.f32.mrf.mxu1  ;;  %v974_v62 = vpop.f32.mrf.mxu3 }
 0x149   : > { %v1020_v38 = vadd.f32 %v974_v62, %v890_v60  ;;  %1627 = vmatmul.f32.gmra.mxu0 %v3402_v1  ;;  %v668_v50 = vadd.f32 %v667_v58, %v3478_v11  ;;  %v4087_v60 = vld [vmem:[#allocation23_spill] sm:$0xff] }
 0x14a   : > { %v4088_v62 = vld [vmem:[#allocation3_spill] sm:$0xff] }
 0x14b   : > { %v3754_v53 = vadd.f32 %v1112_v35, %v1020_v38  ;;  %1226 = vmatmul.f32.gmra.mxu1 %v3382_v9  ;;  %1356 = vmatmul.f32.gmra.mxu2 %v2968_v24  ;;  %v4081_v9 = vld [vmem:[#allocation26_spill] sm:$0xff]  ;;  %v4089_v38 = vld [vmem:[#allocation32_spill] sm:$0xff] }
 0x14d   : > { %1494 = vmatmul.f32.gmra.mxu3 %v3127_v8 }
 0x14e   : > { %v847_v27 = vpop.f32.mrf.mxu2  ;;  %v1115_v48 = vpop.f32.mrf.mxu0 }
 0x14f   : > { %v891_v2 = vadd.f32 %v847_v27, %v668_v50  ;;  %v4090_v27 = vld [vmem:[#allocation7_spill] sm:$0xff] }
 0x150   : > { %v670_v23 = vpop.f32.mrf.mxu1  ;;  %v977_v37 = vpop.f32.mrf.mxu3 }
 0x151   : > { %v1021_v49 = vadd.f32 %v977_v37, %v891_v2  ;;  %1630 = vmatmul.f32.gmra.mxu0 %v4079_v61  ;;  %v671_v24 = vadd.f32 %v670_v23, %v4081_v9 }
 0x153   : > { %v3761_v4 = vadd.f32 %v1115_v48, %v1021_v49  ;;  %1229 = vmatmul.f32.gmra.mxu1 %v3402_v1  ;;  %1359 = vmatmul.f32.gmra.mxu2 %v4080_v39  ;;  %v4085_v1 = vld [vmem:[#allocation29_spill] sm:$0xff] }
 0x154   : > { %v4091_v39 = vld [vmem:[#allocation25_spill] sm:$0xff] }
 0x155   : > { %1497 = vmatmul.f32.gmra.mxu3 %v4082_v19  ;;  %v4093_v19 = vld [vmem:[#allocation20_spill] sm:$0xff] }
 0x156   : > { %v850_v11 = vpop.f32.mrf.mxu2  ;;  %v1118_v8 = vpop.f32.mrf.mxu0 }
 0x157   : > { %v892_v10 = vadd.f32 %v850_v11, %v671_v24  ;;  %v4092_v24 = vld [vmem:[#allocation5_spill] sm:$0xff] }
 0x158   : > { %v673_v33 = vpop.f32.mrf.mxu1  ;;  %v980_v3 = vpop.f32.mrf.mxu3 }
 0x159   : > { %v1022_v32 = vadd.f32 %v980_v3, %v892_v10  ;;  %1633 = vmatmul.f32.gmra.mxu0 %v4083_v28  ;;  %v674_v45 = vadd.f32 %v673_v33, %v4085_v1  ;;  %v4095_v1 = vld [vmem:[#allocation28_spill] sm:$0xff] }
 0x15b   : > { %v3768_v41 = vadd.f32 %v1118_v8, %v1022_v32  ;;  %1232 = vmatmul.f32.gmra.mxu1 %v4079_v61  ;;  %1362 = vmatmul.f32.gmra.mxu2 %v4084_v12  ;;  %v4094_v8 = vld [vmem:[#allocation9_spill] sm:$0xff] }
 0x15d   : > { %1500 = vmatmul.f32.gmra.mxu3 %v4086_v20  ;;  %v4096_v20 = vld [vmem:[#allocation6_spill] sm:$0xff] }
 0x15e   : > { %v853_v36 = vpop.f32.mrf.mxu2  ;;  %v1121_v25 = vpop.f32.mrf.mxu0 }
 0x15f   : > { %v893_v40 = vadd.f32 %v853_v36, %v674_v45  ;;  %v4097_v36 = vld [vmem:[#allocation22_spill] sm:$0xff] }
 0x160   : > { %v676_v5 = vpop.f32.mrf.mxu1  ;;  %v983_v21 = vpop.f32.mrf.mxu3 }
 0x161   : > { %v1023_v35 = vadd.f32 %v983_v21, %v893_v40  ;;  %1636 = vmatmul.f32.gmra.mxu0 %v4087_v60  ;;  %v677_v50 = vadd.f32 %v676_v5, %v4089_v38  ;;  %v4098_v40 = vld [vmem:[#allocation12_spill] sm:$0xff] }
 0x163   : > { %v3775_v58 = vadd.f32 %v1121_v25, %v1023_v35  ;;  %1235 = vmatmul.f32.gmra.mxu1 %v4083_v28  ;;  %1365 = vmatmul.f32.gmra.mxu2 %v4088_v62 }
 0x165   : > { %1503 = vmatmul.f32.gmra.mxu3 %v4090_v27 }
 0x166   : > { %v856_v48 = vpop.f32.mrf.mxu2  ;;  %v1124_v2 = vpop.f32.mrf.mxu0 }
 0x167   : > { %v894_v23 = vadd.f32 %v856_v48, %v677_v50  ;;  %v4099_v50 = vld [vmem:[#allocation31_spill] sm:$0xff]  ;;  %v4100_v48 = vld [vmem:[#allocation10_spill] sm:$0xff] }
 0x168   : > { %v679_v37 = vpop.f32.mrf.mxu1  ;;  %v986_v49 = vpop.f32.mrf.mxu3 }
 0x169   : > { %v1024_v61 = vadd.f32 %v986_v49, %v894_v23  ;;  %1639 = vmatmul.f32.gmra.mxu0 %v4091_v39  ;;  %v680_v11 = vadd.f32 %v679_v37, %v4093_v19  ;;  %v4102_v37 = vld [vmem:[#allocation15_spill] sm:$0xff] }
 0x16b   : > { %v3782_v9 = vadd.f32 %v1124_v2, %v1024_v61  ;;  %1238 = vmatmul.f32.gmra.mxu1 %v4087_v60  ;;  %1368 = vmatmul.f32.gmra.mxu2 %v4092_v24  ;;  %v4101_v2 = vld [vmem:[#allocation24_spill] sm:$0xff] }
 0x16d   : > { %1506 = vmatmul.f32.gmra.mxu3 %v4094_v8  ;;  %v4103_v8 = vld [vmem:[#allocation34_spill] sm:$0xff] }
 0x16e   : > { %v859_v10 = vpop.f32.mrf.mxu2  ;;  %v1127_v33 = vpop.f32.mrf.mxu0 }
 0x16f   : > { %v895_v3 = vadd.f32 %v859_v10, %v680_v11 }
 0x170   : > { %v682_v32 = vpop.f32.mrf.mxu1  ;;  %v989_v28 = vpop.f32.mrf.mxu3 }
 0x171   : > { %v1025_v12 = vadd.f32 %v989_v28, %v895_v3  ;;  %1642 = vmatmul.f32.gmra.mxu0 %v4095_v1  ;;  %v683_v25 = vadd.f32 %v682_v32, %v4097_v36  ;;  %v4105_v32 = vld [vmem:[#allocation18_spill] sm:$0xff] }
 0x173   : > { %v3789_v45 = vadd.f32 %v1127_v33, %v1025_v12  ;;  %1241 = vmatmul.f32.gmra.mxu1 %v4091_v39  ;;  %1371 = vmatmul.f32.gmra.mxu2 %v4096_v20  ;;  %v4104_v33 = vld [vmem:[#allocation27_spill] sm:$0xff] }
 0x175   : > { %1509 = vmatmul.f32.gmra.mxu3 %v4098_v40 }
 0x176   : > { %v862_v5 = vpop.f32.mrf.mxu2  ;;  %v1130_v21 = vpop.f32.mrf.mxu0 }
 0x177   : > { %v896_v35 = vadd.f32 %v862_v5, %v683_v25  ;;  %v4106_v5 = vld [vmem:[#allocation30_spill] sm:$0xff] }
 0x178   : > { %v685_v60 = vpop.f32.mrf.mxu1  ;;  %v992_v62 = vpop.f32.mrf.mxu3 }
 0x179   : > { %v1026_v38 = vadd.f32 %v992_v62, %v896_v35  ;;  %1645 = vmatmul.f32.gmra.mxu0 %v4099_v50  ;;  %v686_v23 = vadd.f32 %v685_v60, %v4101_v2  ;;  %v4107_v2 = vld [vmem:[#allocation33_spill] sm:$0xff] }
 0x17b   : > { %v3796_v27 = vadd.f32 %v1130_v21, %v1026_v38  ;;  %1244 = vmatmul.f32.gmra.mxu1 %v4095_v1  ;;  %1374 = vmatmul.f32.gmra.mxu2 %v4100_v48 }
 0x17d   : > { %1512 = vmatmul.f32.gmra.mxu3 %v4102_v37 }
 0x17e   : > { %v865_v49 = vpop.f32.mrf.mxu2  ;;  %v1133_v61 = vpop.f32.mrf.mxu0 }
 0x17f   : > { %v897_v39 = vadd.f32 %v865_v49, %v686_v23 }
 0x180   : > { %v688_v24 = vpop.f32.mrf.mxu1  ;;  %v995_v19 = vpop.f32.mrf.mxu3 }
 0x181   : > { %v1027_v11 = vadd.f32 %v995_v19, %v897_v39  ;;  %1648 = vmatmul.f32.gmra.mxu0 %v4103_v8  ;;  %v689_v3 = vadd.f32 %v688_v24, %v4104_v33  ;;  %v1761_v24 = vlaneseq }
 0x183   : > { %v3803_v10 = vadd.f32 %v1133_v61, %v1027_v11  ;;  %1247 = vmatmul.f32.gmra.mxu1 %v4099_v50  ;;  %1377 = vmatmul.f32.gmra.mxu2 %v3059_v54 }
 0x185   : > { %1515 = vmatmul.f32.gmra.mxu3 %v4105_v32 }
 0x186   : > { %v868_v28 = vpop.f32.mrf.mxu2  ;;  %v1136_v12 = vpop.f32.mrf.mxu0 }
 0x187   : > { %v898_v1 = vadd.f32 %v868_v28, %v689_v3 }
 0x188   : > { %v691_v20 = vpop.f32.mrf.mxu1  ;;  %v998_v36 = vpop.f32.mrf.mxu3 }
 0x189   : > { %v1028_v25 = vadd.f32 %v998_v36, %v898_v1  ;;  %1651 = vmatmul.f32.gmra.mxu0 %v3575_v44  ;;  %v692_v54 = vadd.f32 %v691_v20, %v4106_v5  ;;  %v4110_v1 = vld [vmem:[#allocation8_spill] sm:$0xff]  ;;  %v4111_v20 = vld [vmem:[#allocation35_spill] sm:$0xff]  ;;  %v4112_v5 = vld [vmem:[#allocation14_spill] sm:$0xff] }
 0x18b   : > { %v3810_v40 = vadd.f32 %v1136_v12, %v1028_v25  ;;  %1250 = vmatmul.f32.gmra.mxu1 %v4103_v8  ;;  %1380 = vmatmul.f32.gmra.mxu2 %v2749_v46  ;;  %v3836_v12 = vld [vmem:[%s3994_s4] ss:$0 sm:$0xff] }
 0x18d   : > { %1518 = vmatmul.f32.gmra.mxu3 %v2811_v14 }
 0x18e   : > { %v871_v21 = vpop.f32.mrf.mxu2  ;;  %v1139_v35 = vpop.f32.mrf.mxu0 }
 0x18f   : > { %v899_v60 = vadd.f32 %v871_v21, %v692_v54 }
 0x190   : > { %v694_v62 = vpop.f32.mrf.mxu1  ;;  %v1001_v38 = vpop.f32.mrf.mxu3 }
 0x191   : > { %v1029_v50 = vadd.f32 %v1001_v38, %v899_v60  ;;  %1654 = vmatmul.f32.gmra.mxu0 %v3598_v59  ;;  %v695_v46 = vadd.f32 %v694_v62, %v4107_v2 }
 0x193   : > { %v3817_v48 = vadd.f32 %v1139_v35, %v1029_v50  ;;  %1253 = vmatmul.f32.gmra.mxu1 %v3575_v44  ;;  %1383 = vmatmul.f32.gmra.mxu2 %v2751_v47  ;;  %v4108_v44 = vld [vmem:[#allocation11_spill] sm:$0xff] }
 0x194   : > { %v4113_v50 = vld [vmem:[#allocation39_spill] sm:$0xff] }
 0x195   : > { %1521 = vmatmul.f32.gmra.mxu3 %v2897_v57  ;;  %v3830_v57 = vshrl.u32 %v1761_v24, 7 }
 0x196   : > { %v874_v23 = vpop.f32.mrf.mxu2  ;;  %v1142_v14 = vpop.f32.mrf.mxu0 }
 0x197   : > { %v900_v37 = vadd.f32 %v874_v23, %v695_v46  ;;  %v2613_v46 = vmov 0.0   ;;  %vm2301_vm14 = vcmp.eq.s32.totalorder %v3830_v57, 1  ;;  %vm2300_vm15 = vcmp.eq.s32.totalorder %v3830_v57, 0 }
 0x198   : > { %v1004_v49 = vpop.f32.mrf.mxu3  ;;  %v1209_v61 = vpop.f32.mrf.mxu1 }
 0x199   : > { %v1030_v39 = vadd.f32 %v1004_v49, %v900_v37  ;;  %1657 = vmatmul.f32.gmra.mxu0 %v3615_v0  ;;  %v1281_v47 = vadd.f32 %v1209_v61, %v3581_v30  ;;  %v4115_v61 = vld [vmem:[#allocation16_spill] sm:$0xff] }
 0x19b   : > { %v3824_v19 = vadd.f32 %v1142_v14, %v1030_v39  ;;  %1256 = vmatmul.f32.gmra.mxu1 %v3598_v59  ;;  %1386 = vmatmul.f32.gmra.mxu2 %v2813_v15  ;;  %v4109_v59 = vld [vmem:[#allocation37_spill] sm:$0xff]  ;;  %v1763_v15 = vadd.s32 8, %v3830_v57  ;;  %v4114_v14 = vld [vmem:[#allocation36_spill] sm:$0xff] }
 0x19d   : > { %1524 = vmatmul.f32.gmra.mxu3 %v4108_v44  ;;  %v1797_v54 = vand.u32 15, %v1763_v15 }
 0x19e   : > { %v1339_v11 = vpop.f32.mrf.mxu2  ;;  %v1613_v8 = vpop.f32.mrf.mxu0 }
 0x19f   : > { %v1411_v33 = vadd.f32 %v1339_v11, %v1281_v47  ;;  %vm2099_vm2 = vcmp.lt.s32.totalorder %v1797_v54, 12 }
 0x1a0   : > { %v1212_v3 = vpop.f32.mrf.mxu1  ;;  %v1477_v32 = vpop.f32.mrf.mxu3  ;;  %v2527_v23 = vsel %vm2099_vm2, 1.0, %v2613_v46 }
 0x1a1   : > { %v1549_v28 = vadd.f32 %v1477_v32, %v1411_v33  ;;  %1660 = vmatmul.f32.gmra.mxu0 %v4109_v59  ;;  %v1282_v36 = vadd.f32 %v1212_v3, %v4111_v20  ;;  %v1765_v33 = vadd.s32 24, %v3830_v57 }
 0x1a3   : > { %v1685_v30 = vadd.f32 %v1613_v8, %v1549_v28  ;;  %1259 = vmatmul.f32.gmra.mxu1 %v3615_v0  ;;  %1389 = vmatmul.f32.gmra.mxu2 %v4110_v1 }
 0x1a5   : > { %v1713_v25 = vadd.f32 %v3836_v12, %v1685_v30  ;;  %1527 = vmatmul.f32.gmra.mxu3 %v4112_v5  ;;  %v4116_v30 = vld [vmem:[#allocation38_spill] sm:$0xff] }
 0x1a6   : > { %v1342_v21 = vpop.f32.mrf.mxu2  ;;  %v1616_v35 = vpop.f32.mrf.mxu0 }
 0x1a7   : > { %1737 = vst [vmem:[%s3845_s9] sm:$0xff] %v1713_v25  ;;  %v1412_v60 = vadd.f32 %v1342_v21, %v1282_v36  ;;  %v1811_v36 = vand.u32 15, %v1765_v33  ;;  %v291_v33 = vld [vmem:[%s2678_s12 + $0xe0] sm:$0xff] }
 0x1a8   : > { %v1215_v0 = vpop.f32.mrf.mxu1  ;;  %v1480_v62 = vpop.f32.mrf.mxu3 }
 0x1a9   : > { %v1550_v38 = vadd.f32 %v1480_v62, %v1412_v60  ;;  %1663 = vmatmul.f32.gmra.mxu0 %v4113_v50  ;;  %v1283_v37 = vadd.f32 %v1215_v0, %v4114_v14  ;;  %v290_v60 = vld [vmem:[%s2678_s12 + $0xd8] sm:$0xff]  ;;  %vm2101_vm3 = vcmp.lt.s32.totalorder %v1811_v36, 12  ;;  %v4120_v36 = vld [vmem:[#allocation42_spill] sm:$0xff]  ;;  %s2398_s12 = sshll.u32 %s4123_s22, 3 }
 0x1aa   : > { %v4117_v14 = vld [vmem:[#allocation41_spill] sm:$0xff]  ;;  %s262_s13 = scalar_lea.vmem %s3996_s6, %s2398_s12 }
 0x1ab   : > { %v1686_v2 = vadd.f32 %v1616_v35, %v1550_v38  ;;  %1262 = vmatmul.f32.gmra.mxu1 %v4109_v59  ;;  %1392 = vmatmul.f32.gmra.mxu2 %v2980_v55  ;;  %v2247_v55 = vmul.f32 %v1713_v25, %v1713_v25 }
 0x1ad   : > { %v1714_v49 = vadd.f32 %v3836_v12, %v1686_v2  ;;  %1530 = vmatmul.f32.gmra.mxu3 %v4115_v61 }
 0x1ae   : > { %v1345_v39 = vpop.f32.mrf.mxu2  ;;  %v1619_v24 = vpop.f32.mrf.mxu0 }
 0x1af   : > { %1738 = vst [vmem:[%s3845_s9 + $0x8] sm:$0xff] %v1714_v49  ;;  %v2195_v47 = vmul.f32 %v2527_v23, %v1714_v49  ;;  %v1413_v44 = vadd.f32 %v1345_v39, %v1283_v37  ;;  %v2528_v23 = vsel %vm2101_vm3, 1.0, %v2613_v46 }
 0x1b0   : > { %v1218_v11 = vpop.f32.mrf.mxu1  ;;  %v1483_v8 = vpop.f32.mrf.mxu3 }
 0x1b1   : > { %v2248_v3 = vmul.f32 %v2195_v47, %v1714_v49  ;;  %v1551_v32 = vadd.f32 %v1483_v8, %v1413_v44  ;;  %v2218_v28 = vadd.f32 %v2195_v47, %v1713_v25  ;;  %1666 = vmatmul.f32.gmra.mxu0 %v3674_v43  ;;  %v1284_v1 = vadd.f32 %v1218_v11, %v4116_v30  ;;  %v4119_v44 = vld [vmem:[#allocation40_spill] sm:$0xff] }
 0x1b2   : > { %v324_v30 = vmul.f32 %v3649_v34, %v291_v33 }
 0x1b3   : > { %v2271_v59 = vadd.f32 %v2248_v3, %v2247_v55  ;;  %v1687_v15 = vadd.f32 %v1619_v24, %v1551_v32  ;;  %1265 = vmatmul.f32.gmra.mxu1 %v4113_v50  ;;  %1395 = vmatmul.f32.gmra.mxu2 %v3080_v7  ;;  %v1186_v7 = vrot.slane %v3670_v52, 2  ;;  %v4118_v24 = vrot.slane %v3150_v63, 2 }
 0x1b5   : > { %v1715_v20 = vadd.f32 %v3836_v12, %v1687_v15  ;;  %1533 = vmatmul.f32.gmra.mxu3 %v3206_v56  ;;  %v323_v56 = vmul.f32 %v3649_v34, %v290_v60  ;;  %v1187_v47 = vsel %vm714_vm1, %v4118_v24, %v1186_v7  ;;  %v357_v34 = vadd.f32 %v4119_v44, %v324_v30 }
 0x1b6   : > { %v1348_v5 = vpop.f32.mrf.mxu2  ;;  %v1622_v54 = vpop.f32.mrf.mxu0 }
 0x1b7   : > { %1739 = vst [vmem:[%s3845_s9 + $0x10] sm:$0xff] %v1715_v20  ;;  %v2219_v25 = vadd.f32 %v2218_v28, %v1715_v20  ;;  %v2249_v21 = vmul.f32 %v1715_v20, %v1715_v20  ;;  %v1414_v35 = vadd.f32 %v1348_v5, %v1284_v1  ;;  %v356_v11 = vadd.f32 %v4119_v44, %v323_v56 }
 0x1b8   : > { %v1221_v0 = vpop.f32.mrf.mxu1  ;;  %v1486_v62 = vpop.f32.mrf.mxu3 }
 0x1b9   : > { %v2272_v38 = vadd.f32 %v2271_v59, %v2249_v21  ;;  %v1552_v50 = vadd.f32 %v1486_v62, %v1414_v35  ;;  %1669 = vmatmul.f32.gmra.mxu0 %v3696_v18  ;;  %v1285_v37 = vadd.f32 %v1221_v0, %v4117_v14  ;;  %v3884_v15 = vmax.f32 %v356_v11, 0.0 }
 0x1ba   : > { %v386_v14 = vmax.f32 %v357_v34, 0.0 }
 0x1bb   : > { %v1688_v2 = vadd.f32 %v1622_v54, %v1552_v50  ;;  %1268 = vmatmul.f32.gmra.mxu1 %v3674_v43  ;;  %1398 = vmatmul.f32.gmra.mxu2 %v3150_v63  ;;  %v1188_v63 = vrot.slane %v3691_v17, 2  ;;  %v1454_v60 = vrot.slane %v3884_v15, 1 }
 0x1bc   : > { %v1456_v11 = vrot.slane %v386_v14, 1 }
 0x1bd   : > { %v1716_v49 = vadd.f32 %v3836_v12, %v1688_v2  ;;  %1536 = vmatmul.f32.gmra.mxu3 %v3689_v26  ;;  %v1767_v26 = vadd.s32 40, %v3830_v57  ;;  %v1189_v0 = vsel %vm714_vm1, %v1186_v7, %v1188_v63  ;;  %v1590_v7 = vrot.slane %v3884_v15, 2 }
 0x1be   : > { %v1351_v61 = vpop.f32.mrf.mxu2  ;;  %v1625_v39 = vpop.f32.mrf.mxu0 }
 0x1bf   : > { %1740 = vst [vmem:[%s3845_s9 + $0x18] sm:$0xff] %v1716_v49  ;;  %v2197_v43 = vmul.f32 %v2528_v23, %v1716_v49  ;;  %v1415_v8 = vadd.f32 %v1351_v61, %v1285_v37 }
 0x1c0   : > { %v1224_v55 = vpop.f32.mrf.mxu1  ;;  %v1489_v3 = vpop.f32.mrf.mxu3 }
 0x1c1   : > { %v2250_v32 = vmul.f32 %v2197_v43, %v1716_v49  ;;  %v1553_v28 = vadd.f32 %v1489_v3, %v1415_v8  ;;  %v2220_v59 = vadd.f32 %v2219_v25, %v2197_v43  ;;  %1672 = vmatmul.f32.gmra.mxu0 %v1187_v47  ;;  %v1286_v5 = vadd.f32 %v1224_v55, %v4120_v36 }
 0x1c2   : > { %v1825_v25 = vand.u32 15, %v1767_v26  ;;  %v1591_v43 = vsel %vm714_vm1, %v1188_v63, %v1590_v7 }
 0x1c3   : > { %v2273_v1 = vadd.f32 %v2272_v38, %v2250_v32  ;;  %v1689_v20 = vadd.f32 %v1625_v39, %v1553_v28  ;;  %1271 = vmatmul.f32.gmra.mxu1 %v3696_v18  ;;  %1401 = vmatmul.f32.gmra.mxu2 %v3670_v52  ;;  %v1457_v28 = vsel %vm445_vm0, %v1454_v60, %v1456_v11 }
 0x1c4   : > { %vm2103_vm4 = vcmp.lt.s32.totalorder %v1825_v25, 12 }
 0x1c5   : > { %v1717_v54 = vadd.f32 %v3836_v12, %v1689_v20  ;;  %1539 = vmatmul.f32.gmra.mxu3 %v3709_v16  ;;  %v4121_v16 = vrot.slane %v3691_v17, 1  ;;  %v2529_v49 = vsel %vm2103_vm4, 1.0, %v2613_v46 }
 0x1c6   : > { %v1354_v21 = vpop.f32.mrf.mxu2  ;;  %v1628_v35 = vpop.f32.mrf.mxu0 }
 0x1c7   : > { %1741 = vst [vmem:[%s3845_s9 + $0x20] sm:$0xff] %v1717_v54  ;;  %v2221_v62 = vadd.f32 %v2220_v59, %v1717_v54  ;;  %v2251_v18 = vmul.f32 %v1717_v54, %v1717_v54  ;;  %v1416_v38 = vadd.f32 %v1354_v21, %v1286_v5  ;;  %v1455_v23 = vsel %vm445_vm0, %v4121_v16, %v1454_v60 }
 0x1c8   : > { %v1227_v52 = vpop.f32.mrf.mxu1  ;;  %v1492_v50 = vpop.f32.mrf.mxu3  ;;  %v1592_v59 = vrot.slane %v386_v14, 2 }
 0x1c9   : > { %v2274_v56 = vadd.f32 %v2273_v1, %v2251_v18  ;;  %v1554_v2 = vadd.f32 %v1492_v50, %v1416_v38  ;;  %1675 = vmatmul.f32.gmra.mxu0 %v1189_v0  ;;  %v1287_v61 = vadd.f32 %v1227_v52, %v3700_v42  ;;  %v1769_v42 = vadd.s32 56, %v3830_v57 }
 0x1ca   : > { %v1593_v54 = vsel %vm714_vm1, %v1590_v7, %v1592_v59 }
 0x1cb   : > { %v1690_v37 = vadd.f32 %v1628_v35, %v1554_v2  ;;  %1274 = vmatmul.f32.gmra.mxu1 %v1187_v47  ;;  %1404 = vmatmul.f32.gmra.mxu2 %v3691_v17  ;;  %v1839_v20 = vand.u32 15, %v1769_v42 }
 0x1cd   : > { %v1718_v39 = vadd.f32 %v3836_v12, %v1690_v37  ;;  %1542 = vmatmul.f32.gmra.mxu3 %v1455_v23  ;;  %vm2105_vm5 = vcmp.lt.s32.totalorder %v1839_v20, 12 }
 0x1ce   : > { %v1357_v24 = vpop.f32.mrf.mxu2  ;;  %v1631_v44 = vpop.f32.mrf.mxu0 }
 0x1cf   : > { %1742 = vst [vmem:[%s3845_s9 + $0x28] sm:$0xff] %v1718_v39  ;;  %v2199_v8 = vmul.f32 %v2529_v49, %v1718_v39  ;;  %v1417_v33 = vadd.f32 %v1357_v24, %v1287_v61  ;;  %v1771_v49 = vadd.s32 72, %v3830_v57 }
 0x1d0   : > { %v1230_v55 = vpop.f32.mrf.mxu1  ;;  %v1495_v3 = vpop.f32.mrf.mxu3 }
 0x1d1   : > { %v2252_v47 = vmul.f32 %v2199_v8, %v1718_v39  ;;  %v1555_v32 = vadd.f32 %v1495_v3, %v1417_v33  ;;  %v2222_v17 = vadd.f32 %v2221_v62, %v2199_v8  ;;  %1678 = vmatmul.f32.gmra.mxu0 %v1591_v43  ;;  %v1288_v63 = vadd.f32 %v1230_v55, %v3712_v22 }
 0x1d3   : > { %v2275_v26 = vadd.f32 %v2274_v56, %v2252_v47  ;;  %v1691_v30 = vadd.f32 %v1631_v44, %v1555_v32  ;;  %1277 = vmatmul.f32.gmra.mxu1 %v1189_v0  ;;  %1407 = vmatmul.f32.gmra.mxu2 %v3884_v15  ;;  %v2530_v15 = vsel %vm2105_vm5, 1.0, %v2613_v46  ;;  %v1853_v44 = vand.u32 15, %v1771_v49 }
 0x1d5   : > { %v1719_v1 = vadd.f32 %v3836_v12, %v1691_v30  ;;  %1545 = vmatmul.f32.gmra.mxu3 %v1457_v28  ;;  %vm2107_vm6 = vcmp.lt.s32.totalorder %v1853_v44, 12 }
 0x1d6   : > { %v1360_v36 = vpop.f32.mrf.mxu2  ;;  %v1634_v5 = vpop.f32.mrf.mxu0  ;;  %v2531_v28 = vsel %vm2107_vm6, 1.0, %v2613_v46 }
 0x1d7   : > { %1743 = vst [vmem:[%s3845_s9 + $0x30] sm:$0xff] %v1719_v1  ;;  %v2223_v25 = vadd.f32 %v2222_v17, %v1719_v1  ;;  %v2253_v21 = vmul.f32 %v1719_v1, %v1719_v1  ;;  %v1418_v35 = vadd.f32 %v1360_v36, %v1288_v63 }
 0x1d8   : > { %v1233_v60 = vpop.f32.mrf.mxu1  ;;  %v1498_v34 = vpop.f32.mrf.mxu3 }
 0x1d9   : > { %v2276_v0 = vadd.f32 %v2275_v26, %v2253_v21  ;;  %v1556_v62 = vadd.f32 %v1498_v34, %v1418_v35  ;;  %1681 = vmatmul.f32.gmra.mxu0 %v1593_v54  ;;  %v1289_v18 = vadd.f32 %v1233_v60, %v3719_v6  ;;  %v1773_v21 = vadd.s32 88, %v3830_v57 }
 0x1db   : > { %v1692_v22 = vadd.f32 %v1634_v5, %v1556_v62 }
 0x1dd   : > { %v1720_v38 = vadd.f32 %v3836_v12, %v1692_v22 }
 0x1de   : > { %v1363_v52 = vpop.f32.mrf.mxu2  ;;  %v1637_v50 = vpop.f32.mrf.mxu0 }
 0x1df   : > { %1744 = vst [vmem:[%s3845_s9 + $0x38] sm:$0xff] %v1720_v38  ;;  %v2201_v56 = vmul.f32 %v2530_v15, %v1720_v38  ;;  %v1419_v2 = vadd.f32 %v1363_v52, %v1289_v18 }
 0x1e0   : > { %v1236_v16 = vpop.f32.mrf.mxu1  ;;  %v1501_v23 = vpop.f32.mrf.mxu3 }
 0x1e1   : > { %v2254_v14 = vmul.f32 %v2201_v56, %v1720_v38  ;;  %v1557_v7 = vadd.f32 %v1501_v23, %v1419_v2  ;;  %v2224_v37 = vadd.f32 %v2223_v25, %v2201_v56  ;;  %v1290_v24 = vadd.f32 %v1236_v16, %v3726_v31 }
 0x1e3   : > { %v2277_v61 = vadd.f32 %v2276_v0, %v2254_v14  ;;  %v1693_v39 = vadd.f32 %v1637_v50, %v1557_v7  ;;  %v1867_v0 = vand.u32 15, %v1773_v21 }
 0x1e5   : > { %v1721_v6 = vadd.f32 %v3836_v12, %v1693_v39  ;;  %vm2109_vm7 = vcmp.lt.s32.totalorder %v1867_v0, 12  ;;  %v1777_v0 = vadd.s32 120, %v3830_v57 }
 0x1e6   : > { %v1366_v11 = vpop.f32.mrf.mxu2  ;;  %v1640_v43 = vpop.f32.mrf.mxu0  ;;  %v2532_v23 = vsel %vm2109_vm7, 1.0, %v2613_v46 }
 0x1e7   : > { %1745 = vst [vmem:[%s3845_s9 + $0x40] sm:$0xff] %v1721_v6  ;;  %v2225_v8 = vadd.f32 %v2224_v37, %v1721_v6  ;;  %v2255_v33 = vmul.f32 %v1721_v6, %v1721_v6  ;;  %v1420_v55 = vadd.f32 %v1366_v11, %v1290_v24 }
 0x1e8   : > { %v1239_v3 = vpop.f32.mrf.mxu1  ;;  %v1504_v47 = vpop.f32.mrf.mxu3 }
 0x1e9   : > { %v2278_v32 = vadd.f32 %v2277_v61, %v2255_v33  ;;  %v1558_v17 = vadd.f32 %v1504_v47, %v1420_v55  ;;  %v1291_v31 = vadd.f32 %v1239_v3, %v3733_v13 }
 0x1eb   : > { %v1694_v42 = vadd.f32 %v1640_v43, %v1558_v17  ;;  %v1775_v43 = vadd.s32 104, %v3830_v57 }
 0x1ed   : > { %v1722_v59 = vadd.f32 %v3836_v12, %v1694_v42  ;;  %v1881_v3 = vand.u32 15, %v1775_v43 }
 0x1ee   : > { %v1369_v26 = vpop.f32.mrf.mxu2  ;;  %v1643_v30 = vpop.f32.mrf.mxu0 }
 0x1ef   : > { %1746 = vst [vmem:[%s3845_s9 + $0x48] sm:$0xff] %v1722_v59  ;;  %v2203_v63 = vmul.f32 %v2531_v28, %v1722_v59  ;;  %v1421_v1 = vadd.f32 %v1369_v26, %v1291_v31  ;;  %vm2111_vm8 = vcmp.lt.s32.totalorder %v1881_v3, 12 }
 0x1f0   : > { %v1242_v20 = vpop.f32.mrf.mxu1  ;;  %v1507_v36 = vpop.f32.mrf.mxu3 }
 0x1f1   : > { %v2256_v5 = vmul.f32 %v2203_v63, %v1722_v59  ;;  %v1559_v54 = vadd.f32 %v1507_v36, %v1421_v1  ;;  %v2226_v25 = vadd.f32 %v2225_v8, %v2203_v63  ;;  %v1292_v34 = vadd.f32 %v1242_v20, %v3740_v29 }
 0x1f2   : > { %v2533_v1 = vsel %vm2111_vm8, 1.0, %v2613_v46 }
 0x1f3   : > { %v2279_v35 = vadd.f32 %v2278_v32, %v2256_v5  ;;  %v1695_v60 = vadd.f32 %v1643_v30, %v1559_v54 }
 0x1f5   : > { %v1723_v13 = vadd.f32 %v3836_v12, %v1695_v60 }
 0x1f6   : > { %v1372_v62 = vpop.f32.mrf.mxu2  ;;  %v1646_v22 = vpop.f32.mrf.mxu0 }
 0x1f7   : > { %1747 = vst [vmem:[%s3845_s9 + $0x50] sm:$0xff] %v1723_v13  ;;  %v2227_v15 = vadd.f32 %v2226_v25, %v1723_v13  ;;  %v2257_v18 = vmul.f32 %v1723_v13, %v1723_v13  ;;  %v1422_v38 = vadd.f32 %v1372_v62, %v1292_v34 }
 0x1f8   : > { %v1245_v52 = vpop.f32.mrf.mxu1  ;;  %v1510_v50 = vpop.f32.mrf.mxu3 }
 0x1f9   : > { %v2280_v56 = vadd.f32 %v2279_v35, %v2257_v18  ;;  %v1560_v2 = vadd.f32 %v1510_v50, %v1422_v38  ;;  %v1293_v29 = vadd.f32 %v1245_v52, %v3747_v51  ;;  %v1895_v18 = vand.u32 15, %v1777_v0 }
 0x1fb   : > { %v1696_v16 = vadd.f32 %v1646_v22, %v1560_v2  ;;  %vm2113_vm9 = vcmp.lt.s32.totalorder %v1895_v18, 12 }
 0x1fd   : > { %v1724_v14 = vadd.f32 %v3836_v12, %v1696_v16 }
 0x1fe   : > { %v1375_v7 = vpop.f32.mrf.mxu2  ;;  %v1649_v37 = vpop.f32.mrf.mxu0 }
 0x1ff   : > { %1748 = vst [vmem:[%s3845_s9 + $0x58] sm:$0xff] %v1724_v14  ;;  %v2205_v49 = vmul.f32 %v2532_v23, %v1724_v14  ;;  %v1423_v61 = vadd.f32 %v1375_v7, %v1293_v29 }
 0x200   : > { %v1248_v39 = vpop.f32.mrf.mxu1  ;;  %v1513_v24 = vpop.f32.mrf.mxu3 }
 0x201   : > { %v2258_v6 = vmul.f32 %v2205_v49, %v1724_v14  ;;  %v1561_v44 = vadd.f32 %v1513_v24, %v1423_v61  ;;  %v2228_v11 = vadd.f32 %v2227_v15, %v2205_v49  ;;  %v1294_v55 = vadd.f32 %v1248_v39, %v3754_v53 }
 0x203   : > { %v2281_v8 = vadd.f32 %v2280_v56, %v2258_v6  ;;  %v1697_v33 = vadd.f32 %v1649_v37, %v1561_v44  ;;  %v2534_v37 = vsel %vm2113_vm9, 1.0, %v2613_v46 }
 0x205   : > { %v1725_v51 = vadd.f32 %v3836_v12, %v1697_v33 }
 0x206   : > { %v1378_v47 = vpop.f32.mrf.mxu2  ;;  %v1652_v32 = vpop.f32.mrf.mxu0 }
 0x207   : > { %1749 = vst [vmem:[%s3845_s9 + $0x60] sm:$0xff] %v1725_v51  ;;  %v2229_v17 = vadd.f32 %v2228_v11, %v1725_v51  ;;  %v2259_v42 = vmul.f32 %v1725_v51, %v1725_v51  ;;  %v1424_v28 = vadd.f32 %v1378_v47, %v1294_v55  ;;  %v1779_v55 = vadd.s32 136, %v3830_v57 }
 0x208   : > { %v1251_v31 = vpop.f32.mrf.mxu1  ;;  %v1516_v59 = vpop.f32.mrf.mxu3 }
 0x209   : > { %v2282_v26 = vadd.f32 %v2281_v8, %v2259_v42  ;;  %v1562_v30 = vadd.f32 %v1516_v59, %v1424_v28  ;;  %v1295_v53 = vadd.f32 %v1251_v31, %v3761_v4 }
 0x20b   : > { %v1698_v63 = vadd.f32 %v1652_v32, %v1562_v30  ;;  %v1909_v32 = vand.u32 15, %v1779_v55 }
 0x20d   : > { %v1726_v20 = vadd.f32 %v3836_v12, %v1698_v63  ;;  %vm2115_vm10 = vcmp.lt.s32.totalorder %v1909_v32, 12 }
 0x20e   : > { %v1381_v36 = vpop.f32.mrf.mxu2  ;;  %v1655_v5 = vpop.f32.mrf.mxu0 }
 0x20f   : > { %1750 = vst [vmem:[%s3845_s9 + $0x68] sm:$0xff] %v1726_v20  ;;  %v2207_v54 = vmul.f32 %v2533_v1, %v1726_v20  ;;  %v1425_v25 = vadd.f32 %v1381_v36, %v1295_v53 }
 0x210   : > { %v1254_v21 = vpop.f32.mrf.mxu1  ;;  %v1519_v35 = vpop.f32.mrf.mxu3 }
 0x211   : > { %v2260_v60 = vmul.f32 %v2207_v54, %v1726_v20  ;;  %v1563_v34 = vadd.f32 %v1519_v35, %v1425_v25  ;;  %v2230_v13 = vadd.f32 %v2229_v17, %v2207_v54  ;;  %v1296_v15 = vadd.f32 %v1254_v21, %v3768_v41 }
 0x212   : > { %v2535_v20 = vsel %vm2115_vm10, 1.0, %v2613_v46 }
 0x213   : > { %v2283_v62 = vadd.f32 %v2282_v26, %v2260_v60  ;;  %v1699_v22 = vadd.f32 %v1655_v5, %v1563_v34 }
 0x215   : > { %v1727_v4 = vadd.f32 %v3836_v12, %v1699_v22 }
 0x216   : > { %v1384_v38 = vpop.f32.mrf.mxu2  ;;  %v1658_v52 = vpop.f32.mrf.mxu0 }
 0x217   : > { %1751 = vst [vmem:[%s3845_s9 + $0x70] sm:$0xff] %v1727_v4  ;;  %v2231_v50 = vadd.f32 %v2230_v13, %v1727_v4  ;;  %v2261_v56 = vmul.f32 %v1727_v4, %v1727_v4  ;;  %v1426_v2 = vadd.f32 %v1384_v38, %v1296_v15 }
 0x218   : > { %v1257_v16 = vpop.f32.mrf.mxu1  ;;  %v1522_v23 = vpop.f32.mrf.mxu3 }
 0x219   : > { %v2284_v29 = vadd.f32 %v2283_v62, %v2261_v56  ;;  %v1564_v14 = vadd.f32 %v1522_v23, %v1426_v2  ;;  %v1297_v41 = vadd.f32 %v1257_v16, %v3775_v58  ;;  %v1781_v62 = vadd.s32 152, %v3830_v57 }
 0x21b   : > { %v1700_v7 = vadd.f32 %v1658_v52, %v1564_v14  ;;  %v1923_v18 = vand.u32 15, %v1781_v62 }
 0x21d   : > { %v1728_v49 = vadd.f32 %v3836_v12, %v1700_v7  ;;  %vm2117_vm11 = vcmp.lt.s32.totalorder %v1923_v18, 12 }
 0x21e   : > { %v1387_v61 = vpop.f32.mrf.mxu2  ;;  %v1661_v39 = vpop.f32.mrf.mxu0 }
 0x21f   : > { %1752 = vst [vmem:[%s3845_s9 + $0x78] sm:$0xff] %v1728_v49  ;;  %v2209_v24 = vmul.f32 %v2534_v37, %v1728_v49  ;;  %v1427_v6 = vadd.f32 %v1387_v61, %v1297_v41  ;;  %v2536_v37 = vsel %vm2117_vm11, 1.0, %v2613_v46 }
 0x220   : > { %v1260_v44 = vpop.f32.mrf.mxu1  ;;  %v1525_v11 = vpop.f32.mrf.mxu3 }
 0x221   : > { %v2262_v43 = vmul.f32 %v2209_v24, %v1728_v49  ;;  %v1565_v8 = vadd.f32 %v1525_v11, %v1427_v6  ;;  %v2232_v33 = vadd.f32 %v2231_v50, %v2209_v24  ;;  %v1298_v47 = vadd.f32 %v1260_v44, %v3782_v9 }
 0x223   : > { %v2285_v51 = vadd.f32 %v2284_v29, %v2262_v43  ;;  %v1701_v3 = vadd.f32 %v1661_v39, %v1565_v8 }
 0x225   : > { %v1729_v58 = vadd.f32 %v3836_v12, %v1701_v3 }
 0x226   : > { %v1390_v17 = vpop.f32.mrf.mxu2  ;;  %v1664_v42 = vpop.f32.mrf.mxu0 }
 0x227   : > { %1753 = vst [vmem:[%s3845_s9 + $0x80] sm:$0xff] %v1729_v58  ;;  %v2233_v28 = vadd.f32 %v2232_v33, %v1729_v58  ;;  %v2263_v31 = vmul.f32 %v1729_v58, %v1729_v58  ;;  %v1428_v59 = vadd.f32 %v1390_v17, %v1298_v47  ;;  %v1783_v33 = vadd.s32 168, %v3830_v57 }
 0x228   : > { %v1263_v26 = vpop.f32.mrf.mxu1  ;;  %v1528_v30 = vpop.f32.mrf.mxu3 }
 0x229   : > { %v2286_v63 = vadd.f32 %v2285_v51, %v2263_v31  ;;  %v1566_v1 = vadd.f32 %v1528_v30, %v1428_v59  ;;  %v1299_v9 = vadd.f32 %v1263_v26, %v3789_v45  ;;  %v1937_v47 = vand.u32 15, %v1783_v33 }
 0x22b   : > { %v1702_v53 = vadd.f32 %v1664_v42, %v1566_v1  ;;  %vm2119_vm12 = vcmp.lt.s32.totalorder %v1937_v47, 12 }
 0x22c   : > { %v2537_v1 = vsel %vm2119_vm12, 1.0, %v2613_v46 }
 0x22d   : > { %v1730_v36 = vadd.f32 %v3836_v12, %v1702_v53 }
 0x22e   : > { %v1393_v5 = vpop.f32.mrf.mxu2  ;;  %v1667_v54 = vpop.f32.mrf.mxu0 }
 0x22f   : > { %1754 = vst [vmem:[%s3845_s9 + $0x88] sm:$0xff] %v1730_v36  ;;  %v2211_v25 = vmul.f32 %v2535_v20, %v1730_v36  ;;  %v1429_v21 = vadd.f32 %v1393_v5, %v1299_v9 }
 0x230   : > { %v1266_v35 = vpop.f32.mrf.mxu1  ;;  %v1531_v60 = vpop.f32.mrf.mxu3 }
 0x231   : > { %v2264_v34 = vmul.f32 %v2211_v25, %v1730_v36  ;;  %v1567_v13 = vadd.f32 %v1531_v60, %v1429_v21  ;;  %v2234_v0 = vadd.f32 %v2233_v28, %v2211_v25  ;;  %v1300_v4 = vadd.f32 %v1266_v35, %v3796_v27 }
 0x232   : > { %v1785_v60 = vadd.s32 184, %v3830_v57 }
 0x233   : > { %v2287_v22 = vadd.f32 %v2286_v63, %v2264_v34  ;;  %v1703_v15 = vadd.f32 %v1667_v54, %v1567_v13 }
 0x235   : > { %v1731_v45 = vadd.f32 %v3836_v12, %v1703_v15 }
 0x236   : > { %v1396_v38 = vpop.f32.mrf.mxu2  ;;  %v1670_v52 = vpop.f32.mrf.mxu0 }
 0x237   : > { %1755 = vst [vmem:[%s3845_s9 + $0x90] sm:$0xff] %v1731_v45  ;;  %v2235_v50 = vadd.f32 %v2234_v0, %v1731_v45  ;;  %v2265_v56 = vmul.f32 %v1731_v45, %v1731_v45  ;;  %v1430_v2 = vadd.f32 %v1396_v38, %v1300_v4 }
 0x238   : > { %v1269_v16 = vpop.f32.mrf.mxu1  ;;  %v1534_v23 = vpop.f32.mrf.mxu3 }
 0x239   : > { %v2288_v29 = vadd.f32 %v2287_v22, %v2265_v56  ;;  %v1568_v14 = vadd.f32 %v1534_v23, %v1430_v2  ;;  %v1301_v27 = vadd.f32 %v1269_v16, %v3803_v10  ;;  %v1951_v22 = vand.u32 15, %v1785_v60 }
 0x23b   : > { %v1704_v7 = vadd.f32 %v1670_v52, %v1568_v14  ;;  %vm2121_vm13 = vcmp.lt.s32.totalorder %v1951_v22, 12 }
 0x23c   : > { %v2538_v16 = vsel %vm2121_vm13, 1.0, %v2613_v46 }
 0x23d   : > { %v1732_v41 = vadd.f32 %v3836_v12, %v1704_v7 }
 0x23e   : > { %v1399_v49 = vpop.f32.mrf.mxu2  ;;  %v1673_v61 = vpop.f32.mrf.mxu0 }
 0x23f   : > { %1756 = vst [vmem:[%s3845_s9 + $0x98] sm:$0xff] %v1732_v41  ;;  %v2213_v39 = vmul.f32 %v2536_v37, %v1732_v41  ;;  %v1431_v24 = vadd.f32 %v1399_v49, %v1301_v27 }
 0x240   : > { %v1272_v6 = vpop.f32.mrf.mxu1  ;;  %v1537_v44 = vpop.f32.mrf.mxu3 }
 0x241   : > { %v2266_v11 = vmul.f32 %v2213_v39, %v1732_v41  ;;  %v1569_v43 = vadd.f32 %v1537_v44, %v1431_v24  ;;  %v2236_v8 = vadd.f32 %v2235_v50, %v2213_v39  ;;  %v1302_v3 = vadd.f32 %v1272_v6, %v3810_v40 }
 0x243   : > { %v2289_v55 = vadd.f32 %v2288_v29, %v2266_v11  ;;  %v1705_v51 = vadd.f32 %v1673_v61, %v1569_v43 }
 0x245   : > { %v1733_v10 = vadd.f32 %v3836_v12, %v1705_v51 }
 0x246   : > { %v1402_v58 = vpop.f32.mrf.mxu2  ;;  %v1676_v32 = vpop.f32.mrf.mxu0 }
 0x247   : > { %1757 = vst [vmem:[%s3845_s9 + $0xa0] sm:$0xff] %v1733_v10  ;;  %v2237_v17 = vadd.f32 %v2236_v8, %v1733_v10  ;;  %v2267_v42 = vmul.f32 %v1733_v10, %v1733_v10  ;;  %v1432_v28 = vadd.f32 %v1402_v58, %v1302_v3 }
 0x248   : > { %v1275_v31 = vpop.f32.mrf.mxu1  ;;  %v1540_v59 = vpop.f32.mrf.mxu3 }
 0x249   : > { %v2290_v26 = vadd.f32 %v2289_v55, %v2267_v42  ;;  %v1570_v30 = vadd.f32 %v1540_v59, %v1432_v28  ;;  %v1303_v40 = vadd.f32 %v1275_v31, %v3817_v48 }
 0x24b   : > { %v1706_v63 = vadd.f32 %v1676_v32, %v1570_v30 }
 0x24d   : > { %v1734_v53 = vadd.f32 %v3836_v12, %v1706_v63 }
 0x24e   : > { %v1405_v20 = vpop.f32.mrf.mxu2  ;;  %v1679_v9 = vpop.f32.mrf.mxu0 }
 0x24f   : > { %1758 = vst [vmem:[%s3845_s9 + $0xa8] sm:$0xff] %v1734_v53  ;;  %v2215_v36 = vmul.f32 %v2537_v1, %v1734_v53  ;;  %v1433_v5 = vadd.f32 %v1405_v20, %v1303_v40 }
 0x250   : > { %v1543_v54 = vpop.f32.mrf.mxu3  ;;  %v1278_v34 = vpop.f32.mrf.mxu1 }
 0x251   : > { %v2268_v25 = vmul.f32 %v2215_v36, %v1734_v53  ;;  %v1571_v21 = vadd.f32 %v1543_v54, %v1433_v5  ;;  %v2238_v35 = vadd.f32 %v2237_v17, %v2215_v36  ;;  %v1304_v62 = vadd.f32 %v1278_v34, %v3824_v19 }
 0x253   : > { %v2291_v13 = vadd.f32 %v2290_v26, %v2268_v25  ;;  %v1707_v0 = vadd.f32 %v1679_v9, %v1571_v21 }
 0x255   : > { %v1735_v48 = vadd.f32 %v3836_v12, %v1707_v0 }
 0x256   : > { %v1408_v15 = vpop.f32.mrf.mxu2  ;;  %v1682_v52 = vpop.f32.mrf.mxu0 }
 0x257   : > { %1759 = vst [vmem:[%s3845_s9 + $0xb0] sm:$0xff] %v1735_v48  ;;  %v2239_v4 = vadd.f32 %v2238_v35, %v1735_v48  ;;  %v2269_v45 = vmul.f32 %v1735_v48, %v1735_v48  ;;  %v1434_v18 = vadd.f32 %v1408_v15, %v1304_v62 }
 0x258   : > { %v1546_v38 = vpop.f32.mrf.mxu3 }
 0x259   : > { %v2292_v50 = vadd.f32 %v2291_v13, %v2269_v45  ;;  %v1572_v56 = vadd.f32 %v1546_v38, %v1434_v18 }
 0x25b   : > { %v1708_v2 = vadd.f32 %v1682_v52, %v1572_v56 }
 0x25d   : > { %v1736_v19 = vadd.f32 %v3836_v12, %v1708_v2 }
 0x25f   : > { %1760 = vst [vmem:[%s3845_s9 + $0xb8] sm:$0xff] %v1736_v19  ;;  %v2217_v23 = vmul.f32 %v2538_v16, %v1736_v19 }
 0x261   : > { %v2240_v29 = vadd.f32 %v2239_v4, %v2217_v23  ;;  %v2270_v14 = vmul.f32 %v2217_v23, %v1736_v19 }
 0x263   : > { %v2241_v7 = vrot.slane %v2240_v29, 4  ;;  %v2293_v37 = vadd.f32 %v2292_v50, %v2270_v14 }
 0x265   : > { %v2242_v27 = vadd.f32 %v2241_v7, %v2240_v29  ;;  %v2294_v41 = vrot.slane %v2293_v37, 4 }
 0x267   : > { %v2243_v49 = vrot.slane %v2242_v27, 2  ;;  %v2295_v61 = vadd.f32 %v2294_v41, %v2293_v37 }
 0x269   : > { %v2244_v39 = vadd.f32 %v2243_v49, %v2242_v27  ;;  %v2296_v24 = vrot.slane %v2295_v61, 2 }
 0x26b   : > { %v2297_v6 = vadd.f32 %v2296_v24, %v2295_v61  ;;  %v2245_v44 = vrot.slane %v2244_v39, 1 }
 0x26d   : > { %v2298_v11 = vrot.slane %v2297_v6, 1  ;;  %v2246_v12 = vadd.f32 %v2245_v44, %v2244_v39 }
 0x26f   : > { %v2299_v46 = vadd.f32 %v2298_v11, %v2297_v6 }
 0x271   : > { %v2302_v43 = vsel %vm2301_vm14, %v2299_v46, 0.0 }
 0x272   : > { %v2303_v8 = vsel %vm2300_vm15, %v2246_v12, %v2302_v43 }
 0x273   : > { %2304 = vst [vmem:[%s262_s13] sm:$0xff] %v2303_v8 }
 0x274 PF: > { %s17_s21 = sadd.s32 1, %s2611_s21  }
 0x275   : > { %p14_p4 = scmp.ge.s32.totalorder %s17_s21, 4  }
 0x277   :  { %16 = sbr.rel (!%p14_p4) target bundleno = 1 (0x1), region = 90 }

</bundles_post_ra>
